<compile_context>
chip_gen: v5e
topology: v5e:2x2
jax: 0.10.0
libtpu: 0.0.40
codegen_flags: <defaults>
</compile_context>

<pallas_src>
import functools

import jax
import jax.numpy as jnp
from jax import lax
from jax.experimental import pallas as pl
from jax.experimental.pallas import tpu as pltpu


# ----------------------------------------------------------------------------
# small helpers
# ----------------------------------------------------------------------------
def _round_up(x, m):
    return ((x + m - 1) // m) * m


def _largest_divisor_leq(n, cap):
    best = 1
    for d in range(1, n + 1):
        if n % d == 0 and d <= cap:
            best = d
    return best


def _largest_pow2_divisor_leq(n, cap):
    d = 1
    while d * 2 <= cap and n % (d * 2) == 0:
        d *= 2
    return d


# ----------------------------------------------------------------------------
# Fused (input-projection + recurrence) bidirectional LSTM layer kernel
# ----------------------------------------------------------------------------
def _make_bilstm_kernel(n_streams, t_chunk, b, h, unroll):
    """Build the per-layer kernel body.

    Grid: (num_time_chunks,) sequential ("arbitrary") because h/c carry across
    chunks.  Per grid step c the kernel:
      1. projects the fwd input chunk (time block c) and the bwd input chunk
         (time block nc-1-c) to gates with large-M MXU GEMMs -> VMEM scratch,
      2. runs the fwd and bwd recurrences interleaved in one fori_loop with
         h/c as loop-carry values,
      3. writes bf16 hidden states for both directions.
    """
    g3 = 3 * h

    def kernel(*refs):
        i = 0
        xf = refs[i:i + n_streams]; i += n_streams   # fwd input chunks
        xb = refs[i:i + n_streams]; i += n_streams   # bwd input chunks
        wf = refs[i:i + n_streams]; i += n_streams   # stream -> fwd gates
        wb = refs[i:i + n_streams]; i += n_streams   # stream -> bwd gates
        bf_ref, bb_ref, whf_ref, whb_ref = refs[i:i + 4]; i += 4
        outf_ref, outb_ref = refs[i:i + 2]; i += 2
        hf_scr, cf_scr, hb_scr, cb_scr, gxf_scr, gxb_scr = refs[i:i + 6]

        c_idx = pl.program_id(0)

        @pl.when(c_idx == 0)
        def _():
            hf_scr[...] = jnp.zeros_like(hf_scr)
            cf_scr[...] = jnp.zeros_like(cf_scr)
            hb_scr[...] = jnp.zeros_like(hb_scr)
            cb_scr[...] = jnp.zeros_like(cb_scr)

        # ---- chunk input projection: big-M GEMMs, gates stay in VMEM (f32) ----
        accf = jnp.dot(xf[0][...], wf[0][...], preferred_element_type=jnp.float32)
        accb = jnp.dot(xb[0][...], wb[0][...], preferred_element_type=jnp.float32)
        for k in range(1, n_streams):
            accf += jnp.dot(xf[k][...], wf[k][...],
                            preferred_element_type=jnp.float32)
            accb += jnp.dot(xb[k][...], wb[k][...],
                            preferred_element_type=jnp.float32)
        gxf_scr[...] = accf + bf_ref[...]
        gxb_scr[...] = accb + bb_ref[...]

        whf = whf_ref[...]   # (H, 4H) bf16, VMEM resident across the time loop
        whb = whb_ref[...]
        # TODO(synk): for large H, hold W_hh in MXU staging regs via
        # pltpu.matmul_push_rhs / matmul_acc_lhs instead of re-streaming it.

        def cell(gates, c_prev):
            # gate column order is [i, f, o, g]: one wide sigmoid + one tanh.
            sig = jax.nn.sigmoid(gates[:, :g3])
            g_g = jnp.tanh(gates[:, g3:])
            i_g = sig[:, :h]
            f_g = sig[:, h:2 * h]
            o_g = sig[:, 2 * h:]
            c_new = f_g * c_prev + i_g * g_g
            h_new = o_g * jnp.tanh(c_new)
            return h_new, c_new

        def step(s, carry):
            h_f, c_f, h_b, c_b = carry
            rf = pl.multiple_of(s * b, b)                   # fwd row offset
            rb = pl.multiple_of((t_chunk - 1 - s) * b, b)   # bwd row offset
            # Two independent chains: the LLO scheduler interleaves their MXU
            # pushes and EUP sigmoid/tanh work.
            g_f = gxf_scr[pl.ds(rf, b)] + jnp.dot(
                h_f.astype(jnp.bfloat16), whf,
                preferred_element_type=jnp.float32)
            g_b = gxb_scr[pl.ds(rb, b)] + jnp.dot(
                h_b.astype(jnp.bfloat16), whb,
                preferred_element_type=jnp.float32)
            h_f, c_f = cell(g_f, c_f)
            h_b, c_b = cell(g_b, c_b)
            outf_ref[pl.ds(rf, b)] = h_f.astype(outf_ref.dtype)
            outb_ref[pl.ds(rb, b)] = h_b.astype(outb_ref.dtype)
            return h_f, c_f, h_b, c_b

        carry0 = (hf_scr[...], cf_scr[...], hb_scr[...], cb_scr[...])
        h_f, c_f, h_b, c_b = lax.fori_loop(0, t_chunk, step, carry0,
                                           unroll=unroll)
        # State round-trips VMEM only once per chunk, not per step.
        hf_scr[...] = h_f
        cf_scr[...] = c_f
        hb_scr[...] = h_b
        cb_scr[...] = c_b

    return kernel


def bilstm_layer(streams, w_f_parts, w_b_parts, b_f, b_b, w_hh_f, w_hh_b,
                 *, seq_len, batch, t_chunk, vmem_limit_bytes=None):
    """One bidirectional LSTM layer.

    streams      : list of (N, F_k) bf16 time-major-flattened inputs
                   (layer 0: [x]; layer >= 1: [h_fwd_prev, h_bwd_prev])
    w_f_parts[k] : (F_k, 4H) bf16 weight mapping stream k into the fwd gates
    w_b_parts[k] : (F_k, 4H) bf16 weight mapping stream k into the bwd gates
    b_f / b_b    : (1, 4H) f32  (= b_ih + b_hh), gate order [i, f, o, g]
    w_hh_f/_b    : (H, 4H) bf16 recurrent weights
    Returns (h_fwd, h_bwd), each (N, H) bf16.
    """
    n_streams = len(streams)
    n_rows = streams[0].shape[0]
    hdim = w_hh_f.shape[0]
    g4 = 4 * hdim
    nc = seq_len // t_chunk
    rows = t_chunk * batch
    unroll = _largest_pow2_divisor_leq(t_chunk, 8)

    kernel = _make_bilstm_kernel(n_streams, t_chunk, batch, hdim, unroll)

    const = pl.Buffered(1)   # grid-invariant blocks: no double-buffer copy
    in_specs = []
    for s in streams:                     # fwd time chunks (block c)
        in_specs.append(pl.BlockSpec((rows, s.shape[1]), lambda c: (c, 0)))
    for s in streams:                     # bwd time chunks (block nc-1-c)
        in_specs.append(
            pl.BlockSpec((rows, s.shape[1]), lambda c: (nc - 1 - c, 0)))
    for w in list(w_f_parts) + list(w_b_parts):
        in_specs.append(pl.BlockSpec((w.shape[0], g4), lambda c: (0, 0),
                                     pipeline_mode=const))
    in_specs.append(pl.BlockSpec((1, g4), lambda c: (0, 0), pipeline_mode=const))
    in_specs.append(pl.BlockSpec((1, g4), lambda c: (0, 0), pipeline_mode=const))
    in_specs.append(pl.BlockSpec((hdim, g4), lambda c: (0, 0),
                                 pipeline_mode=const))
    in_specs.append(pl.BlockSpec((hdim, g4), lambda c: (0, 0),
                                 pipeline_mode=const))

    out_specs = [
        pl.BlockSpec((rows, hdim), lambda c: (c, 0)),
        pl.BlockSpec((rows, hdim), lambda c: (nc - 1 - c, 0)),
    ]
    out_shape = [
        jax.ShapeDtypeStruct((n_rows, hdim), jnp.bfloat16),
        jax.ShapeDtypeStruct((n_rows, hdim), jnp.bfloat16),
    ]
    scratch = [
        pltpu.VMEM((batch, hdim), jnp.float32),   # h fwd
        pltpu.VMEM((batch, hdim), jnp.float32),   # c fwd
        pltpu.VMEM((batch, hdim), jnp.float32),   # h bwd
        pltpu.VMEM((batch, hdim), jnp.float32),   # c bwd
        pltpu.VMEM((rows, g4), jnp.float32),      # gx fwd chunk
        pltpu.VMEM((rows, g4), jnp.float32),      # gx bwd chunk
    ]

    cp_kwargs = dict(dimension_semantics=("arbitrary",))
    if vmem_limit_bytes is not None:
        cp_kwargs["vmem_limit_bytes"] = vmem_limit_bytes

    h_f, h_b = pl.pallas_call(
        kernel,
        out_shape=out_shape,
        grid=(nc,),
        in_specs=in_specs,
        out_specs=out_specs,
        scratch_shapes=scratch,
        compiler_params=pltpu.CompilerParams(**cp_kwargs),
    )(*streams, *streams, *w_f_parts, *w_b_parts, b_f, b_b, w_hh_f, w_hh_b)
    return h_f, h_b


# ----------------------------------------------------------------------------
# Linear head (lane-dense, 128-padded output; no HBM concat of fwd/bwd)
# ----------------------------------------------------------------------------
def _head_kernel(hf_ref, hb_ref, wtop_ref, wbot_ref, b_ref, o_ref):
    o_ref[...] = (
        jnp.dot(hf_ref[...], wtop_ref[...], preferred_element_type=jnp.float32)
        + jnp.dot(hb_ref[...], wbot_ref[...], preferred_element_type=jnp.float32)
        + b_ref[...]
    )


def linear_head(h_f, h_b, w_top, w_bot, b_pad, row_tile=512):
    n, hdim = h_f.shape
    o_pad = w_top.shape[1]
    bn = n if n <= row_tile else row_tile
    ntiles = pl.cdiv(n, bn)
    const = pl.Buffered(1)
    return pl.pallas_call(
        _head_kernel,
        out_shape=jax.ShapeDtypeStruct((n, o_pad), jnp.float32),
        grid=(ntiles,),
        in_specs=[
            pl.BlockSpec((bn, hdim), lambda i: (i, 0)),
            pl.BlockSpec((bn, hdim), lambda i: (i, 0)),
            pl.BlockSpec((hdim, o_pad), lambda i: (0, 0), pipeline_mode=const),
            pl.BlockSpec((hdim, o_pad), lambda i: (0, 0), pipeline_mode=const),
            pl.BlockSpec((1, o_pad), lambda i: (0, 0), pipeline_mode=const),
        ],
        out_specs=pl.BlockSpec((bn, o_pad), lambda i: (i, 0)),
        compiler_params=pltpu.CompilerParams(
            dimension_semantics=("parallel",)),
    )(h_f, h_b, w_top, w_bot, b_pad)


# ----------------------------------------------------------------------------
# Full model forward (ProteinLSTM.forward), eval semantics
# ----------------------------------------------------------------------------
def protein_lstm_forward(x_bte, params, *, t_chunk_cap=128,
                         vmem_limit_bytes=None):
    """x_bte: (B, T, E) batch-first like PyTorch. Returns (B, T, output_dim)."""
    b0, t, e = x_bte.shape

    # Pad batch to the 8-row sublane tile: near-free on the MXU, makes every
    # per-step row slice sublane-aligned (and helps v5e MXU occupancy).
    b_pad = _round_up(max(b0, 8), 8)
    if b_pad != b0:
        x_bte = jnp.pad(x_bte, ((0, b_pad - b0), (0, 0), (0, 0)))

    x_tbe = jnp.transpose(x_bte, (1, 0, 2))       # time-major
    n = t * b_pad
    x2d = x_tbe.reshape(n, e).astype(jnp.bfloat16)

    t_chunk = _largest_divisor_leq(t, t_chunk_cap)
    # TODO(synk): for awkward (e.g. prime) T, pad the sequence so the time chunk
    # stays large; the current fallback just uses a smaller divisor chunk.

    streams = [x2d]
    for li, layer in enumerate(params["lstm_layers"]):
        hdim = layer["w_hh_f"].shape[0]
        if li == 0:
            w_f_parts = [layer["w_ih_f"]]
            w_b_parts = [layer["w_ih_b"]]
        else:
            # Split the 2H-wide input weight so the previous layer's fwd/bwd
            # activations are consumed directly (no HBM concat).
            w_f_parts = [layer["w_ih_f"][:hdim], layer["w_ih_f"][hdim:]]
            w_b_parts = [layer["w_ih_b"][:hdim], layer["w_ih_b"][hdim:]]
        h_f, h_b = bilstm_layer(
            streams, w_f_parts, w_b_parts,
            layer["b_f"], layer["b_b"], layer["w_hh_f"], layer["w_hh_b"],
            seq_len=t, batch=b_pad, t_chunk=t_chunk,
            vmem_limit_bytes=vmem_limit_bytes)
        streams = [h_f, h_b]
        # TODO(synk): nn.LSTM inter-layer dropout is training-only; eval => no-op.

    h_f, h_b = streams
    hdim = h_f.shape[1]
    w_out, b_out = params["w_out"], params["b_out"]
    o_dim = w_out.shape[1]
    o_pad = _round_up(o_dim, 128)                 # lane-dense head output
    w_out_p = jnp.pad(w_out, ((0, 0), (0, o_pad - o_dim)))
    b_out_p = jnp.pad(b_out, ((0, 0), (0, o_pad - o_dim)))
    out_pad = linear_head(h_f, h_b, w_out_p[:hdim], w_out_p[hdim:], b_out_p)

    out = out_pad[:, :o_dim].reshape(t, b_pad, o_dim)
    return jnp.transpose(out, (1, 0, 2))[:b0]     # (B, T, O)


# ----------------------------------------------------------------------------
# Deterministic parameter construction (mirrors nn.LSTM / nn.Linear shapes).
# Gate column order is [i, f, o, g] (PyTorch's (i,f,g,o) permuted so a single
# sigmoid covers [:3H] and one tanh covers [3H:]).
# ----------------------------------------------------------------------------
def init_params(key, embedding_dim, hidden_dim, output_dim, num_layers):
    H = hidden_dim
    params = {"lstm_layers": []}
    scale = 1.0 / jnp.sqrt(jnp.float32(H))

    def uni(k, shape):
        return jax.random.uniform(k, shape, jnp.float32, -1.0, 1.0) * scale

    for l in range(num_layers):
        in_dim = embedding_dim if l == 0 else 2 * H
        key, kf1, kf2, kf3, kf4, kb1, kb2, kb3, kb4 = jax.random.split(key, 9)
        params["lstm_layers"].append({
            "w_ih_f": uni(kf1, (in_dim, 4 * H)).astype(jnp.bfloat16),
            "w_hh_f": uni(kf2, (H, 4 * H)).astype(jnp.bfloat16),
            "b_f": (uni(kf3, (4 * H,)) + uni(kf4, (4 * H,))).reshape(1, 4 * H),
            "w_ih_b": uni(kb1, (in_dim, 4 * H)).astype(jnp.bfloat16),
            "w_hh_b": uni(kb2, (H, 4 * H)).astype(jnp.bfloat16),
            "b_b": (uni(kb3, (4 * H,)) + uni(kb4, (4 * H,))).reshape(1, 4 * H),
        })

    key, k1, k2 = jax.random.split(key, 3)
    lin_scale = 1.0 / jnp.sqrt(jnp.float32(2 * H))
    params["w_out"] = (
        jax.random.uniform(k1, (2 * H, output_dim), jnp.float32, -1.0, 1.0)
        * lin_scale).astype(jnp.bfloat16)
    params["b_out"] = (
        jax.random.uniform(k2, (output_dim,), jnp.float32, -1.0, 1.0)
        * lin_scale).reshape(1, output_dim)
    return params


# ----------------------------------------------------------------------------
# Pure-JAX reference (lax.scan), same mixed-precision policy as the kernels
# ----------------------------------------------------------------------------
def _ref_lstm_dir(x_tbf, w_ih, w_hh, bias, reverse):
    T, B, _ = x_tbf.shape
    H = w_hh.shape[0]
    xs = x_tbf[::-1] if reverse else x_tbf

    def step(carry, x_t):
        h, c = carry
        gates = (
            jnp.dot(x_t, w_ih, preferred_element_type=jnp.float32)
            + jnp.dot(h.astype(jnp.bfloat16), w_hh,
                      preferred_element_type=jnp.float32)
            + bias
        )
        i = jax.nn.sigmoid(gates[:, 0 * H:1 * H])
        f = jax.nn.sigmoid(gates[:, 1 * H:2 * H])
        o = jax.nn.sigmoid(gates[:, 2 * H:3 * H])
        g = jnp.tanh(gates[:, 3 * H:4 * H])
        c = f * c + i * g
        h = o * jnp.tanh(c)
        return (h, c), h

    init = (jnp.zeros((B, H), jnp.float32), jnp.zeros((B, H), jnp.float32))
    _, hs = lax.scan(step, init, xs)
    return hs[::-1] if reverse else hs


def reference_forward(x_bte, params):
    h = jnp.transpose(x_bte, (1, 0, 2)).astype(jnp.bfloat16)
    for layer in params["lstm_layers"]:
        hs_f = _ref_lstm_dir(h, layer["w_ih_f"], layer["w_hh_f"],
                             layer["b_f"], False)
        hs_b = _ref_lstm_dir(h, layer["w_ih_b"], layer["w_hh_b"],
                             layer["b_b"], True)
        h = jnp.concatenate([hs_f, hs_b], axis=-1).astype(jnp.bfloat16)
    out = (jnp.dot(h, params["w_out"], preferred_element_type=jnp.float32)
           + params["b_out"])
    return jnp.transpose(out, (1, 0, 2))


# ----------------------------------------------------------------------------
if __name__ == "__main__":
    # Small, module-consistent shapes.
    batch, seq_len = 2, 8
    embedding_dim, hidden_dim, output_dim = 16, 32, 8
    num_layers, dropout_rate = 2, 0.1   # dropout unused at inference

    key = jax.random.PRNGKey(0)
    key, xkey = jax.random.split(key)
    x = jax.random.normal(xkey, (batch, seq_len, embedding_dim), jnp.float32)

    params = init_params(key, embedding_dim, hidden_dim, output_dim, num_layers)

    fwd = jax.jit(functools.partial(protein_lstm_forward, params=params))
    out = fwd(x)
    jax.block_until_ready(out)

    assert out.shape == (batch, seq_len, output_dim), out.shape

    ref = reference_forward(x, params)
    max_err = float(jnp.max(jnp.abs(out - ref)))
    assert jnp.allclose(out, ref, atol=1e-2, rtol=1e-2), max_err

    print("KERNEL_OK")
</pallas_src>

<mosaic_0001>
module attributes {stable_mosaic.version = 11 : i64} {
  func.func @kernel(%arg0: i32, %arg1: memref<64x16xbf16, #tpu.memory_space<vmem>>, %arg2: memref<64x16xbf16, #tpu.memory_space<vmem>>, %arg3: memref<16x128xbf16, #tpu.memory_space<vmem>>, %arg4: memref<16x128xbf16, #tpu.memory_space<vmem>>, %arg5: memref<1x128xf32, #tpu.memory_space<vmem>>, %arg6: memref<1x128xf32, #tpu.memory_space<vmem>>, %arg7: memref<32x128xbf16, #tpu.memory_space<vmem>>, %arg8: memref<32x128xbf16, #tpu.memory_space<vmem>>, %arg9: memref<64x32xbf16, #tpu.memory_space<vmem>>, %arg10: memref<64x32xbf16, #tpu.memory_space<vmem>>, %arg11: memref<8x32xf32, #tpu.memory_space<vmem>>, %arg12: memref<8x32xf32, #tpu.memory_space<vmem>>, %arg13: memref<8x32xf32, #tpu.memory_space<vmem>>, %arg14: memref<8x32xf32, #tpu.memory_space<vmem>>, %arg15: memref<64x128xf32, #tpu.memory_space<vmem>>, %arg16: memref<64x128xf32, #tpu.memory_space<vmem>>) attributes {dimension_semantics = [#tpu.dimension_semantics<arbitrary>], iteration_bounds = array<i64: 1>, scalar_prefetch = 0 : i64, scratch_operands = 6 : i64, tpu.core_type = #tpu.core_type<tc>, window_params = [{transform_indices = @transform_0, window_bounds = array<i64: 64, 16>}, {transform_indices = @transform_1, window_bounds = array<i64: 64, 16>}, {pipeline_mode = #tpu.pipeline_mode<synchronous>, transform_indices = @transform_2, window_bounds = array<i64: 16, 128>}, {pipeline_mode = #tpu.pipeline_mode<synchronous>, transform_indices = @transform_3, window_bounds = array<i64: 16, 128>}, {pipeline_mode = #tpu.pipeline_mode<synchronous>, transform_indices = @transform_4, window_bounds = array<i64: 1, 128>}, {pipeline_mode = #tpu.pipeline_mode<synchronous>, transform_indices = @transform_5, window_bounds = array<i64: 1, 128>}, {pipeline_mode = #tpu.pipeline_mode<synchronous>, transform_indices = @transform_6, window_bounds = array<i64: 32, 128>}, {pipeline_mode = #tpu.pipeline_mode<synchronous>, transform_indices = @transform_7, window_bounds = array<i64: 32, 128>}, {transform_indices = @transform_8, window_bounds = array<i64: 64, 32>}, {transform_indices = @transform_9, window_bounds = array<i64: 64, 32>}]} {
    %c0_i32 = arith.constant 0 : i32
    %0 = arith.cmpi eq, %arg0, %c0_i32 : i32
    %1 = arith.extui %0 : i1 to i32
    %c0_i32_0 = arith.constant 0 : i32
    %2 = arith.cmpi ne, %1, %c0_i32_0 : i32
    scf.if %2 {
      %cst_126 = arith.constant 0.000000e+00 : f32
      %451 = vector.broadcast %cst_126 : f32 to vector<8x32xf32>
      %c0_127 = arith.constant 0 : index
      %c0_128 = arith.constant 0 : index
      %452 = vector.load %arg11[%c0_127, %c0_128] : memref<8x32xf32, #tpu.memory_space<vmem>>, vector<8x32xf32>
      tpu.vector_store %arg11[%c0_127, %c0_128], %451 {strides = array<i32>} : memref<8x32xf32, #tpu.memory_space<vmem>>, vector<8x32xf32>,
      %cst_129 = arith.constant 0.000000e+00 : f32
      %453 = vector.broadcast %cst_129 : f32 to vector<8x32xf32>
      %c0_130 = arith.constant 0 : index
      %c0_131 = arith.constant 0 : index
      %454 = vector.load %arg12[%c0_130, %c0_131] : memref<8x32xf32, #tpu.memory_space<vmem>>, vector<8x32xf32>
      tpu.vector_store %arg12[%c0_130, %c0_131], %453 {strides = array<i32>} : memref<8x32xf32, #tpu.memory_space<vmem>>, vector<8x32xf32>,
      %cst_132 = arith.constant 0.000000e+00 : f32
      %455 = vector.broadcast %cst_132 : f32 to vector<8x32xf32>
      %c0_133 = arith.constant 0 : index
      %c0_134 = arith.constant 0 : index
      %456 = vector.load %arg13[%c0_133, %c0_134] : memref<8x32xf32, #tpu.memory_space<vmem>>, vector<8x32xf32>
      tpu.vector_store %arg13[%c0_133, %c0_134], %455 {strides = array<i32>} : memref<8x32xf32, #tpu.memory_space<vmem>>, vector<8x32xf32>,
      %cst_135 = arith.constant 0.000000e+00 : f32
      %457 = vector.broadcast %cst_135 : f32 to vector<8x32xf32>
      %c0_136 = arith.constant 0 : index
      %c0_137 = arith.constant 0 : index
      %458 = vector.load %arg14[%c0_136, %c0_137] : memref<8x32xf32, #tpu.memory_space<vmem>>, vector<8x32xf32>
      tpu.vector_store %arg14[%c0_136, %c0_137], %457 {strides = array<i32>} : memref<8x32xf32, #tpu.memory_space<vmem>>, vector<8x32xf32>,
    } else {
    }
    %c0 = arith.constant 0 : index
    %c0_1 = arith.constant 0 : index
    %3 = vector.load %arg1[%c0, %c0_1] : memref<64x16xbf16, #tpu.memory_space<vmem>>, vector<64x16xbf16>
    %c0_2 = arith.constant 0 : index
    %c0_3 = arith.constant 0 : index
    %4 = vector.load %arg3[%c0_2, %c0_3] : memref<16x128xbf16, #tpu.memory_space<vmem>>, vector<16x128xbf16>
    %cst = arith.constant dense<0.000000e+00> : vector<64x128xf32>
    %5 = tpu.matmul %3, %4, %cst {dimension_numbers = #tpu.dot_dimension_numbers<[1], [0], [0], [1], [0, 0, 1, 1], [], []>} : vector<64x16xbf16>, vector<16x128xbf16>, vector<64x128xf32> -> vector<64x128xf32>
    %c0_4 = arith.constant 0 : index
    %c0_5 = arith.constant 0 : index
    %6 = vector.load %arg2[%c0_4, %c0_5] : memref<64x16xbf16, #tpu.memory_space<vmem>>, vector<64x16xbf16>
    %c0_6 = arith.constant 0 : index
    %c0_7 = arith.constant 0 : index
    %7 = vector.load %arg4[%c0_6, %c0_7] : memref<16x128xbf16, #tpu.memory_space<vmem>>, vector<16x128xbf16>
    %cst_8 = arith.constant dense<0.000000e+00> : vector<64x128xf32>
    %8 = tpu.matmul %6, %7, %cst_8 {dimension_numbers = #tpu.dot_dimension_numbers<[1], [0], [0], [1], [0, 0, 1, 1], [], []>} : vector<64x16xbf16>, vector<16x128xbf16>, vector<64x128xf32> -> vector<64x128xf32>
    %c0_9 = arith.constant 0 : index
    %c0_10 = arith.constant 0 : index
    %9 = vector.load %arg5[%c0_9, %c0_10] : memref<1x128xf32, #tpu.memory_space<vmem>>, vector<1x128xf32>
    %10 = vector.broadcast %9 : vector<1x128xf32> to vector<64x128xf32>
    %11 = arith.addf %5, %10 : vector<64x128xf32>
    %c0_11 = arith.constant 0 : index
    %c0_12 = arith.constant 0 : index
    %12 = vector.load %arg15[%c0_11, %c0_12] : memref<64x128xf32, #tpu.memory_space<vmem>>, vector<64x128xf32>
    tpu.vector_store %arg15[%c0_11, %c0_12], %11 {strides = array<i32>} : memref<64x128xf32, #tpu.memory_space<vmem>>, vector<64x128xf32>,
    %c0_13 = arith.constant 0 : index
    %c0_14 = arith.constant 0 : index
    %13 = vector.load %arg6[%c0_13, %c0_14] : memref<1x128xf32, #tpu.memory_space<vmem>>, vector<1x128xf32>
    %14 = vector.broadcast %13 : vector<1x128xf32> to vector<64x128xf32>
    %15 = arith.addf %8, %14 : vector<64x128xf32>
    %c0_15 = arith.constant 0 : index
    %c0_16 = arith.constant 0 : index
    %16 = vector.load %arg16[%c0_15, %c0_16] : memref<64x128xf32, #tpu.memory_space<vmem>>, vector<64x128xf32>
    tpu.vector_store %arg16[%c0_15, %c0_16], %15 {strides = array<i32>} : memref<64x128xf32, #tpu.memory_space<vmem>>, vector<64x128xf32>,
    %c0_17 = arith.constant 0 : index
    %c0_18 = arith.constant 0 : index
    %17 = vector.load %arg7[%c0_17, %c0_18] : memref<32x128xbf16, #tpu.memory_space<vmem>>, vector<32x128xbf16>
    %c0_19 = arith.constant 0 : index
    %c0_20 = arith.constant 0 : index
    %18 = vector.load %arg8[%c0_19, %c0_20] : memref<32x128xbf16, #tpu.memory_space<vmem>>, vector<32x128xbf16>
    %c0_21 = arith.constant 0 : index
    %c0_22 = arith.constant 0 : index
    %19 = vector.load %arg11[%c0_21, %c0_22] : memref<8x32xf32, #tpu.memory_space<vmem>>, vector<8x32xf32>
    %c0_23 = arith.constant 0 : index
    %c0_24 = arith.constant 0 : index
    %20 = vector.load %arg12[%c0_23, %c0_24] : memref<8x32xf32, #tpu.memory_space<vmem>>, vector<8x32xf32>
    %c0_25 = arith.constant 0 : index
    %c0_26 = arith.constant 0 : index
    %21 = vector.load %arg13[%c0_25, %c0_26] : memref<8x32xf32, #tpu.memory_space<vmem>>, vector<8x32xf32>
    %c0_27 = arith.constant 0 : index
    %c0_28 = arith.constant 0 : index
    %22 = vector.load %arg14[%c0_27, %c0_28] : memref<8x32xf32, #tpu.memory_space<vmem>>, vector<8x32xf32>
    %c0_i32_29 = arith.constant 0 : i32
    %c8_i32 = arith.constant 8 : i32
    %23 = arith.muli %c0_i32_29, %c8_i32 : i32
    %24 = tpu.assume_multiple %23, 8 : i32
    %c7_i32 = arith.constant 7 : i32
    %25 = arith.subi %c7_i32, %c0_i32_29 : i32
    %c8_i32_30 = arith.constant 8 : i32
    %26 = arith.muli %25, %c8_i32_30 : i32
    %27 = tpu.assume_multiple %26, 8 : i32
    %28 = arith.index_cast %24 : i32 to index
    %c0_31 = arith.constant 0 : index
    %29 = vector.load %arg15[%28, %c0_31] : memref<64x128xf32, #tpu.memory_space<vmem>>, vector<8x128xf32>
    %30 = arith.truncf %19 : vector<8x32xf32> to vector<8x32xbf16>
    %cst_32 = arith.constant dense<0.000000e+00> : vector<8x128xf32>
    %31 = tpu.matmul %30, %17, %cst_32 {dimension_numbers = #tpu.dot_dimension_numbers<[1], [0], [0], [1], [0, 0, 1, 1], [], []>} : vector<8x32xbf16>, vector<32x128xbf16>, vector<8x128xf32> -> vector<8x128xf32>
    %32 = arith.addf %29, %31 : vector<8x128xf32>
    %33 = arith.index_cast %27 : i32 to index
    %c0_33 = arith.constant 0 : index
    %34 = vector.load %arg16[%33, %c0_33] : memref<64x128xf32, #tpu.memory_space<vmem>>, vector<8x128xf32>
    %35 = arith.truncf %21 : vector<8x32xf32> to vector<8x32xbf16>
    %cst_34 = arith.constant dense<0.000000e+00> : vector<8x128xf32>
    %36 = tpu.matmul %35, %18, %cst_34 {dimension_numbers = #tpu.dot_dimension_numbers<[1], [0], [0], [1], [0, 0, 1, 1], [], []>} : vector<8x32xbf16>, vector<32x128xbf16>, vector<8x128xf32> -> vector<8x128xf32>
    %37 = arith.addf %34, %36 : vector<8x128xf32>
    %38 = vector.extract_strided_slice %32 {offsets = [0, 0], sizes = [8, 96], strides = [1, 1]} : vector<8x128xf32> to vector<8x96xf32>
    %39 = arith.negf %38 : vector<8x96xf32>
    %40 = math.exp %39 : vector<8x96xf32>
    %cst_35 = arith.constant 1.000000e+00 : f32
    %41 = vector.broadcast %cst_35 : f32 to vector<8x96xf32>
    %42 = arith.addf %41, %40 : vector<8x96xf32>
    %43 = arith.divf %41, %42 : vector<8x96xf32>
    %44 = vector.extract_strided_slice %32 {offsets = [0, 96], sizes = [8, 32], strides = [1, 1]} : vector<8x128xf32> to vector<8x32xf32>
    %45 = math.tanh %44 : vector<8x32xf32>
    %46 = vector.extract_strided_slice %43 {offsets = [0, 0], sizes = [8, 32], strides = [1, 1]} : vector<8x96xf32> to vector<8x32xf32>
    %47 = vector.extract_strided_slice %43 {offsets = [0, 32], sizes = [8, 32], strides = [1, 1]} : vector<8x96xf32> to vector<8x32xf32>
    %48 = vector.extract_strided_slice %43 {offsets = [0, 64], sizes = [8, 32], strides = [1, 1]} : vector<8x96xf32> to vector<8x32xf32>
    %49 = arith.mulf %47, %20 : vector<8x32xf32>
    %50 = arith.mulf %46, %45 : vector<8x32xf32>
    %51 = arith.addf %49, %50 : vector<8x32xf32>
    %52 = math.tanh %51 : vector<8x32xf32>
    %53 = arith.mulf %48, %52 : vector<8x32xf32>
    %54 = vector.extract_strided_slice %37 {offsets = [0, 0], sizes = [8, 96], strides = [1, 1]} : vector<8x128xf32> to vector<8x96xf32>
    %55 = arith.negf %54 : vector<8x96xf32>
    %56 = math.exp %55 : vector<8x96xf32>
    %cst_36 = arith.constant 1.000000e+00 : f32
    %57 = vector.broadcast %cst_36 : f32 to vector<8x96xf32>
    %58 = arith.addf %57, %56 : vector<8x96xf32>
    %59 = arith.divf %57, %58 : vector<8x96xf32>
    %60 = vector.extract_strided_slice %37 {offsets = [0, 96], sizes = [8, 32], strides = [1, 1]} : vector<8x128xf32> to vector<8x32xf32>
    %61 = math.tanh %60 : vector<8x32xf32>
    %62 = vector.extract_strided_slice %59 {offsets = [0, 0], sizes = [8, 32], strides = [1, 1]} : vector<8x96xf32> to vector<8x32xf32>
    %63 = vector.extract_strided_slice %59 {offsets = [0, 32], sizes = [8, 32], strides = [1, 1]} : vector<8x96xf32> to vector<8x32xf32>
    %64 = vector.extract_strided_slice %59 {offsets = [0, 64], sizes = [8, 32], strides = [1, 1]} : vector<8x96xf32> to vector<8x32xf32>
    %65 = arith.mulf %63, %22 : vector<8x32xf32>
    %66 = arith.mulf %62, %61 : vector<8x32xf32>
    %67 = arith.addf %65, %66 : vector<8x32xf32>
    %68 = math.tanh %67 : vector<8x32xf32>
    %69 = arith.mulf %64, %68 : vector<8x32xf32>
    %70 = arith.truncf %53 : vector<8x32xf32> to vector<8x32xbf16>
    %71 = arith.index_cast %24 : i32 to index
    %c0_37 = arith.constant 0 : index
    %72 = vector.load %arg9[%71, %c0_37] : memref<64x32xbf16, #tpu.memory_space<vmem>>, vector<8x32xbf16>
    tpu.vector_store %arg9[%71, %c0_37], %70 {strides = array<i32>} : memref<64x32xbf16, #tpu.memory_space<vmem>>, vector<8x32xbf16>,
    %73 = arith.truncf %69 : vector<8x32xf32> to vector<8x32xbf16>
    %74 = arith.index_cast %27 : i32 to index
    %c0_38 = arith.constant 0 : index
    %75 = vector.load %arg10[%74, %c0_38] : memref<64x32xbf16, #tpu.memory_space<vmem>>, vector<8x32xbf16>
    tpu.vector_store %arg10[%74, %c0_38], %73 {strides = array<i32>} : memref<64x32xbf16, #tpu.memory_space<vmem>>, vector<8x32xbf16>,
    %c1_i32 = arith.constant 1 : i32
    %c8_i32_39 = arith.constant 8 : i32
    %76 = arith.muli %c1_i32, %c8_i32_39 : i32
    %77 = tpu.assume_multiple %76, 8 : i32
    %c7_i32_40 = arith.constant 7 : i32
    %78 = arith.subi %c7_i32_40, %c1_i32 : i32
    %c8_i32_41 = arith.constant 8 : i32
    %79 = arith.muli %78, %c8_i32_41 : i32
    %80 = tpu.assume_multiple %79, 8 : i32
    %81 = arith.index_cast %77 : i32 to index
    %c0_42 = arith.constant 0 : index
    %82 = vector.load %arg15[%81, %c0_42] : memref<64x128xf32, #tpu.memory_space<vmem>>, vector<8x128xf32>
    %83 = arith.truncf %53 : vector<8x32xf32> to vector<8x32xbf16>
    %cst_43 = arith.constant dense<0.000000e+00> : vector<8x128xf32>
    %84 = tpu.matmul %83, %17, %cst_43 {dimension_numbers = #tpu.dot_dimension_numbers<[1], [0], [0], [1], [0, 0, 1, 1], [], []>} : vector<8x32xbf16>, vector<32x128xbf16>, vector<8x128xf32> -> vector<8x128xf32>
    %85 = arith.addf %82, %84 : vector<8x128xf32>
    %86 = arith.index_cast %80 : i32 to index
    %c0_44 = arith.constant 0 : index
    %87 = vector.load %arg16[%86, %c0_44] : memref<64x128xf32, #tpu.memory_space<vmem>>, vector<8x128xf32>
    %88 = arith.truncf %69 : vector<8x32xf32> to vector<8x32xbf16>
    %cst_45 = arith.constant dense<0.000000e+00> : vector<8x128xf32>
    %89 = tpu.matmul %88, %18, %cst_45 {dimension_numbers = #tpu.dot_dimension_numbers<[1], [0], [0], [1], [0, 0, 1, 1], [], []>} : vector<8x32xbf16>, vector<32x128xbf16>, vector<8x128xf32> -> vector<8x128xf32>
    %90 = arith.addf %87, %89 : vector<8x128xf32>
    %91 = vector.extract_strided_slice %85 {offsets = [0, 0], sizes = [8, 96], strides = [1, 1]} : vector<8x128xf32> to vector<8x96xf32>
    %92 = arith.negf %91 : vector<8x96xf32>
    %93 = math.exp %92 : vector<8x96xf32>
    %cst_46 = arith.constant 1.000000e+00 : f32
    %94 = vector.broadcast %cst_46 : f32 to vector<8x96xf32>
    %95 = arith.addf %94, %93 : vector<8x96xf32>
    %96 = arith.divf %94, %95 : vector<8x96xf32>
    %97 = vector.extract_strided_slice %85 {offsets = [0, 96], sizes = [8, 32], strides = [1, 1]} : vector<8x128xf32> to vector<8x32xf32>
    %98 = math.tanh %97 : vector<8x32xf32>
    %99 = vector.extract_strided_slice %96 {offsets = [0, 0], sizes = [8, 32], strides = [1, 1]} : vector<8x96xf32> to vector<8x32xf32>
    %100 = vector.extract_strided_slice %96 {offsets = [0, 32], sizes = [8, 32], strides = [1, 1]} : vector<8x96xf32> to vector<8x32xf32>
    %101 = vector.extract_strided_slice %96 {offsets = [0, 64], sizes = [8, 32], strides = [1, 1]} : vector<8x96xf32> to vector<8x32xf32>
    %102 = arith.mulf %100, %51 : vector<8x32xf32>
    %103 = arith.mulf %99, %98 : vector<8x32xf32>
    %104 = arith.addf %102, %103 : vector<8x32xf32>
    %105 = math.tanh %104 : vector<8x32xf32>
    %106 = arith.mulf %101, %105 : vector<8x32xf32>
    %107 = vector.extract_strided_slice %90 {offsets = [0, 0], sizes = [8, 96], strides = [1, 1]} : vector<8x128xf32> to vector<8x96xf32>
    %108 = arith.negf %107 : vector<8x96xf32>
    %109 = math.exp %108 : vector<8x96xf32>
    %cst_47 = arith.constant 1.000000e+00 : f32
    %110 = vector.broadcast %cst_47 : f32 to vector<8x96xf32>
    %111 = arith.addf %110, %109 : vector<8x96xf32>
    %112 = arith.divf %110, %111 : vector<8x96xf32>
    %113 = vector.extract_strided_slice %90 {offsets = [0, 96], sizes = [8, 32], strides = [1, 1]} : vector<8x128xf32> to vector<8x32xf32>
    %114 = math.tanh %113 : vector<8x32xf32>
    %115 = vector.extract_strided_slice %112 {offsets = [0, 0], sizes = [8, 32], strides = [1, 1]} : vector<8x96xf32> to vector<8x32xf32>
    %116 = vector.extract_strided_slice %112 {offsets = [0, 32], sizes = [8, 32], strides = [1, 1]} : vector<8x96xf32> to vector<8x32xf32>
    %117 = vector.extract_strided_slice %112 {offsets = [0, 64], sizes = [8, 32], strides = [1, 1]} : vector<8x96xf32> to vector<8x32xf32>
    %118 = arith.mulf %116, %67 : vector<8x32xf32>
    %119 = arith.mulf %115, %114 : vector<8x32xf32>
    %120 = arith.addf %118, %119 : vector<8x32xf32>
    %121 = math.tanh %120 : vector<8x32xf32>
    %122 = arith.mulf %117, %121 : vector<8x32xf32>
    %123 = arith.truncf %106 : vector<8x32xf32> to vector<8x32xbf16>
    %124 = arith.index_cast %77 : i32 to index
    %c0_48 = arith.constant 0 : index
    %125 = vector.load %arg9[%124, %c0_48] : memref<64x32xbf16, #tpu.memory_space<vmem>>, vector<8x32xbf16>
    tpu.vector_store %arg9[%124, %c0_48], %123 {strides = array<i32>} : memref<64x32xbf16, #tpu.memory_space<vmem>>, vector<8x32xbf16>,
    %126 = arith.truncf %122 : vector<8x32xf32> to vector<8x32xbf16>
    %127 = arith.index_cast %80 : i32 to index
    %c0_49 = arith.constant 0 : index
    %128 = vector.load %arg10[%127, %c0_49] : memref<64x32xbf16, #tpu.memory_space<vmem>>, vector<8x32xbf16>
    tpu.vector_store %arg10[%127, %c0_49], %126 {strides = array<i32>} : memref<64x32xbf16, #tpu.memory_space<vmem>>, vector<8x32xbf16>,
    %c2_i32 = arith.constant 2 : i32
    %c8_i32_50 = arith.constant 8 : i32
    %129 = arith.muli %c2_i32, %c8_i32_50 : i32
    %130 = tpu.assume_multiple %129, 8 : i32
    %c7_i32_51 = arith.constant 7 : i32
    %131 = arith.subi %c7_i32_51, %c2_i32 : i32
    %c8_i32_52 = arith.constant 8 : i32
    %132 = arith.muli %131, %c8_i32_52 : i32
    %133 = tpu.assume_multiple %132, 8 : i32
    %134 = arith.index_cast %130 : i32 to index
    %c0_53 = arith.constant 0 : index
    %135 = vector.load %arg15[%134, %c0_53] : memref<64x128xf32, #tpu.memory_space<vmem>>, vector<8x128xf32>
    %136 = arith.truncf %106 : vector<8x32xf32> to vector<8x32xbf16>
    %cst_54 = arith.constant dense<0.000000e+00> : vector<8x128xf32>
    %137 = tpu.matmul %136, %17, %cst_54 {dimension_numbers = #tpu.dot_dimension_numbers<[1], [0], [0], [1], [0, 0, 1, 1], [], []>} : vector<8x32xbf16>, vector<32x128xbf16>, vector<8x128xf32> -> vector<8x128xf32>
    %138 = arith.addf %135, %137 : vector<8x128xf32>
    %139 = arith.index_cast %133 : i32 to index
    %c0_55 = arith.constant 0 : index
    %140 = vector.load %arg16[%139, %c0_55] : memref<64x128xf32, #tpu.memory_space<vmem>>, vector<8x128xf32>
    %141 = arith.truncf %122 : vector<8x32xf32> to vector<8x32xbf16>
    %cst_56 = arith.constant dense<0.000000e+00> : vector<8x128xf32>
    %142 = tpu.matmul %141, %18, %cst_56 {dimension_numbers = #tpu.dot_dimension_numbers<[1], [0], [0], [1], [0, 0, 1, 1], [], []>} : vector<8x32xbf16>, vector<32x128xbf16>, vector<8x128xf32> -> vector<8x128xf32>
    %143 = arith.addf %140, %142 : vector<8x128xf32>
    %144 = vector.extract_strided_slice %138 {offsets = [0, 0], sizes = [8, 96], strides = [1, 1]} : vector<8x128xf32> to vector<8x96xf32>
    %145 = arith.negf %144 : vector<8x96xf32>
    %146 = math.exp %145 : vector<8x96xf32>
    %cst_57 = arith.constant 1.000000e+00 : f32
    %147 = vector.broadcast %cst_57 : f32 to vector<8x96xf32>
    %148 = arith.addf %147, %146 : vector<8x96xf32>
    %149 = arith.divf %147, %148 : vector<8x96xf32>
    %150 = vector.extract_strided_slice %138 {offsets = [0, 96], sizes = [8, 32], strides = [1, 1]} : vector<8x128xf32> to vector<8x32xf32>
    %151 = math.tanh %150 : vector<8x32xf32>
    %152 = vector.extract_strided_slice %149 {offsets = [0, 0], sizes = [8, 32], strides = [1, 1]} : vector<8x96xf32> to vector<8x32xf32>
    %153 = vector.extract_strided_slice %149 {offsets = [0, 32], sizes = [8, 32], strides = [1, 1]} : vector<8x96xf32> to vector<8x32xf32>
    %154 = vector.extract_strided_slice %149 {offsets = [0, 64], sizes = [8, 32], strides = [1, 1]} : vector<8x96xf32> to vector<8x32xf32>
    %155 = arith.mulf %153, %104 : vector<8x32xf32>
    %156 = arith.mulf %152, %151 : vector<8x32xf32>
    %157 = arith.addf %155, %156 : vector<8x32xf32>
    %158 = math.tanh %157 : vector<8x32xf32>
    %159 = arith.mulf %154, %158 : vector<8x32xf32>
    %160 = vector.extract_strided_slice %143 {offsets = [0, 0], sizes = [8, 96], strides = [1, 1]} : vector<8x128xf32> to vector<8x96xf32>
    %161 = arith.negf %160 : vector<8x96xf32>
    %162 = math.exp %161 : vector<8x96xf32>
    %cst_58 = arith.constant 1.000000e+00 : f32
    %163 = vector.broadcast %cst_58 : f32 to vector<8x96xf32>
    %164 = arith.addf %163, %162 : vector<8x96xf32>
    %165 = arith.divf %163, %164 : vector<8x96xf32>
    %166 = vector.extract_strided_slice %143 {offsets = [0, 96], sizes = [8, 32], strides = [1, 1]} : vector<8x128xf32> to vector<8x32xf32>
    %167 = math.tanh %166 : vector<8x32xf32>
    %168 = vector.extract_strided_slice %165 {offsets = [0, 0], sizes = [8, 32], strides = [1, 1]} : vector<8x96xf32> to vector<8x32xf32>
    %169 = vector.extract_strided_slice %165 {offsets = [0, 32], sizes = [8, 32], strides = [1, 1]} : vector<8x96xf32> to vector<8x32xf32>
    %170 = vector.extract_strided_slice %165 {offsets = [0, 64], sizes = [8, 32], strides = [1, 1]} : vector<8x96xf32> to vector<8x32xf32>
    %171 = arith.mulf %169, %120 : vector<8x32xf32>
    %172 = arith.mulf %168, %167 : vector<8x32xf32>
    %173 = arith.addf %171, %172 : vector<8x32xf32>
    %174 = math.tanh %173 : vector<8x32xf32>
    %175 = arith.mulf %170, %174 : vector<8x32xf32>
    %176 = arith.truncf %159 : vector<8x32xf32> to vector<8x32xbf16>
    %177 = arith.index_cast %130 : i32 to index
    %c0_59 = arith.constant 0 : index
    %178 = vector.load %arg9[%177, %c0_59] : memref<64x32xbf16, #tpu.memory_space<vmem>>, vector<8x32xbf16>
    tpu.vector_store %arg9[%177, %c0_59], %176 {strides = array<i32>} : memref<64x32xbf16, #tpu.memory_space<vmem>>, vector<8x32xbf16>,
    %179 = arith.truncf %175 : vector<8x32xf32> to vector<8x32xbf16>
    %180 = arith.index_cast %133 : i32 to index
    %c0_60 = arith.constant 0 : index
    %181 = vector.load %arg10[%180, %c0_60] : memref<64x32xbf16, #tpu.memory_space<vmem>>, vector<8x32xbf16>
    tpu.vector_store %arg10[%180, %c0_60], %179 {strides = array<i32>} : memref<64x32xbf16, #tpu.memory_space<vmem>>, vector<8x32xbf16>,
    %c3_i32 = arith.constant 3 : i32
    %c8_i32_61 = arith.constant 8 : i32
    %182 = arith.muli %c3_i32, %c8_i32_61 : i32
    %183 = tpu.assume_multiple %182, 8 : i32
    %c7_i32_62 = arith.constant 7 : i32
    %184 = arith.subi %c7_i32_62, %c3_i32 : i32
    %c8_i32_63 = arith.constant 8 : i32
    %185 = arith.muli %184, %c8_i32_63 : i32
    %186 = tpu.assume_multiple %185, 8 : i32
    %187 = arith.index_cast %183 : i32 to index
    %c0_64 = arith.constant 0 : index
    %188 = vector.load %arg15[%187, %c0_64] : memref<64x128xf32, #tpu.memory_space<vmem>>, vector<8x128xf32>
    %189 = arith.truncf %159 : vector<8x32xf32> to vector<8x32xbf16>
    %cst_65 = arith.constant dense<0.000000e+00> : vector<8x128xf32>
    %190 = tpu.matmul %189, %17, %cst_65 {dimension_numbers = #tpu.dot_dimension_numbers<[1], [0], [0], [1], [0, 0, 1, 1], [], []>} : vector<8x32xbf16>, vector<32x128xbf16>, vector<8x128xf32> -> vector<8x128xf32>
    %191 = arith.addf %188, %190 : vector<8x128xf32>
    %192 = arith.index_cast %186 : i32 to index
    %c0_66 = arith.constant 0 : index
    %193 = vector.load %arg16[%192, %c0_66] : memref<64x128xf32, #tpu.memory_space<vmem>>, vector<8x128xf32>
    %194 = arith.truncf %175 : vector<8x32xf32> to vector<8x32xbf16>
    %cst_67 = arith.constant dense<0.000000e+00> : vector<8x128xf32>
    %195 = tpu.matmul %194, %18, %cst_67 {dimension_numbers = #tpu.dot_dimension_numbers<[1], [0], [0], [1], [0, 0, 1, 1], [], []>} : vector<8x32xbf16>, vector<32x128xbf16>, vector<8x128xf32> -> vector<8x128xf32>
    %196 = arith.addf %193, %195 : vector<8x128xf32>
    %197 = vector.extract_strided_slice %191 {offsets = [0, 0], sizes = [8, 96], strides = [1, 1]} : vector<8x128xf32> to vector<8x96xf32>
    %198 = arith.negf %197 : vector<8x96xf32>
    %199 = math.exp %198 : vector<8x96xf32>
    %cst_68 = arith.constant 1.000000e+00 : f32
    %200 = vector.broadcast %cst_68 : f32 to vector<8x96xf32>
    %201 = arith.addf %200, %199 : vector<8x96xf32>
    %202 = arith.divf %200, %201 : vector<8x96xf32>
    %203 = vector.extract_strided_slice %191 {offsets = [0, 96], sizes = [8, 32], strides = [1, 1]} : vector<8x128xf32> to vector<8x32xf32>
    %204 = math.tanh %203 : vector<8x32xf32>
    %205 = vector.extract_strided_slice %202 {offsets = [0, 0], sizes = [8, 32], strides = [1, 1]} : vector<8x96xf32> to vector<8x32xf32>
    %206 = vector.extract_strided_slice %202 {offsets = [0, 32], sizes = [8, 32], strides = [1, 1]} : vector<8x96xf32> to vector<8x32xf32>
    %207 = vector.extract_strided_slice %202 {offsets = [0, 64], sizes = [8, 32], strides = [1, 1]} : vector<8x96xf32> to vector<8x32xf32>
    %208 = arith.mulf %206, %157 : vector<8x32xf32>
    %209 = arith.mulf %205, %204 : vector<8x32xf32>
    %210 = arith.addf %208, %209 : vector<8x32xf32>
    %211 = math.tanh %210 : vector<8x32xf32>
    %212 = arith.mulf %207, %211 : vector<8x32xf32>
    %213 = vector.extract_strided_slice %196 {offsets = [0, 0], sizes = [8, 96], strides = [1, 1]} : vector<8x128xf32> to vector<8x96xf32>
    %214 = arith.negf %213 : vector<8x96xf32>
    %215 = math.exp %214 : vector<8x96xf32>
    %cst_69 = arith.constant 1.000000e+00 : f32
    %216 = vector.broadcast %cst_69 : f32 to vector<8x96xf32>
    %217 = arith.addf %216, %215 : vector<8x96xf32>
    %218 = arith.divf %216, %217 : vector<8x96xf32>
    %219 = vector.extract_strided_slice %196 {offsets = [0, 96], sizes = [8, 32], strides = [1, 1]} : vector<8x128xf32> to vector<8x32xf32>
    %220 = math.tanh %219 : vector<8x32xf32>
    %221 = vector.extract_strided_slice %218 {offsets = [0, 0], sizes = [8, 32], strides = [1, 1]} : vector<8x96xf32> to vector<8x32xf32>
    %222 = vector.extract_strided_slice %218 {offsets = [0, 32], sizes = [8, 32], strides = [1, 1]} : vector<8x96xf32> to vector<8x32xf32>
    %223 = vector.extract_strided_slice %218 {offsets = [0, 64], sizes = [8, 32], strides = [1, 1]} : vector<8x96xf32> to vector<8x32xf32>
    %224 = arith.mulf %222, %173 : vector<8x32xf32>
    %225 = arith.mulf %221, %220 : vector<8x32xf32>
    %226 = arith.addf %224, %225 : vector<8x32xf32>
    %227 = math.tanh %226 : vector<8x32xf32>
    %228 = arith.mulf %223, %227 : vector<8x32xf32>
    %229 = arith.truncf %212 : vector<8x32xf32> to vector<8x32xbf16>
    %230 = arith.index_cast %183 : i32 to index
    %c0_70 = arith.constant 0 : index
    %231 = vector.load %arg9[%230, %c0_70] : memref<64x32xbf16, #tpu.memory_space<vmem>>, vector<8x32xbf16>
    tpu.vector_store %arg9[%230, %c0_70], %229 {strides = array<i32>} : memref<64x32xbf16, #tpu.memory_space<vmem>>, vector<8x32xbf16>,
    %232 = arith.truncf %228 : vector<8x32xf32> to vector<8x32xbf16>
    %233 = arith.index_cast %186 : i32 to index
    %c0_71 = arith.constant 0 : index
    %234 = vector.load %arg10[%233, %c0_71] : memref<64x32xbf16, #tpu.memory_space<vmem>>, vector<8x32xbf16>
    tpu.vector_store %arg10[%233, %c0_71], %232 {strides = array<i32>} : memref<64x32xbf16, #tpu.memory_space<vmem>>, vector<8x32xbf16>,
    %c4_i32 = arith.constant 4 : i32
    %c8_i32_72 = arith.constant 8 : i32
    %235 = arith.muli %c4_i32, %c8_i32_72 : i32
    %236 = tpu.assume_multiple %235, 8 : i32
    %c7_i32_73 = arith.constant 7 : i32
    %237 = arith.subi %c7_i32_73, %c4_i32 : i32
    %c8_i32_74 = arith.constant 8 : i32
    %238 = arith.muli %237, %c8_i32_74 : i32
    %239 = tpu.assume_multiple %238, 8 : i32
    %240 = arith.index_cast %236 : i32 to index
    %c0_75 = arith.constant 0 : index
    %241 = vector.load %arg15[%240, %c0_75] : memref<64x128xf32, #tpu.memory_space<vmem>>, vector<8x128xf32>
    %242 = arith.truncf %212 : vector<8x32xf32> to vector<8x32xbf16>
    %cst_76 = arith.constant dense<0.000000e+00> : vector<8x128xf32>
    %243 = tpu.matmul %242, %17, %cst_76 {dimension_numbers = #tpu.dot_dimension_numbers<[1], [0], [0], [1], [0, 0, 1, 1], [], []>} : vector<8x32xbf16>, vector<32x128xbf16>, vector<8x128xf32> -> vector<8x128xf32>
    %244 = arith.addf %241, %243 : vector<8x128xf32>
    %245 = arith.index_cast %239 : i32 to index
    %c0_77 = arith.constant 0 : index
    %246 = vector.load %arg16[%245, %c0_77] : memref<64x128xf32, #tpu.memory_space<vmem>>, vector<8x128xf32>
    %247 = arith.truncf %228 : vector<8x32xf32> to vector<8x32xbf16>
    %cst_78 = arith.constant dense<0.000000e+00> : vector<8x128xf32>
    %248 = tpu.matmul %247, %18, %cst_78 {dimension_numbers = #tpu.dot_dimension_numbers<[1], [0], [0], [1], [0, 0, 1, 1], [], []>} : vector<8x32xbf16>, vector<32x128xbf16>, vector<8x128xf32> -> vector<8x128xf32>
    %249 = arith.addf %246, %248 : vector<8x128xf32>
    %250 = vector.extract_strided_slice %244 {offsets = [0, 0], sizes = [8, 96], strides = [1, 1]} : vector<8x128xf32> to vector<8x96xf32>
    %251 = arith.negf %250 : vector<8x96xf32>
    %252 = math.exp %251 : vector<8x96xf32>
    %cst_79 = arith.constant 1.000000e+00 : f32
    %253 = vector.broadcast %cst_79 : f32 to vector<8x96xf32>
    %254 = arith.addf %253, %252 : vector<8x96xf32>
    %255 = arith.divf %253, %254 : vector<8x96xf32>
    %256 = vector.extract_strided_slice %244 {offsets = [0, 96], sizes = [8, 32], strides = [1, 1]} : vector<8x128xf32> to vector<8x32xf32>
    %257 = math.tanh %256 : vector<8x32xf32>
    %258 = vector.extract_strided_slice %255 {offsets = [0, 0], sizes = [8, 32], strides = [1, 1]} : vector<8x96xf32> to vector<8x32xf32>
    %259 = vector.extract_strided_slice %255 {offsets = [0, 32], sizes = [8, 32], strides = [1, 1]} : vector<8x96xf32> to vector<8x32xf32>
    %260 = vector.extract_strided_slice %255 {offsets = [0, 64], sizes = [8, 32], strides = [1, 1]} : vector<8x96xf32> to vector<8x32xf32>
    %261 = arith.mulf %259, %210 : vector<8x32xf32>
    %262 = arith.mulf %258, %257 : vector<8x32xf32>
    %263 = arith.addf %261, %262 : vector<8x32xf32>
    %264 = math.tanh %263 : vector<8x32xf32>
    %265 = arith.mulf %260, %264 : vector<8x32xf32>
    %266 = vector.extract_strided_slice %249 {offsets = [0, 0], sizes = [8, 96], strides = [1, 1]} : vector<8x128xf32> to vector<8x96xf32>
    %267 = arith.negf %266 : vector<8x96xf32>
    %268 = math.exp %267 : vector<8x96xf32>
    %cst_80 = arith.constant 1.000000e+00 : f32
    %269 = vector.broadcast %cst_80 : f32 to vector<8x96xf32>
    %270 = arith.addf %269, %268 : vector<8x96xf32>
    %271 = arith.divf %269, %270 : vector<8x96xf32>
    %272 = vector.extract_strided_slice %249 {offsets = [0, 96], sizes = [8, 32], strides = [1, 1]} : vector<8x128xf32> to vector<8x32xf32>
    %273 = math.tanh %272 : vector<8x32xf32>
    %274 = vector.extract_strided_slice %271 {offsets = [0, 0], sizes = [8, 32], strides = [1, 1]} : vector<8x96xf32> to vector<8x32xf32>
    %275 = vector.extract_strided_slice %271 {offsets = [0, 32], sizes = [8, 32], strides = [1, 1]} : vector<8x96xf32> to vector<8x32xf32>
    %276 = vector.extract_strided_slice %271 {offsets = [0, 64], sizes = [8, 32], strides = [1, 1]} : vector<8x96xf32> to vector<8x32xf32>
    %277 = arith.mulf %275, %226 : vector<8x32xf32>
    %278 = arith.mulf %274, %273 : vector<8x32xf32>
    %279 = arith.addf %277, %278 : vector<8x32xf32>
    %280 = math.tanh %279 : vector<8x32xf32>
    %281 = arith.mulf %276, %280 : vector<8x32xf32>
    %282 = arith.truncf %265 : vector<8x32xf32> to vector<8x32xbf16>
    %283 = arith.index_cast %236 : i32 to index
    %c0_81 = arith.constant 0 : index
    %284 = vector.load %arg9[%283, %c0_81] : memref<64x32xbf16, #tpu.memory_space<vmem>>, vector<8x32xbf16>
    tpu.vector_store %arg9[%283, %c0_81], %282 {strides = array<i32>} : memref<64x32xbf16, #tpu.memory_space<vmem>>, vector<8x32xbf16>,
    %285 = arith.truncf %281 : vector<8x32xf32> to vector<8x32xbf16>
    %286 = arith.index_cast %239 : i32 to index
    %c0_82 = arith.constant 0 : index
    %287 = vector.load %arg10[%286, %c0_82] : memref<64x32xbf16, #tpu.memory_space<vmem>>, vector<8x32xbf16>
    tpu.vector_store %arg10[%286, %c0_82], %285 {strides = array<i32>} : memref<64x32xbf16, #tpu.memory_space<vmem>>, vector<8x32xbf16>,
    %c5_i32 = arith.constant 5 : i32
    %c8_i32_83 = arith.constant 8 : i32
    %288 = arith.muli %c5_i32, %c8_i32_83 : i32
    %289 = tpu.assume_multiple %288, 8 : i32
    %c7_i32_84 = arith.constant 7 : i32
    %290 = arith.subi %c7_i32_84, %c5_i32 : i32
    %c8_i32_85 = arith.constant 8 : i32
    %291 = arith.muli %290, %c8_i32_85 : i32
    %292 = tpu.assume_multiple %291, 8 : i32
    %293 = arith.index_cast %289 : i32 to index
    %c0_86 = arith.constant 0 : index
    %294 = vector.load %arg15[%293, %c0_86] : memref<64x128xf32, #tpu.memory_space<vmem>>, vector<8x128xf32>
    %295 = arith.truncf %265 : vector<8x32xf32> to vector<8x32xbf16>
    %cst_87 = arith.constant dense<0.000000e+00> : vector<8x128xf32>
    %296 = tpu.matmul %295, %17, %cst_87 {dimension_numbers = #tpu.dot_dimension_numbers<[1], [0], [0], [1], [0, 0, 1, 1], [], []>} : vector<8x32xbf16>, vector<32x128xbf16>, vector<8x128xf32> -> vector<8x128xf32>
    %297 = arith.addf %294, %296 : vector<8x128xf32>
    %298 = arith.index_cast %292 : i32 to index
    %c0_88 = arith.constant 0 : index
    %299 = vector.load %arg16[%298, %c0_88] : memref<64x128xf32, #tpu.memory_space<vmem>>, vector<8x128xf32>
    %300 = arith.truncf %281 : vector<8x32xf32> to vector<8x32xbf16>
    %cst_89 = arith.constant dense<0.000000e+00> : vector<8x128xf32>
    %301 = tpu.matmul %300, %18, %cst_89 {dimension_numbers = #tpu.dot_dimension_numbers<[1], [0], [0], [1], [0, 0, 1, 1], [], []>} : vector<8x32xbf16>, vector<32x128xbf16>, vector<8x128xf32> -> vector<8x128xf32>
    %302 = arith.addf %299, %301 : vector<8x128xf32>
    %303 = vector.extract_strided_slice %297 {offsets = [0, 0], sizes = [8, 96], strides = [1, 1]} : vector<8x128xf32> to vector<8x96xf32>
    %304 = arith.negf %303 : vector<8x96xf32>
    %305 = math.exp %304 : vector<8x96xf32>
    %cst_90 = arith.constant 1.000000e+00 : f32
    %306 = vector.broadcast %cst_90 : f32 to vector<8x96xf32>
    %307 = arith.addf %306, %305 : vector<8x96xf32>
    %308 = arith.divf %306, %307 : vector<8x96xf32>
    %309 = vector.extract_strided_slice %297 {offsets = [0, 96], sizes = [8, 32], strides = [1, 1]} : vector<8x128xf32> to vector<8x32xf32>
    %310 = math.tanh %309 : vector<8x32xf32>
    %311 = vector.extract_strided_slice %308 {offsets = [0, 0], sizes = [8, 32], strides = [1, 1]} : vector<8x96xf32> to vector<8x32xf32>
    %312 = vector.extract_strided_slice %308 {offsets = [0, 32], sizes = [8, 32], strides = [1, 1]} : vector<8x96xf32> to vector<8x32xf32>
    %313 = vector.extract_strided_slice %308 {offsets = [0, 64], sizes = [8, 32], strides = [1, 1]} : vector<8x96xf32> to vector<8x32xf32>
    %314 = arith.mulf %312, %263 : vector<8x32xf32>
    %315 = arith.mulf %311, %310 : vector<8x32xf32>
    %316 = arith.addf %314, %315 : vector<8x32xf32>
    %317 = math.tanh %316 : vector<8x32xf32>
    %318 = arith.mulf %313, %317 : vector<8x32xf32>
    %319 = vector.extract_strided_slice %302 {offsets = [0, 0], sizes = [8, 96], strides = [1, 1]} : vector<8x128xf32> to vector<8x96xf32>
    %320 = arith.negf %319 : vector<8x96xf32>
    %321 = math.exp %320 : vector<8x96xf32>
    %cst_91 = arith.constant 1.000000e+00 : f32
    %322 = vector.broadcast %cst_91 : f32 to vector<8x96xf32>
    %323 = arith.addf %322, %321 : vector<8x96xf32>
    %324 = arith.divf %322, %323 : vector<8x96xf32>
    %325 = vector.extract_strided_slice %302 {offsets = [0, 96], sizes = [8, 32], strides = [1, 1]} : vector<8x128xf32> to vector<8x32xf32>
    %326 = math.tanh %325 : vector<8x32xf32>
    %327 = vector.extract_strided_slice %324 {offsets = [0, 0], sizes = [8, 32], strides = [1, 1]} : vector<8x96xf32> to vector<8x32xf32>
    %328 = vector.extract_strided_slice %324 {offsets = [0, 32], sizes = [8, 32], strides = [1, 1]} : vector<8x96xf32> to vector<8x32xf32>
    %329 = vector.extract_strided_slice %324 {offsets = [0, 64], sizes = [8, 32], strides = [1, 1]} : vector<8x96xf32> to vector<8x32xf32>
    %330 = arith.mulf %328, %279 : vector<8x32xf32>
    %331 = arith.mulf %327, %326 : vector<8x32xf32>
    %332 = arith.addf %330, %331 : vector<8x32xf32>
    %333 = math.tanh %332 : vector<8x32xf32>
    %334 = arith.mulf %329, %333 : vector<8x32xf32>
    %335 = arith.truncf %318 : vector<8x32xf32> to vector<8x32xbf16>
    %336 = arith.index_cast %289 : i32 to index
    %c0_92 = arith.constant 0 : index
    %337 = vector.load %arg9[%336, %c0_92] : memref<64x32xbf16, #tpu.memory_space<vmem>>, vector<8x32xbf16>
    tpu.vector_store %arg9[%336, %c0_92], %335 {strides = array<i32>} : memref<64x32xbf16, #tpu.memory_space<vmem>>, vector<8x32xbf16>,
    %338 = arith.truncf %334 : vector<8x32xf32> to vector<8x32xbf16>
    %339 = arith.index_cast %292 : i32 to index
    %c0_93 = arith.constant 0 : index
    %340 = vector.load %arg10[%339, %c0_93] : memref<64x32xbf16, #tpu.memory_space<vmem>>, vector<8x32xbf16>
    tpu.vector_store %arg10[%339, %c0_93], %338 {strides = array<i32>} : memref<64x32xbf16, #tpu.memory_space<vmem>>, vector<8x32xbf16>,
    %c6_i32 = arith.constant 6 : i32
    %c8_i32_94 = arith.constant 8 : i32
    %341 = arith.muli %c6_i32, %c8_i32_94 : i32
    %342 = tpu.assume_multiple %341, 8 : i32
    %c7_i32_95 = arith.constant 7 : i32
    %343 = arith.subi %c7_i32_95, %c6_i32 : i32
    %c8_i32_96 = arith.constant 8 : i32
    %344 = arith.muli %343, %c8_i32_96 : i32
    %345 = tpu.assume_multiple %344, 8 : i32
    %346 = arith.index_cast %342 : i32 to index
    %c0_97 = arith.constant 0 : index
    %347 = vector.load %arg15[%346, %c0_97] : memref<64x128xf32, #tpu.memory_space<vmem>>, vector<8x128xf32>
    %348 = arith.truncf %318 : vector<8x32xf32> to vector<8x32xbf16>
    %cst_98 = arith.constant dense<0.000000e+00> : vector<8x128xf32>
    %349 = tpu.matmul %348, %17, %cst_98 {dimension_numbers = #tpu.dot_dimension_numbers<[1], [0], [0], [1], [0, 0, 1, 1], [], []>} : vector<8x32xbf16>, vector<32x128xbf16>, vector<8x128xf32> -> vector<8x128xf32>
    %350 = arith.addf %347, %349 : vector<8x128xf32>
    %351 = arith.index_cast %345 : i32 to index
    %c0_99 = arith.constant 0 : index
    %352 = vector.load %arg16[%351, %c0_99] : memref<64x128xf32, #tpu.memory_space<vmem>>, vector<8x128xf32>
    %353 = arith.truncf %334 : vector<8x32xf32> to vector<8x32xbf16>
    %cst_100 = arith.constant dense<0.000000e+00> : vector<8x128xf32>
    %354 = tpu.matmul %353, %18, %cst_100 {dimension_numbers = #tpu.dot_dimension_numbers<[1], [0], [0], [1], [0, 0, 1, 1], [], []>} : vector<8x32xbf16>, vector<32x128xbf16>, vector<8x128xf32> -> vector<8x128xf32>
    %355 = arith.addf %352, %354 : vector<8x128xf32>
    %356 = vector.extract_strided_slice %350 {offsets = [0, 0], sizes = [8, 96], strides = [1, 1]} : vector<8x128xf32> to vector<8x96xf32>
    %357 = arith.negf %356 : vector<8x96xf32>
    %358 = math.exp %357 : vector<8x96xf32>
    %cst_101 = arith.constant 1.000000e+00 : f32
    %359 = vector.broadcast %cst_101 : f32 to vector<8x96xf32>
    %360 = arith.addf %359, %358 : vector<8x96xf32>
    %361 = arith.divf %359, %360 : vector<8x96xf32>
    %362 = vector.extract_strided_slice %350 {offsets = [0, 96], sizes = [8, 32], strides = [1, 1]} : vector<8x128xf32> to vector<8x32xf32>
    %363 = math.tanh %362 : vector<8x32xf32>
    %364 = vector.extract_strided_slice %361 {offsets = [0, 0], sizes = [8, 32], strides = [1, 1]} : vector<8x96xf32> to vector<8x32xf32>
    %365 = vector.extract_strided_slice %361 {offsets = [0, 32], sizes = [8, 32], strides = [1, 1]} : vector<8x96xf32> to vector<8x32xf32>
    %366 = vector.extract_strided_slice %361 {offsets = [0, 64], sizes = [8, 32], strides = [1, 1]} : vector<8x96xf32> to vector<8x32xf32>
    %367 = arith.mulf %365, %316 : vector<8x32xf32>
    %368 = arith.mulf %364, %363 : vector<8x32xf32>
    %369 = arith.addf %367, %368 : vector<8x32xf32>
    %370 = math.tanh %369 : vector<8x32xf32>
    %371 = arith.mulf %366, %370 : vector<8x32xf32>
    %372 = vector.extract_strided_slice %355 {offsets = [0, 0], sizes = [8, 96], strides = [1, 1]} : vector<8x128xf32> to vector<8x96xf32>
    %373 = arith.negf %372 : vector<8x96xf32>
    %374 = math.exp %373 : vector<8x96xf32>
    %cst_102 = arith.constant 1.000000e+00 : f32
    %375 = vector.broadcast %cst_102 : f32 to vector<8x96xf32>
    %376 = arith.addf %375, %374 : vector<8x96xf32>
    %377 = arith.divf %375, %376 : vector<8x96xf32>
    %378 = vector.extract_strided_slice %355 {offsets = [0, 96], sizes = [8, 32], strides = [1, 1]} : vector<8x128xf32> to vector<8x32xf32>
    %379 = math.tanh %378 : vector<8x32xf32>
    %380 = vector.extract_strided_slice %377 {offsets = [0, 0], sizes = [8, 32], strides = [1, 1]} : vector<8x96xf32> to vector<8x32xf32>
    %381 = vector.extract_strided_slice %377 {offsets = [0, 32], sizes = [8, 32], strides = [1, 1]} : vector<8x96xf32> to vector<8x32xf32>
    %382 = vector.extract_strided_slice %377 {offsets = [0, 64], sizes = [8, 32], strides = [1, 1]} : vector<8x96xf32> to vector<8x32xf32>
    %383 = arith.mulf %381, %332 : vector<8x32xf32>
    %384 = arith.mulf %380, %379 : vector<8x32xf32>
    %385 = arith.addf %383, %384 : vector<8x32xf32>
    %386 = math.tanh %385 : vector<8x32xf32>
    %387 = arith.mulf %382, %386 : vector<8x32xf32>
    %388 = arith.truncf %371 : vector<8x32xf32> to vector<8x32xbf16>
    %389 = arith.index_cast %342 : i32 to index
    %c0_103 = arith.constant 0 : index
    %390 = vector.load %arg9[%389, %c0_103] : memref<64x32xbf16, #tpu.memory_space<vmem>>, vector<8x32xbf16>
    tpu.vector_store %arg9[%389, %c0_103], %388 {strides = array<i32>} : memref<64x32xbf16, #tpu.memory_space<vmem>>, vector<8x32xbf16>,
    %391 = arith.truncf %387 : vector<8x32xf32> to vector<8x32xbf16>
    %392 = arith.index_cast %345 : i32 to index
    %c0_104 = arith.constant 0 : index
    %393 = vector.load %arg10[%392, %c0_104] : memref<64x32xbf16, #tpu.memory_space<vmem>>, vector<8x32xbf16>
    tpu.vector_store %arg10[%392, %c0_104], %391 {strides = array<i32>} : memref<64x32xbf16, #tpu.memory_space<vmem>>, vector<8x32xbf16>,
    %c7_i32_105 = arith.constant 7 : i32
    %c8_i32_106 = arith.constant 8 : i32
    %394 = arith.muli %c7_i32_105, %c8_i32_106 : i32
    %395 = tpu.assume_multiple %394, 8 : i32
    %c7_i32_107 = arith.constant 7 : i32
    %396 = arith.subi %c7_i32_107, %c7_i32_105 : i32
    %c8_i32_108 = arith.constant 8 : i32
    %397 = arith.muli %396, %c8_i32_108 : i32
    %398 = tpu.assume_multiple %397, 8 : i32
    %399 = arith.index_cast %395 : i32 to index
    %c0_109 = arith.constant 0 : index
    %400 = vector.load %arg15[%399, %c0_109] : memref<64x128xf32, #tpu.memory_space<vmem>>, vector<8x128xf32>
    %401 = arith.truncf %371 : vector<8x32xf32> to vector<8x32xbf16>
    %cst_110 = arith.constant dense<0.000000e+00> : vector<8x128xf32>
    %402 = tpu.matmul %401, %17, %cst_110 {dimension_numbers = #tpu.dot_dimension_numbers<[1], [0], [0], [1], [0, 0, 1, 1], [], []>} : vector<8x32xbf16>, vector<32x128xbf16>, vector<8x128xf32> -> vector<8x128xf32>
    %403 = arith.addf %400, %402 : vector<8x128xf32>
    %404 = arith.index_cast %398 : i32 to index
    %c0_111 = arith.constant 0 : index
    %405 = vector.load %arg16[%404, %c0_111] : memref<64x128xf32, #tpu.memory_space<vmem>>, vector<8x128xf32>
    %406 = arith.truncf %387 : vector<8x32xf32> to vector<8x32xbf16>
    %cst_112 = arith.constant dense<0.000000e+00> : vector<8x128xf32>
    %407 = tpu.matmul %406, %18, %cst_112 {dimension_numbers = #tpu.dot_dimension_numbers<[1], [0], [0], [1], [0, 0, 1, 1], [], []>} : vector<8x32xbf16>, vector<32x128xbf16>, vector<8x128xf32> -> vector<8x128xf32>
    %408 = arith.addf %405, %407 : vector<8x128xf32>
    %409 = vector.extract_strided_slice %403 {offsets = [0, 0], sizes = [8, 96], strides = [1, 1]} : vector<8x128xf32> to vector<8x96xf32>
    %410 = arith.negf %409 : vector<8x96xf32>
    %411 = math.exp %410 : vector<8x96xf32>
    %cst_113 = arith.constant 1.000000e+00 : f32
    %412 = vector.broadcast %cst_113 : f32 to vector<8x96xf32>
    %413 = arith.addf %412, %411 : vector<8x96xf32>
    %414 = arith.divf %412, %413 : vector<8x96xf32>
    %415 = vector.extract_strided_slice %403 {offsets = [0, 96], sizes = [8, 32], strides = [1, 1]} : vector<8x128xf32> to vector<8x32xf32>
    %416 = math.tanh %415 : vector<8x32xf32>
    %417 = vector.extract_strided_slice %414 {offsets = [0, 0], sizes = [8, 32], strides = [1, 1]} : vector<8x96xf32> to vector<8x32xf32>
    %418 = vector.extract_strided_slice %414 {offsets = [0, 32], sizes = [8, 32], strides = [1, 1]} : vector<8x96xf32> to vector<8x32xf32>
    %419 = vector.extract_strided_slice %414 {offsets = [0, 64], sizes = [8, 32], strides = [1, 1]} : vector<8x96xf32> to vector<8x32xf32>
    %420 = arith.mulf %418, %369 : vector<8x32xf32>
    %421 = arith.mulf %417, %416 : vector<8x32xf32>
    %422 = arith.addf %420, %421 : vector<8x32xf32>
    %423 = math.tanh %422 : vector<8x32xf32>
    %424 = arith.mulf %419, %423 : vector<8x32xf32>
    %425 = vector.extract_strided_slice %408 {offsets = [0, 0], sizes = [8, 96], strides = [1, 1]} : vector<8x128xf32> to vector<8x96xf32>
    %426 = arith.negf %425 : vector<8x96xf32>
    %427 = math.exp %426 : vector<8x96xf32>
    %cst_114 = arith.constant 1.000000e+00 : f32
    %428 = vector.broadcast %cst_114 : f32 to vector<8x96xf32>
    %429 = arith.addf %428, %427 : vector<8x96xf32>
    %430 = arith.divf %428, %429 : vector<8x96xf32>
    %431 = vector.extract_strided_slice %408 {offsets = [0, 96], sizes = [8, 32], strides = [1, 1]} : vector<8x128xf32> to vector<8x32xf32>
    %432 = math.tanh %431 : vector<8x32xf32>
    %433 = vector.extract_strided_slice %430 {offsets = [0, 0], sizes = [8, 32], strides = [1, 1]} : vector<8x96xf32> to vector<8x32xf32>
    %434 = vector.extract_strided_slice %430 {offsets = [0, 32], sizes = [8, 32], strides = [1, 1]} : vector<8x96xf32> to vector<8x32xf32>
    %435 = vector.extract_strided_slice %430 {offsets = [0, 64], sizes = [8, 32], strides = [1, 1]} : vector<8x96xf32> to vector<8x32xf32>
    %436 = arith.mulf %434, %385 : vector<8x32xf32>
    %437 = arith.mulf %433, %432 : vector<8x32xf32>
    %438 = arith.addf %436, %437 : vector<8x32xf32>
    %439 = math.tanh %438 : vector<8x32xf32>
    %440 = arith.mulf %435, %439 : vector<8x32xf32>
    %441 = arith.truncf %424 : vector<8x32xf32> to vector<8x32xbf16>
    %442 = arith.index_cast %395 : i32 to index
    %c0_115 = arith.constant 0 : index
    %443 = vector.load %arg9[%442, %c0_115] : memref<64x32xbf16, #tpu.memory_space<vmem>>, vector<8x32xbf16>
    tpu.vector_store %arg9[%442, %c0_115], %441 {strides = array<i32>} : memref<64x32xbf16, #tpu.memory_space<vmem>>, vector<8x32xbf16>,
    %444 = arith.truncf %440 : vector<8x32xf32> to vector<8x32xbf16>
    %445 = arith.index_cast %398 : i32 to index
    %c0_116 = arith.constant 0 : index
    %446 = vector.load %arg10[%445, %c0_116] : memref<64x32xbf16, #tpu.memory_space<vmem>>, vector<8x32xbf16>
    tpu.vector_store %arg10[%445, %c0_116], %444 {strides = array<i32>} : memref<64x32xbf16, #tpu.memory_space<vmem>>, vector<8x32xbf16>,
    %c8_i32_117 = arith.constant 8 : i32
    %c0_118 = arith.constant 0 : index
    %c0_119 = arith.constant 0 : index
    %447 = vector.load %arg11[%c0_118, %c0_119] : memref<8x32xf32, #tpu.memory_space<vmem>>, vector<8x32xf32>
    tpu.vector_store %arg11[%c0_118, %c0_119], %424 {strides = array<i32>} : memref<8x32xf32, #tpu.memory_space<vmem>>, vector<8x32xf32>,
    %c0_120 = arith.constant 0 : index
    %c0_121 = arith.constant 0 : index
    %448 = vector.load %arg12[%c0_120, %c0_121] : memref<8x32xf32, #tpu.memory_space<vmem>>, vector<8x32xf32>
    tpu.vector_store %arg12[%c0_120, %c0_121], %422 {strides = array<i32>} : memref<8x32xf32, #tpu.memory_space<vmem>>, vector<8x32xf32>,
    %c0_122 = arith.constant 0 : index
    %c0_123 = arith.constant 0 : index
    %449 = vector.load %arg13[%c0_122, %c0_123] : memref<8x32xf32, #tpu.memory_space<vmem>>, vector<8x32xf32>
    tpu.vector_store %arg13[%c0_122, %c0_123], %440 {strides = array<i32>} : memref<8x32xf32, #tpu.memory_space<vmem>>, vector<8x32xf32>,
    %c0_124 = arith.constant 0 : index
    %c0_125 = arith.constant 0 : index
    %450 = vector.load %arg14[%c0_124, %c0_125] : memref<8x32xf32, #tpu.memory_space<vmem>>, vector<8x32xf32>
    tpu.vector_store %arg14[%c0_124, %c0_125], %438 {strides = array<i32>} : memref<8x32xf32, #tpu.memory_space<vmem>>, vector<8x32xf32>,
    return
  }
  func.func @transform_0(%arg0: i32) -> (i32, i32) {
    %c0_i32 = arith.constant 0 : i32
    %c0_i32_0 = arith.constant 0 : i32
    return %arg0, %c0_i32 : i32, i32
  }
  func.func @transform_1(%arg0: i32) -> (i32, i32) {
    %c0_i32 = arith.constant 0 : i32
    %0 = arith.subi %c0_i32, %arg0 : i32
    %c0_i32_0 = arith.constant 0 : i32
    %c0_i32_1 = arith.constant 0 : i32
    return %0, %c0_i32_0 : i32, i32
  }
  func.func @transform_2(%arg0: i32) -> (i32, i32) {
    %c0_i32 = arith.constant 0 : i32
    %c0_i32_0 = arith.constant 0 : i32
    %c0_i32_1 = arith.constant 0 : i32
    return %c0_i32, %c0_i32_0 : i32, i32
  }
  func.func @transform_3(%arg0: i32) -> (i32, i32) {
    %c0_i32 = arith.constant 0 : i32
    %c0_i32_0 = arith.constant 0 : i32
    %c0_i32_1 = arith.constant 0 : i32
    return %c0_i32, %c0_i32_0 : i32, i32
  }
  func.func @transform_4(%arg0: i32) -> (i32, i32) {
    %c0_i32 = arith.constant 0 : i32
    %c0_i32_0 = arith.constant 0 : i32
    %c0_i32_1 = arith.constant 0 : i32
    return %c0_i32, %c0_i32_0 : i32, i32
  }
  func.func @transform_5(%arg0: i32) -> (i32, i32) {
    %c0_i32 = arith.constant 0 : i32
    %c0_i32_0 = arith.constant 0 : i32
    %c0_i32_1 = arith.constant 0 : i32
    return %c0_i32, %c0_i32_0 : i32, i32
  }
  func.func @transform_6(%arg0: i32) -> (i32, i32) {
    %c0_i32 = arith.constant 0 : i32
    %c0_i32_0 = arith.constant 0 : i32
    %c0_i32_1 = arith.constant 0 : i32
    return %c0_i32, %c0_i32_0 : i32, i32
  }
  func.func @transform_7(%arg0: i32) -> (i32, i32) {
    %c0_i32 = arith.constant 0 : i32
    %c0_i32_0 = arith.constant 0 : i32
    %c0_i32_1 = arith.constant 0 : i32
    return %c0_i32, %c0_i32_0 : i32, i32
  }
  func.func @transform_8(%arg0: i32) -> (i32, i32) {
    %c0_i32 = arith.constant 0 : i32
    %c0_i32_0 = arith.constant 0 : i32
    return %arg0, %c0_i32 : i32, i32
  }
  func.func @transform_9(%arg0: i32) -> (i32, i32) {
    %c0_i32 = arith.constant 0 : i32
    %0 = arith.subi %c0_i32, %arg0 : i32
    %c0_i32_0 = arith.constant 0 : i32
    %c0_i32_1 = arith.constant 0 : i32
    return %0, %c0_i32_0 : i32, i32
  }
}

module attributes {stable_mosaic.version = 11 : i64} {
  func.func @_head_kernel(%arg0: i32, %arg1: memref<64x32xbf16, #tpu.memory_space<vmem>>, %arg2: memref<64x32xbf16, #tpu.memory_space<vmem>>, %arg3: memref<32x128xbf16, #tpu.memory_space<vmem>>, %arg4: memref<32x128xbf16, #tpu.memory_space<vmem>>, %arg5: memref<1x128xf32, #tpu.memory_space<vmem>>, %arg6: memref<64x128xf32, #tpu.memory_space<vmem>>) attributes {dimension_semantics = [#tpu.dimension_semantics<parallel>], iteration_bounds = array<i64: 1>, scalar_prefetch = 0 : i64, scratch_operands = 0 : i64, tpu.core_type = #tpu.core_type<tc>, window_params = [{transform_indices = @transform_0, window_bounds = array<i64: 64, 32>}, {transform_indices = @transform_1, window_bounds = array<i64: 64, 32>}, {pipeline_mode = #tpu.pipeline_mode<synchronous>, transform_indices = @transform_2, window_bounds = array<i64: 32, 128>}, {pipeline_mode = #tpu.pipeline_mode<synchronous>, transform_indices = @transform_3, window_bounds = array<i64: 32, 128>}, {pipeline_mode = #tpu.pipeline_mode<synchronous>, transform_indices = @transform_4, window_bounds = array<i64: 1, 128>}, {transform_indices = @transform_5, window_bounds = array<i64: 64, 128>}]} {
    %c0 = arith.constant 0 : index
    %c0_0 = arith.constant 0 : index
    %0 = vector.load %arg1[%c0, %c0_0] : memref<64x32xbf16, #tpu.memory_space<vmem>>, vector<64x32xbf16>
    %c0_1 = arith.constant 0 : index
    %c0_2 = arith.constant 0 : index
    %1 = vector.load %arg3[%c0_1, %c0_2] : memref<32x128xbf16, #tpu.memory_space<vmem>>, vector<32x128xbf16>
    %cst = arith.constant dense<0.000000e+00> : vector<64x128xf32>
    %2 = tpu.matmul %0, %1, %cst {dimension_numbers = #tpu.dot_dimension_numbers<[1], [0], [0], [1], [0, 0, 1, 1], [], []>} : vector<64x32xbf16>, vector<32x128xbf16>, vector<64x128xf32> -> vector<64x128xf32>
    %c0_3 = arith.constant 0 : index
    %c0_4 = arith.constant 0 : index
    %3 = vector.load %arg2[%c0_3, %c0_4] : memref<64x32xbf16, #tpu.memory_space<vmem>>, vector<64x32xbf16>
    %c0_5 = arith.constant 0 : index
    %c0_6 = arith.constant 0 : index
    %4 = vector.load %arg4[%c0_5, %c0_6] : memref<32x128xbf16, #tpu.memory_space<vmem>>, vector<32x128xbf16>
    %cst_7 = arith.constant dense<0.000000e+00> : vector<64x128xf32>
    %5 = tpu.matmul %3, %4, %cst_7 {dimension_numbers = #tpu.dot_dimension_numbers<[1], [0], [0], [1], [0, 0, 1, 1], [], []>} : vector<64x32xbf16>, vector<32x128xbf16>, vector<64x128xf32> -> vector<64x128xf32>
    %6 = arith.addf %2, %5 : vector<64x128xf32>
    %c0_8 = arith.constant 0 : index
    %c0_9 = arith.constant 0 : index
    %7 = vector.load %arg5[%c0_8, %c0_9] : memref<1x128xf32, #tpu.memory_space<vmem>>, vector<1x128xf32>
    %8 = vector.broadcast %7 : vector<1x128xf32> to vector<64x128xf32>
    %9 = arith.addf %6, %8 : vector<64x128xf32>
    %c0_10 = arith.constant 0 : index
    %c0_11 = arith.constant 0 : index
    %10 = vector.load %arg6[%c0_10, %c0_11] : memref<64x128xf32, #tpu.memory_space<vmem>>, vector<64x128xf32>
    tpu.vector_store %arg6[%c0_10, %c0_11], %9 {strides = array<i32>} : memref<64x128xf32, #tpu.memory_space<vmem>>, vector<64x128xf32>,
    return
  }
  func.func @transform_0(%arg0: i32) -> (i32, i32) {
    %c0_i32 = arith.constant 0 : i32
    %c0_i32_0 = arith.constant 0 : i32
    return %arg0, %c0_i32 : i32, i32
  }
  func.func @transform_1(%arg0: i32) -> (i32, i32) {
    %c0_i32 = arith.constant 0 : i32
    %c0_i32_0 = arith.constant 0 : i32
    return %arg0, %c0_i32 : i32, i32
  }
  func.func @transform_2(%arg0: i32) -> (i32, i32) {
    %c0_i32 = arith.constant 0 : i32
    %c0_i32_0 = arith.constant 0 : i32
    %c0_i32_1 = arith.constant 0 : i32
    return %c0_i32, %c0_i32_0 : i32, i32
  }
  func.func @transform_3(%arg0: i32) -> (i32, i32) {
    %c0_i32 = arith.constant 0 : i32
    %c0_i32_0 = arith.constant 0 : i32
    %c0_i32_1 = arith.constant 0 : i32
    return %c0_i32, %c0_i32_0 : i32, i32
  }
  func.func @transform_4(%arg0: i32) -> (i32, i32) {
    %c0_i32 = arith.constant 0 : i32
    %c0_i32_0 = arith.constant 0 : i32
    %c0_i32_1 = arith.constant 0 : i32
    return %c0_i32, %c0_i32_0 : i32, i32
  }
  func.func @transform_5(%arg0: i32) -> (i32, i32) {
    %c0_i32 = arith.constant 0 : i32
    %c0_i32_0 = arith.constant 0 : i32
    return %arg0, %c0_i32 : i32, i32
  }
}

module attributes {stable_mosaic.version = 11 : i64} {
  func.func @kernel(%arg0: i32, %arg1: memref<64x32xbf16, #tpu.memory_space<vmem>>, %arg2: memref<64x32xbf16, #tpu.memory_space<vmem>>, %arg3: memref<64x32xbf16, #tpu.memory_space<vmem>>, %arg4: memref<64x32xbf16, #tpu.memory_space<vmem>>, %arg5: memref<32x128xbf16, #tpu.memory_space<vmem>>, %arg6: memref<32x128xbf16, #tpu.memory_space<vmem>>, %arg7: memref<32x128xbf16, #tpu.memory_space<vmem>>, %arg8: memref<32x128xbf16, #tpu.memory_space<vmem>>, %arg9: memref<1x128xf32, #tpu.memory_space<vmem>>, %arg10: memref<1x128xf32, #tpu.memory_space<vmem>>, %arg11: memref<32x128xbf16, #tpu.memory_space<vmem>>, %arg12: memref<32x128xbf16, #tpu.memory_space<vmem>>, %arg13: memref<64x32xbf16, #tpu.memory_space<vmem>>, %arg14: memref<64x32xbf16, #tpu.memory_space<vmem>>, %arg15: memref<8x32xf32, #tpu.memory_space<vmem>>, %arg16: memref<8x32xf32, #tpu.memory_space<vmem>>, %arg17: memref<8x32xf32, #tpu.memory_space<vmem>>, %arg18: memref<8x32xf32, #tpu.memory_space<vmem>>, %arg19: memref<64x128xf32, #tpu.memory_space<vmem>>, %arg20: memref<64x128xf32, #tpu.memory_space<vmem>>) attributes {dimension_semantics = [#tpu.dimension_semantics<arbitrary>], iteration_bounds = array<i64: 1>, scalar_prefetch = 0 : i64, scratch_operands = 6 : i64, tpu.core_type = #tpu.core_type<tc>, window_params = [{transform_indices = @transform_0, window_bounds = array<i64: 64, 32>}, {transform_indices = @transform_1, window_bounds = array<i64: 64, 32>}, {transform_indices = @transform_2, window_bounds = array<i64: 64, 32>}, {transform_indices = @transform_3, window_bounds = array<i64: 64, 32>}, {pipeline_mode = #tpu.pipeline_mode<synchronous>, transform_indices = @transform_4, window_bounds = array<i64: 32, 128>}, {pipeline_mode = #tpu.pipeline_mode<synchronous>, transform_indices = @transform_5, window_bounds = array<i64: 32, 128>}, {pipeline_mode = #tpu.pipeline_mode<synchronous>, transform_indices = @transform_6, window_bounds = array<i64: 32, 128>}, {pipeline_mode = #tpu.pipeline_mode<synchronous>, transform_indices = @transform_7, window_bounds = array<i64: 32, 128>}, {pipeline_mode = #tpu.pipeline_mode<synchronous>, transform_indices = @transform_8, window_bounds = array<i64: 1, 128>}, {pipeline_mode = #tpu.pipeline_mode<synchronous>, transform_indices = @transform_9, window_bounds = array<i64: 1, 128>}, {pipeline_mode = #tpu.pipeline_mode<synchronous>, transform_indices = @transform_10, window_bounds = array<i64: 32, 128>}, {pipeline_mode = #tpu.pipeline_mode<synchronous>, transform_indices = @transform_11, window_bounds = array<i64: 32, 128>}, {transform_indices = @transform_12, window_bounds = array<i64: 64, 32>}, {transform_indices = @transform_13, window_bounds = array<i64: 64, 32>}]} {
    %c0_i32 = arith.constant 0 : i32
    %0 = arith.cmpi eq, %arg0, %c0_i32 : i32
    %1 = arith.extui %0 : i1 to i32
    %c0_i32_0 = arith.constant 0 : i32
    %2 = arith.cmpi ne, %1, %c0_i32_0 : i32
    scf.if %2 {
      %cst_136 = arith.constant 0.000000e+00 : f32
      %459 = vector.broadcast %cst_136 : f32 to vector<8x32xf32>
      %c0_137 = arith.constant 0 : index
      %c0_138 = arith.constant 0 : index
      %460 = vector.load %arg15[%c0_137, %c0_138] : memref<8x32xf32, #tpu.memory_space<vmem>>, vector<8x32xf32>
      tpu.vector_store %arg15[%c0_137, %c0_138], %459 {strides = array<i32>} : memref<8x32xf32, #tpu.memory_space<vmem>>, vector<8x32xf32>,
      %cst_139 = arith.constant 0.000000e+00 : f32
      %461 = vector.broadcast %cst_139 : f32 to vector<8x32xf32>
      %c0_140 = arith.constant 0 : index
      %c0_141 = arith.constant 0 : index
      %462 = vector.load %arg16[%c0_140, %c0_141] : memref<8x32xf32, #tpu.memory_space<vmem>>, vector<8x32xf32>
      tpu.vector_store %arg16[%c0_140, %c0_141], %461 {strides = array<i32>} : memref<8x32xf32, #tpu.memory_space<vmem>>, vector<8x32xf32>,
      %cst_142 = arith.constant 0.000000e+00 : f32
      %463 = vector.broadcast %cst_142 : f32 to vector<8x32xf32>
      %c0_143 = arith.constant 0 : index
      %c0_144 = arith.constant 0 : index
      %464 = vector.load %arg17[%c0_143, %c0_144] : memref<8x32xf32, #tpu.memory_space<vmem>>, vector<8x32xf32>
      tpu.vector_store %arg17[%c0_143, %c0_144], %463 {strides = array<i32>} : memref<8x32xf32, #tpu.memory_space<vmem>>, vector<8x32xf32>,
      %cst_145 = arith.constant 0.000000e+00 : f32
      %465 = vector.broadcast %cst_145 : f32 to vector<8x32xf32>
      %c0_146 = arith.constant 0 : index
      %c0_147 = arith.constant 0 : index
      %466 = vector.load %arg18[%c0_146, %c0_147] : memref<8x32xf32, #tpu.memory_space<vmem>>, vector<8x32xf32>
      tpu.vector_store %arg18[%c0_146, %c0_147], %465 {strides = array<i32>} : memref<8x32xf32, #tpu.memory_space<vmem>>, vector<8x32xf32>,
    } else {
    }
    %c0 = arith.constant 0 : index
    %c0_1 = arith.constant 0 : index
    %3 = vector.load %arg1[%c0, %c0_1] : memref<64x32xbf16, #tpu.memory_space<vmem>>, vector<64x32xbf16>
    %c0_2 = arith.constant 0 : index
    %c0_3 = arith.constant 0 : index
    %4 = vector.load %arg5[%c0_2, %c0_3] : memref<32x128xbf16, #tpu.memory_space<vmem>>, vector<32x128xbf16>
    %cst = arith.constant dense<0.000000e+00> : vector<64x128xf32>
    %5 = tpu.matmul %3, %4, %cst {dimension_numbers = #tpu.dot_dimension_numbers<[1], [0], [0], [1], [0, 0, 1, 1], [], []>} : vector<64x32xbf16>, vector<32x128xbf16>, vector<64x128xf32> -> vector<64x128xf32>
    %c0_4 = arith.constant 0 : index
    %c0_5 = arith.constant 0 : index
    %6 = vector.load %arg3[%c0_4, %c0_5] : memref<64x32xbf16, #tpu.memory_space<vmem>>, vector<64x32xbf16>
    %c0_6 = arith.constant 0 : index
    %c0_7 = arith.constant 0 : index
    %7 = vector.load %arg7[%c0_6, %c0_7] : memref<32x128xbf16, #tpu.memory_space<vmem>>, vector<32x128xbf16>
    %cst_8 = arith.constant dense<0.000000e+00> : vector<64x128xf32>
    %8 = tpu.matmul %6, %7, %cst_8 {dimension_numbers = #tpu.dot_dimension_numbers<[1], [0], [0], [1], [0, 0, 1, 1], [], []>} : vector<64x32xbf16>, vector<32x128xbf16>, vector<64x128xf32> -> vector<64x128xf32>
    %c0_9 = arith.constant 0 : index
    %c0_10 = arith.constant 0 : index
    %9 = vector.load %arg2[%c0_9, %c0_10] : memref<64x32xbf16, #tpu.memory_space<vmem>>, vector<64x32xbf16>
    %c0_11 = arith.constant 0 : index
    %c0_12 = arith.constant 0 : index
    %10 = vector.load %arg6[%c0_11, %c0_12] : memref<32x128xbf16, #tpu.memory_space<vmem>>, vector<32x128xbf16>
    %cst_13 = arith.constant dense<0.000000e+00> : vector<64x128xf32>
    %11 = tpu.matmul %9, %10, %cst_13 {dimension_numbers = #tpu.dot_dimension_numbers<[1], [0], [0], [1], [0, 0, 1, 1], [], []>} : vector<64x32xbf16>, vector<32x128xbf16>, vector<64x128xf32> -> vector<64x128xf32>
    %12 = arith.addf %5, %11 : vector<64x128xf32>
    %c0_14 = arith.constant 0 : index
    %c0_15 = arith.constant 0 : index
    %13 = vector.load %arg4[%c0_14, %c0_15] : memref<64x32xbf16, #tpu.memory_space<vmem>>, vector<64x32xbf16>
    %c0_16 = arith.constant 0 : index
    %c0_17 = arith.constant 0 : index
    %14 = vector.load %arg8[%c0_16, %c0_17] : memref<32x128xbf16, #tpu.memory_space<vmem>>, vector<32x128xbf16>
    %cst_18 = arith.constant dense<0.000000e+00> : vector<64x128xf32>
    %15 = tpu.matmul %13, %14, %cst_18 {dimension_numbers = #tpu.dot_dimension_numbers<[1], [0], [0], [1], [0, 0, 1, 1], [], []>} : vector<64x32xbf16>, vector<32x128xbf16>, vector<64x128xf32> -> vector<64x128xf32>
    %16 = arith.addf %8, %15 : vector<64x128xf32>
    %c0_19 = arith.constant 0 : index
    %c0_20 = arith.constant 0 : index
    %17 = vector.load %arg9[%c0_19, %c0_20] : memref<1x128xf32, #tpu.memory_space<vmem>>, vector<1x128xf32>
    %18 = vector.broadcast %17 : vector<1x128xf32> to vector<64x128xf32>
    %19 = arith.addf %12, %18 : vector<64x128xf32>
    %c0_21 = arith.constant 0 : index
    %c0_22 = arith.constant 0 : index
    %20 = vector.load %arg19[%c0_21, %c0_22] : memref<64x128xf32, #tpu.memory_space<vmem>>, vector<64x128xf32>
    tpu.vector_store %arg19[%c0_21, %c0_22], %19 {strides = array<i32>} : memref<64x128xf32, #tpu.memory_space<vmem>>, vector<64x128xf32>,
    %c0_23 = arith.constant 0 : index
    %c0_24 = arith.constant 0 : index
    %21 = vector.load %arg10[%c0_23, %c0_24] : memref<1x128xf32, #tpu.memory_space<vmem>>, vector<1x128xf32>
    %22 = vector.broadcast %21 : vector<1x128xf32> to vector<64x128xf32>
    %23 = arith.addf %16, %22 : vector<64x128xf32>
    %c0_25 = arith.constant 0 : index
    %c0_26 = arith.constant 0 : index
    %24 = vector.load %arg20[%c0_25, %c0_26] : memref<64x128xf32, #tpu.memory_space<vmem>>, vector<64x128xf32>
    tpu.vector_store %arg20[%c0_25, %c0_26], %23 {strides = array<i32>} : memref<64x128xf32, #tpu.memory_space<vmem>>, vector<64x128xf32>,
    %c0_27 = arith.constant 0 : index
    %c0_28 = arith.constant 0 : index
    %25 = vector.load %arg11[%c0_27, %c0_28] : memref<32x128xbf16, #tpu.memory_space<vmem>>, vector<32x128xbf16>
    %c0_29 = arith.constant 0 : index
    %c0_30 = arith.constant 0 : index
    %26 = vector.load %arg12[%c0_29, %c0_30] : memref<32x128xbf16, #tpu.memory_space<vmem>>, vector<32x128xbf16>
    %c0_31 = arith.constant 0 : index
    %c0_32 = arith.constant 0 : index
    %27 = vector.load %arg15[%c0_31, %c0_32] : memref<8x32xf32, #tpu.memory_space<vmem>>, vector<8x32xf32>
    %c0_33 = arith.constant 0 : index
    %c0_34 = arith.constant 0 : index
    %28 = vector.load %arg16[%c0_33, %c0_34] : memref<8x32xf32, #tpu.memory_space<vmem>>, vector<8x32xf32>
    %c0_35 = arith.constant 0 : index
    %c0_36 = arith.constant 0 : index
    %29 = vector.load %arg17[%c0_35, %c0_36] : memref<8x32xf32, #tpu.memory_space<vmem>>, vector<8x32xf32>
    %c0_37 = arith.constant 0 : index
    %c0_38 = arith.constant 0 : index
    %30 = vector.load %arg18[%c0_37, %c0_38] : memref<8x32xf32, #tpu.memory_space<vmem>>, vector<8x32xf32>
    %c0_i32_39 = arith.constant 0 : i32
    %c8_i32 = arith.constant 8 : i32
    %31 = arith.muli %c0_i32_39, %c8_i32 : i32
    %32 = tpu.assume_multiple %31, 8 : i32
    %c7_i32 = arith.constant 7 : i32
    %33 = arith.subi %c7_i32, %c0_i32_39 : i32
    %c8_i32_40 = arith.constant 8 : i32
    %34 = arith.muli %33, %c8_i32_40 : i32
    %35 = tpu.assume_multiple %34, 8 : i32
    %36 = arith.index_cast %32 : i32 to index
    %c0_41 = arith.constant 0 : index
    %37 = vector.load %arg19[%36, %c0_41] : memref<64x128xf32, #tpu.memory_space<vmem>>, vector<8x128xf32>
    %38 = arith.truncf %27 : vector<8x32xf32> to vector<8x32xbf16>
    %cst_42 = arith.constant dense<0.000000e+00> : vector<8x128xf32>
    %39 = tpu.matmul %38, %25, %cst_42 {dimension_numbers = #tpu.dot_dimension_numbers<[1], [0], [0], [1], [0, 0, 1, 1], [], []>} : vector<8x32xbf16>, vector<32x128xbf16>, vector<8x128xf32> -> vector<8x128xf32>
    %40 = arith.addf %37, %39 : vector<8x128xf32>
    %41 = arith.index_cast %35 : i32 to index
    %c0_43 = arith.constant 0 : index
    %42 = vector.load %arg20[%41, %c0_43] : memref<64x128xf32, #tpu.memory_space<vmem>>, vector<8x128xf32>
    %43 = arith.truncf %29 : vector<8x32xf32> to vector<8x32xbf16>
    %cst_44 = arith.constant dense<0.000000e+00> : vector<8x128xf32>
    %44 = tpu.matmul %43, %26, %cst_44 {dimension_numbers = #tpu.dot_dimension_numbers<[1], [0], [0], [1], [0, 0, 1, 1], [], []>} : vector<8x32xbf16>, vector<32x128xbf16>, vector<8x128xf32> -> vector<8x128xf32>
    %45 = arith.addf %42, %44 : vector<8x128xf32>
    %46 = vector.extract_strided_slice %40 {offsets = [0, 0], sizes = [8, 96], strides = [1, 1]} : vector<8x128xf32> to vector<8x96xf32>
    %47 = arith.negf %46 : vector<8x96xf32>
    %48 = math.exp %47 : vector<8x96xf32>
    %cst_45 = arith.constant 1.000000e+00 : f32
    %49 = vector.broadcast %cst_45 : f32 to vector<8x96xf32>
    %50 = arith.addf %49, %48 : vector<8x96xf32>
    %51 = arith.divf %49, %50 : vector<8x96xf32>
    %52 = vector.extract_strided_slice %40 {offsets = [0, 96], sizes = [8, 32], strides = [1, 1]} : vector<8x128xf32> to vector<8x32xf32>
    %53 = math.tanh %52 : vector<8x32xf32>
    %54 = vector.extract_strided_slice %51 {offsets = [0, 0], sizes = [8, 32], strides = [1, 1]} : vector<8x96xf32> to vector<8x32xf32>
    %55 = vector.extract_strided_slice %51 {offsets = [0, 32], sizes = [8, 32], strides = [1, 1]} : vector<8x96xf32> to vector<8x32xf32>
    %56 = vector.extract_strided_slice %51 {offsets = [0, 64], sizes = [8, 32], strides = [1, 1]} : vector<8x96xf32> to vector<8x32xf32>
    %57 = arith.mulf %55, %28 : vector<8x32xf32>
    %58 = arith.mulf %54, %53 : vector<8x32xf32>
    %59 = arith.addf %57, %58 : vector<8x32xf32>
    %60 = math.tanh %59 : vector<8x32xf32>
    %61 = arith.mulf %56, %60 : vector<8x32xf32>
    %62 = vector.extract_strided_slice %45 {offsets = [0, 0], sizes = [8, 96], strides = [1, 1]} : vector<8x128xf32> to vector<8x96xf32>
    %63 = arith.negf %62 : vector<8x96xf32>
    %64 = math.exp %63 : vector<8x96xf32>
    %cst_46 = arith.constant 1.000000e+00 : f32
    %65 = vector.broadcast %cst_46 : f32 to vector<8x96xf32>
    %66 = arith.addf %65, %64 : vector<8x96xf32>
    %67 = arith.divf %65, %66 : vector<8x96xf32>
    %68 = vector.extract_strided_slice %45 {offsets = [0, 96], sizes = [8, 32], strides = [1, 1]} : vector<8x128xf32> to vector<8x32xf32>
    %69 = math.tanh %68 : vector<8x32xf32>
    %70 = vector.extract_strided_slice %67 {offsets = [0, 0], sizes = [8, 32], strides = [1, 1]} : vector<8x96xf32> to vector<8x32xf32>
    %71 = vector.extract_strided_slice %67 {offsets = [0, 32], sizes = [8, 32], strides = [1, 1]} : vector<8x96xf32> to vector<8x32xf32>
    %72 = vector.extract_strided_slice %67 {offsets = [0, 64], sizes = [8, 32], strides = [1, 1]} : vector<8x96xf32> to vector<8x32xf32>
    %73 = arith.mulf %71, %30 : vector<8x32xf32>
    %74 = arith.mulf %70, %69 : vector<8x32xf32>
    %75 = arith.addf %73, %74 : vector<8x32xf32>
    %76 = math.tanh %75 : vector<8x32xf32>
    %77 = arith.mulf %72, %76 : vector<8x32xf32>
    %78 = arith.truncf %61 : vector<8x32xf32> to vector<8x32xbf16>
    %79 = arith.index_cast %32 : i32 to index
    %c0_47 = arith.constant 0 : index
    %80 = vector.load %arg13[%79, %c0_47] : memref<64x32xbf16, #tpu.memory_space<vmem>>, vector<8x32xbf16>
    tpu.vector_store %arg13[%79, %c0_47], %78 {strides = array<i32>} : memref<64x32xbf16, #tpu.memory_space<vmem>>, vector<8x32xbf16>,
    %81 = arith.truncf %77 : vector<8x32xf32> to vector<8x32xbf16>
    %82 = arith.index_cast %35 : i32 to index
    %c0_48 = arith.constant 0 : index
    %83 = vector.load %arg14[%82, %c0_48] : memref<64x32xbf16, #tpu.memory_space<vmem>>, vector<8x32xbf16>
    tpu.vector_store %arg14[%82, %c0_48], %81 {strides = array<i32>} : memref<64x32xbf16, #tpu.memory_space<vmem>>, vector<8x32xbf16>,
    %c1_i32 = arith.constant 1 : i32
    %c8_i32_49 = arith.constant 8 : i32
    %84 = arith.muli %c1_i32, %c8_i32_49 : i32
    %85 = tpu.assume_multiple %84, 8 : i32
    %c7_i32_50 = arith.constant 7 : i32
    %86 = arith.subi %c7_i32_50, %c1_i32 : i32
    %c8_i32_51 = arith.constant 8 : i32
    %87 = arith.muli %86, %c8_i32_51 : i32
    %88 = tpu.assume_multiple %87, 8 : i32
    %89 = arith.index_cast %85 : i32 to index
    %c0_52 = arith.constant 0 : index
    %90 = vector.load %arg19[%89, %c0_52] : memref<64x128xf32, #tpu.memory_space<vmem>>, vector<8x128xf32>
    %91 = arith.truncf %61 : vector<8x32xf32> to vector<8x32xbf16>
    %cst_53 = arith.constant dense<0.000000e+00> : vector<8x128xf32>
    %92 = tpu.matmul %91, %25, %cst_53 {dimension_numbers = #tpu.dot_dimension_numbers<[1], [0], [0], [1], [0, 0, 1, 1], [], []>} : vector<8x32xbf16>, vector<32x128xbf16>, vector<8x128xf32> -> vector<8x128xf32>
    %93 = arith.addf %90, %92 : vector<8x128xf32>
    %94 = arith.index_cast %88 : i32 to index
    %c0_54 = arith.constant 0 : index
    %95 = vector.load %arg20[%94, %c0_54] : memref<64x128xf32, #tpu.memory_space<vmem>>, vector<8x128xf32>
    %96 = arith.truncf %77 : vector<8x32xf32> to vector<8x32xbf16>
    %cst_55 = arith.constant dense<0.000000e+00> : vector<8x128xf32>
    %97 = tpu.matmul %96, %26, %cst_55 {dimension_numbers = #tpu.dot_dimension_numbers<[1], [0], [0], [1], [0, 0, 1, 1], [], []>} : vector<8x32xbf16>, vector<32x128xbf16>, vector<8x128xf32> -> vector<8x128xf32>
    %98 = arith.addf %95, %97 : vector<8x128xf32>
    %99 = vector.extract_strided_slice %93 {offsets = [0, 0], sizes = [8, 96], strides = [1, 1]} : vector<8x128xf32> to vector<8x96xf32>
    %100 = arith.negf %99 : vector<8x96xf32>
    %101 = math.exp %100 : vector<8x96xf32>
    %cst_56 = arith.constant 1.000000e+00 : f32
    %102 = vector.broadcast %cst_56 : f32 to vector<8x96xf32>
    %103 = arith.addf %102, %101 : vector<8x96xf32>
    %104 = arith.divf %102, %103 : vector<8x96xf32>
    %105 = vector.extract_strided_slice %93 {offsets = [0, 96], sizes = [8, 32], strides = [1, 1]} : vector<8x128xf32> to vector<8x32xf32>
    %106 = math.tanh %105 : vector<8x32xf32>
    %107 = vector.extract_strided_slice %104 {offsets = [0, 0], sizes = [8, 32], strides = [1, 1]} : vector<8x96xf32> to vector<8x32xf32>
    %108 = vector.extract_strided_slice %104 {offsets = [0, 32], sizes = [8, 32], strides = [1, 1]} : vector<8x96xf32> to vector<8x32xf32>
    %109 = vector.extract_strided_slice %104 {offsets = [0, 64], sizes = [8, 32], strides = [1, 1]} : vector<8x96xf32> to vector<8x32xf32>
    %110 = arith.mulf %108, %59 : vector<8x32xf32>
    %111 = arith.mulf %107, %106 : vector<8x32xf32>
    %112 = arith.addf %110, %111 : vector<8x32xf32>
    %113 = math.tanh %112 : vector<8x32xf32>
    %114 = arith.mulf %109, %113 : vector<8x32xf32>
    %115 = vector.extract_strided_slice %98 {offsets = [0, 0], sizes = [8, 96], strides = [1, 1]} : vector<8x128xf32> to vector<8x96xf32>
    %116 = arith.negf %115 : vector<8x96xf32>
    %117 = math.exp %116 : vector<8x96xf32>
    %cst_57 = arith.constant 1.000000e+00 : f32
    %118 = vector.broadcast %cst_57 : f32 to vector<8x96xf32>
    %119 = arith.addf %118, %117 : vector<8x96xf32>
    %120 = arith.divf %118, %119 : vector<8x96xf32>
    %121 = vector.extract_strided_slice %98 {offsets = [0, 96], sizes = [8, 32], strides = [1, 1]} : vector<8x128xf32> to vector<8x32xf32>
    %122 = math.tanh %121 : vector<8x32xf32>
    %123 = vector.extract_strided_slice %120 {offsets = [0, 0], sizes = [8, 32], strides = [1, 1]} : vector<8x96xf32> to vector<8x32xf32>
    %124 = vector.extract_strided_slice %120 {offsets = [0, 32], sizes = [8, 32], strides = [1, 1]} : vector<8x96xf32> to vector<8x32xf32>
    %125 = vector.extract_strided_slice %120 {offsets = [0, 64], sizes = [8, 32], strides = [1, 1]} : vector<8x96xf32> to vector<8x32xf32>
    %126 = arith.mulf %124, %75 : vector<8x32xf32>
    %127 = arith.mulf %123, %122 : vector<8x32xf32>
    %128 = arith.addf %126, %127 : vector<8x32xf32>
    %129 = math.tanh %128 : vector<8x32xf32>
    %130 = arith.mulf %125, %129 : vector<8x32xf32>
    %131 = arith.truncf %114 : vector<8x32xf32> to vector<8x32xbf16>
    %132 = arith.index_cast %85 : i32 to index
    %c0_58 = arith.constant 0 : index
    %133 = vector.load %arg13[%132, %c0_58] : memref<64x32xbf16, #tpu.memory_space<vmem>>, vector<8x32xbf16>
    tpu.vector_store %arg13[%132, %c0_58], %131 {strides = array<i32>} : memref<64x32xbf16, #tpu.memory_space<vmem>>, vector<8x32xbf16>,
    %134 = arith.truncf %130 : vector<8x32xf32> to vector<8x32xbf16>
    %135 = arith.index_cast %88 : i32 to index
    %c0_59 = arith.constant 0 : index
    %136 = vector.load %arg14[%135, %c0_59] : memref<64x32xbf16, #tpu.memory_space<vmem>>, vector<8x32xbf16>
    tpu.vector_store %arg14[%135, %c0_59], %134 {strides = array<i32>} : memref<64x32xbf16, #tpu.memory_space<vmem>>, vector<8x32xbf16>,
    %c2_i32 = arith.constant 2 : i32
    %c8_i32_60 = arith.constant 8 : i32
    %137 = arith.muli %c2_i32, %c8_i32_60 : i32
    %138 = tpu.assume_multiple %137, 8 : i32
    %c7_i32_61 = arith.constant 7 : i32
    %139 = arith.subi %c7_i32_61, %c2_i32 : i32
    %c8_i32_62 = arith.constant 8 : i32
    %140 = arith.muli %139, %c8_i32_62 : i32
    %141 = tpu.assume_multiple %140, 8 : i32
    %142 = arith.index_cast %138 : i32 to index
    %c0_63 = arith.constant 0 : index
    %143 = vector.load %arg19[%142, %c0_63] : memref<64x128xf32, #tpu.memory_space<vmem>>, vector<8x128xf32>
    %144 = arith.truncf %114 : vector<8x32xf32> to vector<8x32xbf16>
    %cst_64 = arith.constant dense<0.000000e+00> : vector<8x128xf32>
    %145 = tpu.matmul %144, %25, %cst_64 {dimension_numbers = #tpu.dot_dimension_numbers<[1], [0], [0], [1], [0, 0, 1, 1], [], []>} : vector<8x32xbf16>, vector<32x128xbf16>, vector<8x128xf32> -> vector<8x128xf32>
    %146 = arith.addf %143, %145 : vector<8x128xf32>
    %147 = arith.index_cast %141 : i32 to index
    %c0_65 = arith.constant 0 : index
    %148 = vector.load %arg20[%147, %c0_65] : memref<64x128xf32, #tpu.memory_space<vmem>>, vector<8x128xf32>
    %149 = arith.truncf %130 : vector<8x32xf32> to vector<8x32xbf16>
    %cst_66 = arith.constant dense<0.000000e+00> : vector<8x128xf32>
    %150 = tpu.matmul %149, %26, %cst_66 {dimension_numbers = #tpu.dot_dimension_numbers<[1], [0], [0], [1], [0, 0, 1, 1], [], []>} : vector<8x32xbf16>, vector<32x128xbf16>, vector<8x128xf32> -> vector<8x128xf32>
    %151 = arith.addf %148, %150 : vector<8x128xf32>
    %152 = vector.extract_strided_slice %146 {offsets = [0, 0], sizes = [8, 96], strides = [1, 1]} : vector<8x128xf32> to vector<8x96xf32>
    %153 = arith.negf %152 : vector<8x96xf32>
    %154 = math.exp %153 : vector<8x96xf32>
    %cst_67 = arith.constant 1.000000e+00 : f32
    %155 = vector.broadcast %cst_67 : f32 to vector<8x96xf32>
    %156 = arith.addf %155, %154 : vector<8x96xf32>
    %157 = arith.divf %155, %156 : vector<8x96xf32>
    %158 = vector.extract_strided_slice %146 {offsets = [0, 96], sizes = [8, 32], strides = [1, 1]} : vector<8x128xf32> to vector<8x32xf32>
    %159 = math.tanh %158 : vector<8x32xf32>
    %160 = vector.extract_strided_slice %157 {offsets = [0, 0], sizes = [8, 32], strides = [1, 1]} : vector<8x96xf32> to vector<8x32xf32>
    %161 = vector.extract_strided_slice %157 {offsets = [0, 32], sizes = [8, 32], strides = [1, 1]} : vector<8x96xf32> to vector<8x32xf32>
    %162 = vector.extract_strided_slice %157 {offsets = [0, 64], sizes = [8, 32], strides = [1, 1]} : vector<8x96xf32> to vector<8x32xf32>
    %163 = arith.mulf %161, %112 : vector<8x32xf32>
    %164 = arith.mulf %160, %159 : vector<8x32xf32>
    %165 = arith.addf %163, %164 : vector<8x32xf32>
    %166 = math.tanh %165 : vector<8x32xf32>
    %167 = arith.mulf %162, %166 : vector<8x32xf32>
    %168 = vector.extract_strided_slice %151 {offsets = [0, 0], sizes = [8, 96], strides = [1, 1]} : vector<8x128xf32> to vector<8x96xf32>
    %169 = arith.negf %168 : vector<8x96xf32>
    %170 = math.exp %169 : vector<8x96xf32>
    %cst_68 = arith.constant 1.000000e+00 : f32
    %171 = vector.broadcast %cst_68 : f32 to vector<8x96xf32>
    %172 = arith.addf %171, %170 : vector<8x96xf32>
    %173 = arith.divf %171, %172 : vector<8x96xf32>
    %174 = vector.extract_strided_slice %151 {offsets = [0, 96], sizes = [8, 32], strides = [1, 1]} : vector<8x128xf32> to vector<8x32xf32>
    %175 = math.tanh %174 : vector<8x32xf32>
    %176 = vector.extract_strided_slice %173 {offsets = [0, 0], sizes = [8, 32], strides = [1, 1]} : vector<8x96xf32> to vector<8x32xf32>
    %177 = vector.extract_strided_slice %173 {offsets = [0, 32], sizes = [8, 32], strides = [1, 1]} : vector<8x96xf32> to vector<8x32xf32>
    %178 = vector.extract_strided_slice %173 {offsets = [0, 64], sizes = [8, 32], strides = [1, 1]} : vector<8x96xf32> to vector<8x32xf32>
    %179 = arith.mulf %177, %128 : vector<8x32xf32>
    %180 = arith.mulf %176, %175 : vector<8x32xf32>
    %181 = arith.addf %179, %180 : vector<8x32xf32>
    %182 = math.tanh %181 : vector<8x32xf32>
    %183 = arith.mulf %178, %182 : vector<8x32xf32>
    %184 = arith.truncf %167 : vector<8x32xf32> to vector<8x32xbf16>
    %185 = arith.index_cast %138 : i32 to index
    %c0_69 = arith.constant 0 : index
    %186 = vector.load %arg13[%185, %c0_69] : memref<64x32xbf16, #tpu.memory_space<vmem>>, vector<8x32xbf16>
    tpu.vector_store %arg13[%185, %c0_69], %184 {strides = array<i32>} : memref<64x32xbf16, #tpu.memory_space<vmem>>, vector<8x32xbf16>,
    %187 = arith.truncf %183 : vector<8x32xf32> to vector<8x32xbf16>
    %188 = arith.index_cast %141 : i32 to index
    %c0_70 = arith.constant 0 : index
    %189 = vector.load %arg14[%188, %c0_70] : memref<64x32xbf16, #tpu.memory_space<vmem>>, vector<8x32xbf16>
    tpu.vector_store %arg14[%188, %c0_70], %187 {strides = array<i32>} : memref<64x32xbf16, #tpu.memory_space<vmem>>, vector<8x32xbf16>,
    %c3_i32 = arith.constant 3 : i32
    %c8_i32_71 = arith.constant 8 : i32
    %190 = arith.muli %c3_i32, %c8_i32_71 : i32
    %191 = tpu.assume_multiple %190, 8 : i32
    %c7_i32_72 = arith.constant 7 : i32
    %192 = arith.subi %c7_i32_72, %c3_i32 : i32
    %c8_i32_73 = arith.constant 8 : i32
    %193 = arith.muli %192, %c8_i32_73 : i32
    %194 = tpu.assume_multiple %193, 8 : i32
    %195 = arith.index_cast %191 : i32 to index
    %c0_74 = arith.constant 0 : index
    %196 = vector.load %arg19[%195, %c0_74] : memref<64x128xf32, #tpu.memory_space<vmem>>, vector<8x128xf32>
    %197 = arith.truncf %167 : vector<8x32xf32> to vector<8x32xbf16>
    %cst_75 = arith.constant dense<0.000000e+00> : vector<8x128xf32>
    %198 = tpu.matmul %197, %25, %cst_75 {dimension_numbers = #tpu.dot_dimension_numbers<[1], [0], [0], [1], [0, 0, 1, 1], [], []>} : vector<8x32xbf16>, vector<32x128xbf16>, vector<8x128xf32> -> vector<8x128xf32>
    %199 = arith.addf %196, %198 : vector<8x128xf32>
    %200 = arith.index_cast %194 : i32 to index
    %c0_76 = arith.constant 0 : index
    %201 = vector.load %arg20[%200, %c0_76] : memref<64x128xf32, #tpu.memory_space<vmem>>, vector<8x128xf32>
    %202 = arith.truncf %183 : vector<8x32xf32> to vector<8x32xbf16>
    %cst_77 = arith.constant dense<0.000000e+00> : vector<8x128xf32>
    %203 = tpu.matmul %202, %26, %cst_77 {dimension_numbers = #tpu.dot_dimension_numbers<[1], [0], [0], [1], [0, 0, 1, 1], [], []>} : vector<8x32xbf16>, vector<32x128xbf16>, vector<8x128xf32> -> vector<8x128xf32>
    %204 = arith.addf %201, %203 : vector<8x128xf32>
    %205 = vector.extract_strided_slice %199 {offsets = [0, 0], sizes = [8, 96], strides = [1, 1]} : vector<8x128xf32> to vector<8x96xf32>
    %206 = arith.negf %205 : vector<8x96xf32>
    %207 = math.exp %206 : vector<8x96xf32>
    %cst_78 = arith.constant 1.000000e+00 : f32
    %208 = vector.broadcast %cst_78 : f32 to vector<8x96xf32>
    %209 = arith.addf %208, %207 : vector<8x96xf32>
    %210 = arith.divf %208, %209 : vector<8x96xf32>
    %211 = vector.extract_strided_slice %199 {offsets = [0, 96], sizes = [8, 32], strides = [1, 1]} : vector<8x128xf32> to vector<8x32xf32>
    %212 = math.tanh %211 : vector<8x32xf32>
    %213 = vector.extract_strided_slice %210 {offsets = [0, 0], sizes = [8, 32], strides = [1, 1]} : vector<8x96xf32> to vector<8x32xf32>
    %214 = vector.extract_strided_slice %210 {offsets = [0, 32], sizes = [8, 32], strides = [1, 1]} : vector<8x96xf32> to vector<8x32xf32>
    %215 = vector.extract_strided_slice %210 {offsets = [0, 64], sizes = [8, 32], strides = [1, 1]} : vector<8x96xf32> to vector<8x32xf32>
    %216 = arith.mulf %214, %165 : vector<8x32xf32>
    %217 = arith.mulf %213, %212 : vector<8x32xf32>
    %218 = arith.addf %216, %217 : vector<8x32xf32>
    %219 = math.tanh %218 : vector<8x32xf32>
    %220 = arith.mulf %215, %219 : vector<8x32xf32>
    %221 = vector.extract_strided_slice %204 {offsets = [0, 0], sizes = [8, 96], strides = [1, 1]} : vector<8x128xf32> to vector<8x96xf32>
    %222 = arith.negf %221 : vector<8x96xf32>
    %223 = math.exp %222 : vector<8x96xf32>
    %cst_79 = arith.constant 1.000000e+00 : f32
    %224 = vector.broadcast %cst_79 : f32 to vector<8x96xf32>
    %225 = arith.addf %224, %223 : vector<8x96xf32>
    %226 = arith.divf %224, %225 : vector<8x96xf32>
    %227 = vector.extract_strided_slice %204 {offsets = [0, 96], sizes = [8, 32], strides = [1, 1]} : vector<8x128xf32> to vector<8x32xf32>
    %228 = math.tanh %227 : vector<8x32xf32>
    %229 = vector.extract_strided_slice %226 {offsets = [0, 0], sizes = [8, 32], strides = [1, 1]} : vector<8x96xf32> to vector<8x32xf32>
    %230 = vector.extract_strided_slice %226 {offsets = [0, 32], sizes = [8, 32], strides = [1, 1]} : vector<8x96xf32> to vector<8x32xf32>
    %231 = vector.extract_strided_slice %226 {offsets = [0, 64], sizes = [8, 32], strides = [1, 1]} : vector<8x96xf32> to vector<8x32xf32>
    %232 = arith.mulf %230, %181 : vector<8x32xf32>
    %233 = arith.mulf %229, %228 : vector<8x32xf32>
    %234 = arith.addf %232, %233 : vector<8x32xf32>
    %235 = math.tanh %234 : vector<8x32xf32>
    %236 = arith.mulf %231, %235 : vector<8x32xf32>
    %237 = arith.truncf %220 : vector<8x32xf32> to vector<8x32xbf16>
    %238 = arith.index_cast %191 : i32 to index
    %c0_80 = arith.constant 0 : index
    %239 = vector.load %arg13[%238, %c0_80] : memref<64x32xbf16, #tpu.memory_space<vmem>>, vector<8x32xbf16>
    tpu.vector_store %arg13[%238, %c0_80], %237 {strides = array<i32>} : memref<64x32xbf16, #tpu.memory_space<vmem>>, vector<8x32xbf16>,
    %240 = arith.truncf %236 : vector<8x32xf32> to vector<8x32xbf16>
    %241 = arith.index_cast %194 : i32 to index
    %c0_81 = arith.constant 0 : index
    %242 = vector.load %arg14[%241, %c0_81] : memref<64x32xbf16, #tpu.memory_space<vmem>>, vector<8x32xbf16>
    tpu.vector_store %arg14[%241, %c0_81], %240 {strides = array<i32>} : memref<64x32xbf16, #tpu.memory_space<vmem>>, vector<8x32xbf16>,
    %c4_i32 = arith.constant 4 : i32
    %c8_i32_82 = arith.constant 8 : i32
    %243 = arith.muli %c4_i32, %c8_i32_82 : i32
    %244 = tpu.assume_multiple %243, 8 : i32
    %c7_i32_83 = arith.constant 7 : i32
    %245 = arith.subi %c7_i32_83, %c4_i32 : i32
    %c8_i32_84 = arith.constant 8 : i32
    %246 = arith.muli %245, %c8_i32_84 : i32
    %247 = tpu.assume_multiple %246, 8 : i32
    %248 = arith.index_cast %244 : i32 to index
    %c0_85 = arith.constant 0 : index
    %249 = vector.load %arg19[%248, %c0_85] : memref<64x128xf32, #tpu.memory_space<vmem>>, vector<8x128xf32>
    %250 = arith.truncf %220 : vector<8x32xf32> to vector<8x32xbf16>
    %cst_86 = arith.constant dense<0.000000e+00> : vector<8x128xf32>
    %251 = tpu.matmul %250, %25, %cst_86 {dimension_numbers = #tpu.dot_dimension_numbers<[1], [0], [0], [1], [0, 0, 1, 1], [], []>} : vector<8x32xbf16>, vector<32x128xbf16>, vector<8x128xf32> -> vector<8x128xf32>
    %252 = arith.addf %249, %251 : vector<8x128xf32>
    %253 = arith.index_cast %247 : i32 to index
    %c0_87 = arith.constant 0 : index
    %254 = vector.load %arg20[%253, %c0_87] : memref<64x128xf32, #tpu.memory_space<vmem>>, vector<8x128xf32>
    %255 = arith.truncf %236 : vector<8x32xf32> to vector<8x32xbf16>
    %cst_88 = arith.constant dense<0.000000e+00> : vector<8x128xf32>
    %256 = tpu.matmul %255, %26, %cst_88 {dimension_numbers = #tpu.dot_dimension_numbers<[1], [0], [0], [1], [0, 0, 1, 1], [], []>} : vector<8x32xbf16>, vector<32x128xbf16>, vector<8x128xf32> -> vector<8x128xf32>
    %257 = arith.addf %254, %256 : vector<8x128xf32>
    %258 = vector.extract_strided_slice %252 {offsets = [0, 0], sizes = [8, 96], strides = [1, 1]} : vector<8x128xf32> to vector<8x96xf32>
    %259 = arith.negf %258 : vector<8x96xf32>
    %260 = math.exp %259 : vector<8x96xf32>
    %cst_89 = arith.constant 1.000000e+00 : f32
    %261 = vector.broadcast %cst_89 : f32 to vector<8x96xf32>
    %262 = arith.addf %261, %260 : vector<8x96xf32>
    %263 = arith.divf %261, %262 : vector<8x96xf32>
    %264 = vector.extract_strided_slice %252 {offsets = [0, 96], sizes = [8, 32], strides = [1, 1]} : vector<8x128xf32> to vector<8x32xf32>
    %265 = math.tanh %264 : vector<8x32xf32>
    %266 = vector.extract_strided_slice %263 {offsets = [0, 0], sizes = [8, 32], strides = [1, 1]} : vector<8x96xf32> to vector<8x32xf32>
    %267 = vector.extract_strided_slice %263 {offsets = [0, 32], sizes = [8, 32], strides = [1, 1]} : vector<8x96xf32> to vector<8x32xf32>
    %268 = vector.extract_strided_slice %263 {offsets = [0, 64], sizes = [8, 32], strides = [1, 1]} : vector<8x96xf32> to vector<8x32xf32>
    %269 = arith.mulf %267, %218 : vector<8x32xf32>
    %270 = arith.mulf %266, %265 : vector<8x32xf32>
    %271 = arith.addf %269, %270 : vector<8x32xf32>
    %272 = math.tanh %271 : vector<8x32xf32>
    %273 = arith.mulf %268, %272 : vector<8x32xf32>
    %274 = vector.extract_strided_slice %257 {offsets = [0, 0], sizes = [8, 96], strides = [1, 1]} : vector<8x128xf32> to vector<8x96xf32>
    %275 = arith.negf %274 : vector<8x96xf32>
    %276 = math.exp %275 : vector<8x96xf32>
    %cst_90 = arith.constant 1.000000e+00 : f32
    %277 = vector.broadcast %cst_90 : f32 to vector<8x96xf32>
    %278 = arith.addf %277, %276 : vector<8x96xf32>
    %279 = arith.divf %277, %278 : vector<8x96xf32>
    %280 = vector.extract_strided_slice %257 {offsets = [0, 96], sizes = [8, 32], strides = [1, 1]} : vector<8x128xf32> to vector<8x32xf32>
    %281 = math.tanh %280 : vector<8x32xf32>
    %282 = vector.extract_strided_slice %279 {offsets = [0, 0], sizes = [8, 32], strides = [1, 1]} : vector<8x96xf32> to vector<8x32xf32>
    %283 = vector.extract_strided_slice %279 {offsets = [0, 32], sizes = [8, 32], strides = [1, 1]} : vector<8x96xf32> to vector<8x32xf32>
    %284 = vector.extract_strided_slice %279 {offsets = [0, 64], sizes = [8, 32], strides = [1, 1]} : vector<8x96xf32> to vector<8x32xf32>
    %285 = arith.mulf %283, %234 : vector<8x32xf32>
    %286 = arith.mulf %282, %281 : vector<8x32xf32>
    %287 = arith.addf %285, %286 : vector<8x32xf32>
    %288 = math.tanh %287 : vector<8x32xf32>
    %289 = arith.mulf %284, %288 : vector<8x32xf32>
    %290 = arith.truncf %273 : vector<8x32xf32> to vector<8x32xbf16>
    %291 = arith.index_cast %244 : i32 to index
    %c0_91 = arith.constant 0 : index
    %292 = vector.load %arg13[%291, %c0_91] : memref<64x32xbf16, #tpu.memory_space<vmem>>, vector<8x32xbf16>
    tpu.vector_store %arg13[%291, %c0_91], %290 {strides = array<i32>} : memref<64x32xbf16, #tpu.memory_space<vmem>>, vector<8x32xbf16>,
    %293 = arith.truncf %289 : vector<8x32xf32> to vector<8x32xbf16>
    %294 = arith.index_cast %247 : i32 to index
    %c0_92 = arith.constant 0 : index
    %295 = vector.load %arg14[%294, %c0_92] : memref<64x32xbf16, #tpu.memory_space<vmem>>, vector<8x32xbf16>
    tpu.vector_store %arg14[%294, %c0_92], %293 {strides = array<i32>} : memref<64x32xbf16, #tpu.memory_space<vmem>>, vector<8x32xbf16>,
    %c5_i32 = arith.constant 5 : i32
    %c8_i32_93 = arith.constant 8 : i32
    %296 = arith.muli %c5_i32, %c8_i32_93 : i32
    %297 = tpu.assume_multiple %296, 8 : i32
    %c7_i32_94 = arith.constant 7 : i32
    %298 = arith.subi %c7_i32_94, %c5_i32 : i32
    %c8_i32_95 = arith.constant 8 : i32
    %299 = arith.muli %298, %c8_i32_95 : i32
    %300 = tpu.assume_multiple %299, 8 : i32
    %301 = arith.index_cast %297 : i32 to index
    %c0_96 = arith.constant 0 : index
    %302 = vector.load %arg19[%301, %c0_96] : memref<64x128xf32, #tpu.memory_space<vmem>>, vector<8x128xf32>
    %303 = arith.truncf %273 : vector<8x32xf32> to vector<8x32xbf16>
    %cst_97 = arith.constant dense<0.000000e+00> : vector<8x128xf32>
    %304 = tpu.matmul %303, %25, %cst_97 {dimension_numbers = #tpu.dot_dimension_numbers<[1], [0], [0], [1], [0, 0, 1, 1], [], []>} : vector<8x32xbf16>, vector<32x128xbf16>, vector<8x128xf32> -> vector<8x128xf32>
    %305 = arith.addf %302, %304 : vector<8x128xf32>
    %306 = arith.index_cast %300 : i32 to index
    %c0_98 = arith.constant 0 : index
    %307 = vector.load %arg20[%306, %c0_98] : memref<64x128xf32, #tpu.memory_space<vmem>>, vector<8x128xf32>
    %308 = arith.truncf %289 : vector<8x32xf32> to vector<8x32xbf16>
    %cst_99 = arith.constant dense<0.000000e+00> : vector<8x128xf32>
    %309 = tpu.matmul %308, %26, %cst_99 {dimension_numbers = #tpu.dot_dimension_numbers<[1], [0], [0], [1], [0, 0, 1, 1], [], []>} : vector<8x32xbf16>, vector<32x128xbf16>, vector<8x128xf32> -> vector<8x128xf32>
    %310 = arith.addf %307, %309 : vector<8x128xf32>
    %311 = vector.extract_strided_slice %305 {offsets = [0, 0], sizes = [8, 96], strides = [1, 1]} : vector<8x128xf32> to vector<8x96xf32>
    %312 = arith.negf %311 : vector<8x96xf32>
    %313 = math.exp %312 : vector<8x96xf32>
    %cst_100 = arith.constant 1.000000e+00 : f32
    %314 = vector.broadcast %cst_100 : f32 to vector<8x96xf32>
    %315 = arith.addf %314, %313 : vector<8x96xf32>
    %316 = arith.divf %314, %315 : vector<8x96xf32>
    %317 = vector.extract_strided_slice %305 {offsets = [0, 96], sizes = [8, 32], strides = [1, 1]} : vector<8x128xf32> to vector<8x32xf32>
    %318 = math.tanh %317 : vector<8x32xf32>
    %319 = vector.extract_strided_slice %316 {offsets = [0, 0], sizes = [8, 32], strides = [1, 1]} : vector<8x96xf32> to vector<8x32xf32>
    %320 = vector.extract_strided_slice %316 {offsets = [0, 32], sizes = [8, 32], strides = [1, 1]} : vector<8x96xf32> to vector<8x32xf32>
    %321 = vector.extract_strided_slice %316 {offsets = [0, 64], sizes = [8, 32], strides = [1, 1]} : vector<8x96xf32> to vector<8x32xf32>
    %322 = arith.mulf %320, %271 : vector<8x32xf32>
    %323 = arith.mulf %319, %318 : vector<8x32xf32>
    %324 = arith.addf %322, %323 : vector<8x32xf32>
    %325 = math.tanh %324 : vector<8x32xf32>
    %326 = arith.mulf %321, %325 : vector<8x32xf32>
    %327 = vector.extract_strided_slice %310 {offsets = [0, 0], sizes = [8, 96], strides = [1, 1]} : vector<8x128xf32> to vector<8x96xf32>
    %328 = arith.negf %327 : vector<8x96xf32>
    %329 = math.exp %328 : vector<8x96xf32>
    %cst_101 = arith.constant 1.000000e+00 : f32
    %330 = vector.broadcast %cst_101 : f32 to vector<8x96xf32>
    %331 = arith.addf %330, %329 : vector<8x96xf32>
    %332 = arith.divf %330, %331 : vector<8x96xf32>
    %333 = vector.extract_strided_slice %310 {offsets = [0, 96], sizes = [8, 32], strides = [1, 1]} : vector<8x128xf32> to vector<8x32xf32>
    %334 = math.tanh %333 : vector<8x32xf32>
    %335 = vector.extract_strided_slice %332 {offsets = [0, 0], sizes = [8, 32], strides = [1, 1]} : vector<8x96xf32> to vector<8x32xf32>
    %336 = vector.extract_strided_slice %332 {offsets = [0, 32], sizes = [8, 32], strides = [1, 1]} : vector<8x96xf32> to vector<8x32xf32>
    %337 = vector.extract_strided_slice %332 {offsets = [0, 64], sizes = [8, 32], strides = [1, 1]} : vector<8x96xf32> to vector<8x32xf32>
    %338 = arith.mulf %336, %287 : vector<8x32xf32>
    %339 = arith.mulf %335, %334 : vector<8x32xf32>
    %340 = arith.addf %338, %339 : vector<8x32xf32>
    %341 = math.tanh %340 : vector<8x32xf32>
    %342 = arith.mulf %337, %341 : vector<8x32xf32>
    %343 = arith.truncf %326 : vector<8x32xf32> to vector<8x32xbf16>
    %344 = arith.index_cast %297 : i32 to index
    %c0_102 = arith.constant 0 : index
    %345 = vector.load %arg13[%344, %c0_102] : memref<64x32xbf16, #tpu.memory_space<vmem>>, vector<8x32xbf16>
    tpu.vector_store %arg13[%344, %c0_102], %343 {strides = array<i32>} : memref<64x32xbf16, #tpu.memory_space<vmem>>, vector<8x32xbf16>,
    %346 = arith.truncf %342 : vector<8x32xf32> to vector<8x32xbf16>
    %347 = arith.index_cast %300 : i32 to index
    %c0_103 = arith.constant 0 : index
    %348 = vector.load %arg14[%347, %c0_103] : memref<64x32xbf16, #tpu.memory_space<vmem>>, vector<8x32xbf16>
    tpu.vector_store %arg14[%347, %c0_103], %346 {strides = array<i32>} : memref<64x32xbf16, #tpu.memory_space<vmem>>, vector<8x32xbf16>,
    %c6_i32 = arith.constant 6 : i32
    %c8_i32_104 = arith.constant 8 : i32
    %349 = arith.muli %c6_i32, %c8_i32_104 : i32
    %350 = tpu.assume_multiple %349, 8 : i32
    %c7_i32_105 = arith.constant 7 : i32
    %351 = arith.subi %c7_i32_105, %c6_i32 : i32
    %c8_i32_106 = arith.constant 8 : i32
    %352 = arith.muli %351, %c8_i32_106 : i32
    %353 = tpu.assume_multiple %352, 8 : i32
    %354 = arith.index_cast %350 : i32 to index
    %c0_107 = arith.constant 0 : index
    %355 = vector.load %arg19[%354, %c0_107] : memref<64x128xf32, #tpu.memory_space<vmem>>, vector<8x128xf32>
    %356 = arith.truncf %326 : vector<8x32xf32> to vector<8x32xbf16>
    %cst_108 = arith.constant dense<0.000000e+00> : vector<8x128xf32>
    %357 = tpu.matmul %356, %25, %cst_108 {dimension_numbers = #tpu.dot_dimension_numbers<[1], [0], [0], [1], [0, 0, 1, 1], [], []>} : vector<8x32xbf16>, vector<32x128xbf16>, vector<8x128xf32> -> vector<8x128xf32>
    %358 = arith.addf %355, %357 : vector<8x128xf32>
    %359 = arith.index_cast %353 : i32 to index
    %c0_109 = arith.constant 0 : index
    %360 = vector.load %arg20[%359, %c0_109] : memref<64x128xf32, #tpu.memory_space<vmem>>, vector<8x128xf32>
    %361 = arith.truncf %342 : vector<8x32xf32> to vector<8x32xbf16>
    %cst_110 = arith.constant dense<0.000000e+00> : vector<8x128xf32>
    %362 = tpu.matmul %361, %26, %cst_110 {dimension_numbers = #tpu.dot_dimension_numbers<[1], [0], [0], [1], [0, 0, 1, 1], [], []>} : vector<8x32xbf16>, vector<32x128xbf16>, vector<8x128xf32> -> vector<8x128xf32>
    %363 = arith.addf %360, %362 : vector<8x128xf32>
    %364 = vector.extract_strided_slice %358 {offsets = [0, 0], sizes = [8, 96], strides = [1, 1]} : vector<8x128xf32> to vector<8x96xf32>
    %365 = arith.negf %364 : vector<8x96xf32>
    %366 = math.exp %365 : vector<8x96xf32>
    %cst_111 = arith.constant 1.000000e+00 : f32
    %367 = vector.broadcast %cst_111 : f32 to vector<8x96xf32>
    %368 = arith.addf %367, %366 : vector<8x96xf32>
    %369 = arith.divf %367, %368 : vector<8x96xf32>
    %370 = vector.extract_strided_slice %358 {offsets = [0, 96], sizes = [8, 32], strides = [1, 1]} : vector<8x128xf32> to vector<8x32xf32>
    %371 = math.tanh %370 : vector<8x32xf32>
    %372 = vector.extract_strided_slice %369 {offsets = [0, 0], sizes = [8, 32], strides = [1, 1]} : vector<8x96xf32> to vector<8x32xf32>
    %373 = vector.extract_strided_slice %369 {offsets = [0, 32], sizes = [8, 32], strides = [1, 1]} : vector<8x96xf32> to vector<8x32xf32>
    %374 = vector.extract_strided_slice %369 {offsets = [0, 64], sizes = [8, 32], strides = [1, 1]} : vector<8x96xf32> to vector<8x32xf32>
    %375 = arith.mulf %373, %324 : vector<8x32xf32>
    %376 = arith.mulf %372, %371 : vector<8x32xf32>
    %377 = arith.addf %375, %376 : vector<8x32xf32>
    %378 = math.tanh %377 : vector<8x32xf32>
    %379 = arith.mulf %374, %378 : vector<8x32xf32>
    %380 = vector.extract_strided_slice %363 {offsets = [0, 0], sizes = [8, 96], strides = [1, 1]} : vector<8x128xf32> to vector<8x96xf32>
    %381 = arith.negf %380 : vector<8x96xf32>
    %382 = math.exp %381 : vector<8x96xf32>
    %cst_112 = arith.constant 1.000000e+00 : f32
    %383 = vector.broadcast %cst_112 : f32 to vector<8x96xf32>
    %384 = arith.addf %383, %382 : vector<8x96xf32>
    %385 = arith.divf %383, %384 : vector<8x96xf32>
    %386 = vector.extract_strided_slice %363 {offsets = [0, 96], sizes = [8, 32], strides = [1, 1]} : vector<8x128xf32> to vector<8x32xf32>
    %387 = math.tanh %386 : vector<8x32xf32>
    %388 = vector.extract_strided_slice %385 {offsets = [0, 0], sizes = [8, 32], strides = [1, 1]} : vector<8x96xf32> to vector<8x32xf32>
    %389 = vector.extract_strided_slice %385 {offsets = [0, 32], sizes = [8, 32], strides = [1, 1]} : vector<8x96xf32> to vector<8x32xf32>
    %390 = vector.extract_strided_slice %385 {offsets = [0, 64], sizes = [8, 32], strides = [1, 1]} : vector<8x96xf32> to vector<8x32xf32>
    %391 = arith.mulf %389, %340 : vector<8x32xf32>
    %392 = arith.mulf %388, %387 : vector<8x32xf32>
    %393 = arith.addf %391, %392 : vector<8x32xf32>
    %394 = math.tanh %393 : vector<8x32xf32>
    %395 = arith.mulf %390, %394 : vector<8x32xf32>
    %396 = arith.truncf %379 : vector<8x32xf32> to vector<8x32xbf16>
    %397 = arith.index_cast %350 : i32 to index
    %c0_113 = arith.constant 0 : index
    %398 = vector.load %arg13[%397, %c0_113] : memref<64x32xbf16, #tpu.memory_space<vmem>>, vector<8x32xbf16>
    tpu.vector_store %arg13[%397, %c0_113], %396 {strides = array<i32>} : memref<64x32xbf16, #tpu.memory_space<vmem>>, vector<8x32xbf16>,
    %399 = arith.truncf %395 : vector<8x32xf32> to vector<8x32xbf16>
    %400 = arith.index_cast %353 : i32 to index
    %c0_114 = arith.constant 0 : index
    %401 = vector.load %arg14[%400, %c0_114] : memref<64x32xbf16, #tpu.memory_space<vmem>>, vector<8x32xbf16>
    tpu.vector_store %arg14[%400, %c0_114], %399 {strides = array<i32>} : memref<64x32xbf16, #tpu.memory_space<vmem>>, vector<8x32xbf16>,
    %c7_i32_115 = arith.constant 7 : i32
    %c8_i32_116 = arith.constant 8 : i32
    %402 = arith.muli %c7_i32_115, %c8_i32_116 : i32
    %403 = tpu.assume_multiple %402, 8 : i32
    %c7_i32_117 = arith.constant 7 : i32
    %404 = arith.subi %c7_i32_117, %c7_i32_115 : i32
    %c8_i32_118 = arith.constant 8 : i32
    %405 = arith.muli %404, %c8_i32_118 : i32
    %406 = tpu.assume_multiple %405, 8 : i32
    %407 = arith.index_cast %403 : i32 to index
    %c0_119 = arith.constant 0 : index
    %408 = vector.load %arg19[%407, %c0_119] : memref<64x128xf32, #tpu.memory_space<vmem>>, vector<8x128xf32>
    %409 = arith.truncf %379 : vector<8x32xf32> to vector<8x32xbf16>
    %cst_120 = arith.constant dense<0.000000e+00> : vector<8x128xf32>
    %410 = tpu.matmul %409, %25, %cst_120 {dimension_numbers = #tpu.dot_dimension_numbers<[1], [0], [0], [1], [0, 0, 1, 1], [], []>} : vector<8x32xbf16>, vector<32x128xbf16>, vector<8x128xf32> -> vector<8x128xf32>
    %411 = arith.addf %408, %410 : vector<8x128xf32>
    %412 = arith.index_cast %406 : i32 to index
    %c0_121 = arith.constant 0 : index
    %413 = vector.load %arg20[%412, %c0_121] : memref<64x128xf32, #tpu.memory_space<vmem>>, vector<8x128xf32>
    %414 = arith.truncf %395 : vector<8x32xf32> to vector<8x32xbf16>
    %cst_122 = arith.constant dense<0.000000e+00> : vector<8x128xf32>
    %415 = tpu.matmul %414, %26, %cst_122 {dimension_numbers = #tpu.dot_dimension_numbers<[1], [0], [0], [1], [0, 0, 1, 1], [], []>} : vector<8x32xbf16>, vector<32x128xbf16>, vector<8x128xf32> -> vector<8x128xf32>
    %416 = arith.addf %413, %415 : vector<8x128xf32>
    %417 = vector.extract_strided_slice %411 {offsets = [0, 0], sizes = [8, 96], strides = [1, 1]} : vector<8x128xf32> to vector<8x96xf32>
    %418 = arith.negf %417 : vector<8x96xf32>
    %419 = math.exp %418 : vector<8x96xf32>
    %cst_123 = arith.constant 1.000000e+00 : f32
    %420 = vector.broadcast %cst_123 : f32 to vector<8x96xf32>
    %421 = arith.addf %420, %419 : vector<8x96xf32>
    %422 = arith.divf %420, %421 : vector<8x96xf32>
    %423 = vector.extract_strided_slice %411 {offsets = [0, 96], sizes = [8, 32], strides = [1, 1]} : vector<8x128xf32> to vector<8x32xf32>
    %424 = math.tanh %423 : vector<8x32xf32>
    %425 = vector.extract_strided_slice %422 {offsets = [0, 0], sizes = [8, 32], strides = [1, 1]} : vector<8x96xf32> to vector<8x32xf32>
    %426 = vector.extract_strided_slice %422 {offsets = [0, 32], sizes = [8, 32], strides = [1, 1]} : vector<8x96xf32> to vector<8x32xf32>
    %427 = vector.extract_strided_slice %422 {offsets = [0, 64], sizes = [8, 32], strides = [1, 1]} : vector<8x96xf32> to vector<8x32xf32>
    %428 = arith.mulf %426, %377 : vector<8x32xf32>
    %429 = arith.mulf %425, %424 : vector<8x32xf32>
    %430 = arith.addf %428, %429 : vector<8x32xf32>
    %431 = math.tanh %430 : vector<8x32xf32>
    %432 = arith.mulf %427, %431 : vector<8x32xf32>
    %433 = vector.extract_strided_slice %416 {offsets = [0, 0], sizes = [8, 96], strides = [1, 1]} : vector<8x128xf32> to vector<8x96xf32>
    %434 = arith.negf %433 : vector<8x96xf32>
    %435 = math.exp %434 : vector<8x96xf32>
    %cst_124 = arith.constant 1.000000e+00 : f32
    %436 = vector.broadcast %cst_124 : f32 to vector<8x96xf32>
    %437 = arith.addf %436, %435 : vector<8x96xf32>
    %438 = arith.divf %436, %437 : vector<8x96xf32>
    %439 = vector.extract_strided_slice %416 {offsets = [0, 96], sizes = [8, 32], strides = [1, 1]} : vector<8x128xf32> to vector<8x32xf32>
    %440 = math.tanh %439 : vector<8x32xf32>
    %441 = vector.extract_strided_slice %438 {offsets = [0, 0], sizes = [8, 32], strides = [1, 1]} : vector<8x96xf32> to vector<8x32xf32>
    %442 = vector.extract_strided_slice %438 {offsets = [0, 32], sizes = [8, 32], strides = [1, 1]} : vector<8x96xf32> to vector<8x32xf32>
    %443 = vector.extract_strided_slice %438 {offsets = [0, 64], sizes = [8, 32], strides = [1, 1]} : vector<8x96xf32> to vector<8x32xf32>
    %444 = arith.mulf %442, %393 : vector<8x32xf32>
    %445 = arith.mulf %441, %440 : vector<8x32xf32>
    %446 = arith.addf %444, %445 : vector<8x32xf32>
    %447 = math.tanh %446 : vector<8x32xf32>
    %448 = arith.mulf %443, %447 : vector<8x32xf32>
    %449 = arith.truncf %432 : vector<8x32xf32> to vector<8x32xbf16>
    %450 = arith.index_cast %403 : i32 to index
    %c0_125 = arith.constant 0 : index
    %451 = vector.load %arg13[%450, %c0_125] : memref<64x32xbf16, #tpu.memory_space<vmem>>, vector<8x32xbf16>
    tpu.vector_store %arg13[%450, %c0_125], %449 {strides = array<i32>} : memref<64x32xbf16, #tpu.memory_space<vmem>>, vector<8x32xbf16>,
    %452 = arith.truncf %448 : vector<8x32xf32> to vector<8x32xbf16>
    %453 = arith.index_cast %406 : i32 to index
    %c0_126 = arith.constant 0 : index
    %454 = vector.load %arg14[%453, %c0_126] : memref<64x32xbf16, #tpu.memory_space<vmem>>, vector<8x32xbf16>
    tpu.vector_store %arg14[%453, %c0_126], %452 {strides = array<i32>} : memref<64x32xbf16, #tpu.memory_space<vmem>>, vector<8x32xbf16>,
    %c8_i32_127 = arith.constant 8 : i32
    %c0_128 = arith.constant 0 : index
    %c0_129 = arith.constant 0 : index
    %455 = vector.load %arg15[%c0_128, %c0_129] : memref<8x32xf32, #tpu.memory_space<vmem>>, vector<8x32xf32>
    tpu.vector_store %arg15[%c0_128, %c0_129], %432 {strides = array<i32>} : memref<8x32xf32, #tpu.memory_space<vmem>>, vector<8x32xf32>,
    %c0_130 = arith.constant 0 : index
    %c0_131 = arith.constant 0 : index
    %456 = vector.load %arg16[%c0_130, %c0_131] : memref<8x32xf32, #tpu.memory_space<vmem>>, vector<8x32xf32>
    tpu.vector_store %arg16[%c0_130, %c0_131], %430 {strides = array<i32>} : memref<8x32xf32, #tpu.memory_space<vmem>>, vector<8x32xf32>,
    %c0_132 = arith.constant 0 : index
    %c0_133 = arith.constant 0 : index
    %457 = vector.load %arg17[%c0_132, %c0_133] : memref<8x32xf32, #tpu.memory_space<vmem>>, vector<8x32xf32>
    tpu.vector_store %arg17[%c0_132, %c0_133], %448 {strides = array<i32>} : memref<8x32xf32, #tpu.memory_space<vmem>>, vector<8x32xf32>,
    %c0_134 = arith.constant 0 : index
    %c0_135 = arith.constant 0 : index
    %458 = vector.load %arg18[%c0_134, %c0_135] : memref<8x32xf32, #tpu.memory_space<vmem>>, vector<8x32xf32>
    tpu.vector_store %arg18[%c0_134, %c0_135], %446 {strides = array<i32>} : memref<8x32xf32, #tpu.memory_space<vmem>>, vector<8x32xf32>,
    return
  }
  func.func @transform_0(%arg0: i32) -> (i32, i32) {
    %c0_i32 = arith.constant 0 : i32
    %c0_i32_0 = arith.constant 0 : i32
    return %arg0, %c0_i32 : i32, i32
  }
  func.func @transform_1(%arg0: i32) -> (i32, i32) {
    %c0_i32 = arith.constant 0 : i32
    %c0_i32_0 = arith.constant 0 : i32
    return %arg0, %c0_i32 : i32, i32
  }
  func.func @transform_2(%arg0: i32) -> (i32, i32) {
    %c0_i32 = arith.constant 0 : i32
    %0 = arith.subi %c0_i32, %arg0 : i32
    %c0_i32_0 = arith.constant 0 : i32
    %c0_i32_1 = arith.constant 0 : i32
    return %0, %c0_i32_0 : i32, i32
  }
  func.func @transform_3(%arg0: i32) -> (i32, i32) {
    %c0_i32 = arith.constant 0 : i32
    %0 = arith.subi %c0_i32, %arg0 : i32
    %c0_i32_0 = arith.constant 0 : i32
    %c0_i32_1 = arith.constant 0 : i32
    return %0, %c0_i32_0 : i32, i32
  }
  func.func @transform_4(%arg0: i32) -> (i32, i32) {
    %c0_i32 = arith.constant 0 : i32
    %c0_i32_0 = arith.constant 0 : i32
    %c0_i32_1 = arith.constant 0 : i32
    return %c0_i32, %c0_i32_0 : i32, i32
  }
  func.func @transform_5(%arg0: i32) -> (i32, i32) {
    %c0_i32 = arith.constant 0 : i32
    %c0_i32_0 = arith.constant 0 : i32
    %c0_i32_1 = arith.constant 0 : i32
    return %c0_i32, %c0_i32_0 : i32, i32
  }
  func.func @transform_6(%arg0: i32) -> (i32, i32) {
    %c0_i32 = arith.constant 0 : i32
    %c0_i32_0 = arith.constant 0 : i32
    %c0_i32_1 = arith.constant 0 : i32
    return %c0_i32, %c0_i32_0 : i32, i32
  }
  func.func @transform_7(%arg0: i32) -> (i32, i32) {
    %c0_i32 = arith.constant 0 : i32
    %c0_i32_0 = arith.constant 0 : i32
    %c0_i32_1 = arith.constant 0 : i32
    return %c0_i32, %c0_i32_0 : i32, i32
  }
  func.func @transform_8(%arg0: i32) -> (i32, i32) {
    %c0_i32 = arith.constant 0 : i32
    %c0_i32_0 = arith.constant 0 : i32
    %c0_i32_1 = arith.constant 0 : i32
    return %c0_i32, %c0_i32_0 : i32, i32
  }
  func.func @transform_9(%arg0: i32) -> (i32, i32) {
    %c0_i32 = arith.constant 0 : i32
    %c0_i32_0 = arith.constant 0 : i32
    %c0_i32_1 = arith.constant 0 : i32
    return %c0_i32, %c0_i32_0 : i32, i32
  }
  func.func @transform_10(%arg0: i32) -> (i32, i32) {
    %c0_i32 = arith.constant 0 : i32
    %c0_i32_0 = arith.constant 0 : i32
    %c0_i32_1 = arith.constant 0 : i32
    return %c0_i32, %c0_i32_0 : i32, i32
  }
  func.func @transform_11(%arg0: i32) -> (i32, i32) {
    %c0_i32 = arith.constant 0 : i32
    %c0_i32_0 = arith.constant 0 : i32
    %c0_i32_1 = arith.constant 0 : i32
    return %c0_i32, %c0_i32_0 : i32, i32
  }
  func.func @transform_12(%arg0: i32) -> (i32, i32) {
    %c0_i32 = arith.constant 0 : i32
    %c0_i32_0 = arith.constant 0 : i32
    return %arg0, %c0_i32 : i32, i32
  }
  func.func @transform_13(%arg0: i32) -> (i32, i32) {
    %c0_i32 = arith.constant 0 : i32
    %0 = arith.subi %c0_i32, %arg0 : i32
    %c0_i32_0 = arith.constant 0 : i32
    %c0_i32_1 = arith.constant 0 : i32
    return %0, %c0_i32_0 : i32, i32
  }
}

</mosaic_0001>

<bundles_post_ra>
// kernel: protein_lstm_forward.5
= control target key start
LH: loop header
LB: loop body
LE: loop exit
PB: predicated region body
PF: predicated region fallthrough
CT: control target
= control target key end

     0   :  { %vm77_vm0 = vcmask 261120   ;;  %s390_s3 = inlined_call_operand.vmem [shape: bf16[32,128], index: 3, kind: input, shape index: {}]   ;;  %s391_s2 = inlined_call_operand.vmem [shape: bf16[32,128], index: 2, kind: input, shape index: {}]   ;;  %s392_s1 = inlined_call_operand.vmem [shape: bf16[64,32], index: 1, kind: input, shape index: {}]   ;;  %s393_s0 = inlined_call_operand.vmem [shape: bf16[64,32], index: 0, kind: input, shape index: {}]   ;;  %s394_s4 = inlined_call_operand.vmem [shape: f32[1,128], index: 4, kind: input, shape index: {}]   ;;  %s395_s5 = inlined_call_operand.vmem [shape: f32[64,128], index: 5, kind: output, shape index: {}]  }
   0x1   :  { %v283_v0 = vld [vmem:[%s390_s3 + $0x8] sm:$0xff]  ;;  %v282_v2 = vld [vmem:[%s390_s3] sm:$0xff]  ;;  %v280_v5 = vld [vmem:[%s392_s1 + $0x10] sm:$0xff] }
   0x2   :  { %v277_v1 = vld [vmem:[%s391_s2 + $0x8] sm:$0xff]  ;;  %96 = vmatpush.bf16.msra.mxu0 %v283_v0  ;;  %284 = vmatpush.bf16.msra.mxu2 %v283_v0  ;;  %v276_v3 = vld [vmem:[%s391_s2] sm:$0xff]  ;;  %v274_v7 = vld [vmem:[%s393_s0 + $0x10] sm:$0xff] }
   0x3   :  { %169 = vmatpush.bf16.msra.mxu1 %v277_v1  ;;  %286 = vmatpush.bf16.msra.mxu3 %v277_v1  ;;  %v278_v4 = vld [vmem:[%s392_s1] sm:$0xff]  ;;  %v279_v8 = vld [vmem:[%s392_s1 + $0x8] sm:$0xff]  ;;  %v281_v9 = vld [vmem:[%s392_s1 + $0x18] sm:$0xff] }
   0x4   :  { %v272_v6 = vld [vmem:[%s393_s0] sm:$0xff]  ;;  %v273_v10 = vld [vmem:[%s393_s0 + $0x8] sm:$0xff]  ;;  %v275_v11 = vld [vmem:[%s393_s0 + $0x18] sm:$0xff] }
   0x5   :  { %v288_v13 = vld [vmem:[%s394_s4] ss:$0 sm:$0xff] }
   0x6   :  { %97 = vmatpush.bf16.msra.mxu0 %v282_v2  ;;  %285 = vmatpush.bf16.msra.mxu2 %v282_v2 }
   0x7   :  { %170 = vmatpush.bf16.msra.mxu1 %v276_v3  ;;  %287 = vmatpush.bf16.msra.mxu3 %v276_v3 }
   0x9   :  { %240 = vmatmul.msk.bf16.vlgmr.msra.gmra.mxu0 %vm77_vm0, %v278_v4  ;;  %242 = vmatmul.msk.bf16.vlgmr.msra.gmra.mxu2 %vm77_vm0, %v280_v5 }
   0xa   :  { %268 = vmatmul.msk.bf16.vlgmr.msra.gmra.mxu1 %vm77_vm0, %v272_v6  ;;  %270 = vmatmul.msk.bf16.vlgmr.msra.gmra.mxu3 %vm77_vm0, %v274_v7 }
  0x19   :  { %241 = vmatmul.msk.bf16.gmra.mxu0 %vm77_vm0, %v279_v8  ;;  %243 = vmatmul.msk.bf16.gmra.mxu2 %vm77_vm0, %v281_v9 }
  0x1a   :  { %269 = vmatmul.msk.bf16.gmra.mxu1 %vm77_vm0, %v273_v10  ;;  %271 = vmatmul.msk.bf16.gmra.mxu3 %vm77_vm0, %v275_v11 }
  0x86   :  { %v99_v12 = vpop.f32.mrf.mxu0 }
  0x87   :  { %v172_v14 = vpop.f32.mrf.mxu1 }
  0x88   :  { %v173_v15 = vadd.f32 %v172_v14, %v99_v12 }
  0x8a   :  { %v196_v16 = vadd.f32 %v288_v13, %v173_v15 }
  0x8c   :  { %204 = vst [vmem:[%s395_s5] sm:$0xff] %v196_v16  ;;  %v109_v17 = vpop.f32.mrf.mxu2 }
  0x8d   :  { %v182_v18 = vpop.f32.mrf.mxu3 }
  0x8e   :  { %v183_v19 = vadd.f32 %v182_v18, %v109_v17  ;;  %v101_v20 = vpop.f32.mrf.mxu0 }
  0x8f   :  { %v174_v21 = vpop.f32.mrf.mxu1 }
  0x90   :  { %v200_v22 = vadd.f32 %v288_v13, %v183_v19  ;;  %v175_v23 = vadd.f32 %v174_v21, %v101_v20 }
  0x92   :  { %208 = vst [vmem:[%s395_s5 + $0x20] sm:$0xff] %v200_v22  ;;  %v197_v24 = vadd.f32 %v288_v13, %v175_v23 }
  0x94   :  { %205 = vst [vmem:[%s395_s5 + $0x8] sm:$0xff] %v197_v24  ;;  %v111_v25 = vpop.f32.mrf.mxu2 }
  0x95   :  { %v184_v26 = vpop.f32.mrf.mxu3 }
  0x96   :  { %v185_v27 = vadd.f32 %v184_v26, %v111_v25  ;;  %v104_v28 = vpop.f32.mrf.mxu0 }
  0x97   :  { %v177_v29 = vpop.f32.mrf.mxu1 }
  0x98   :  { %v201_v30 = vadd.f32 %v288_v13, %v185_v27  ;;  %v178_v31 = vadd.f32 %v177_v29, %v104_v28 }
  0x9a   :  { %209 = vst [vmem:[%s395_s5 + $0x28] sm:$0xff] %v201_v30  ;;  %v198_v32 = vadd.f32 %v288_v13, %v178_v31 }
  0x9c   :  { %206 = vst [vmem:[%s395_s5 + $0x10] sm:$0xff] %v198_v32  ;;  %v114_v33 = vpop.f32.mrf.mxu2 }
  0x9d   :  { %v187_v34 = vpop.f32.mrf.mxu3 }
  0x9e   :  { %v188_v35 = vadd.f32 %v187_v34, %v114_v33  ;;  %v106_v36 = vpop.f32.mrf.mxu0 }
  0x9f   :  { %v179_v37 = vpop.f32.mrf.mxu1 }
  0xa0   :  { %v202_v38 = vadd.f32 %v288_v13, %v188_v35  ;;  %v180_v39 = vadd.f32 %v179_v37, %v106_v36 }
  0xa2   :  { %210 = vst [vmem:[%s395_s5 + $0x30] sm:$0xff] %v202_v38  ;;  %v199_v40 = vadd.f32 %v288_v13, %v180_v39 }
  0xa4   :  { %207 = vst [vmem:[%s395_s5 + $0x18] sm:$0xff] %v199_v40  ;;  %v116_v41 = vpop.f32.mrf.mxu2 }
  0xa5   :  { %v189_v42 = vpop.f32.mrf.mxu3 }
  0xa6   :  { %v190_v43 = vadd.f32 %v189_v42, %v116_v41 }
  0xa8   :  { %v203_v44 = vadd.f32 %v288_v13, %v190_v43 }
  0xaa   :  { %211 = vst [vmem:[%s395_s5 + $0x38] sm:$0xff] %v203_v44 }

// kernel: protein_lstm_forward.3
= control target key start
LH: loop header
LB: loop body
LE: loop exit
PB: predicated region body
PF: predicated region fallthrough
CT: control target
= control target key end

     0   :  { %15 = vsyncpa [#allocation9], 0  ;;  %s2376_s0 = inlined_call_operand.vmem [shape: bf16[64,16], index: 0, kind: input, shape index: {}, may-alias: {0,1}]   ;;  %s2377_s1 = inlined_call_operand.vmem [shape: bf16[64,16], index: 1, kind: input, shape index: {}, may-alias: {0,1}]   ;;  %s2378_s2 = inlined_call_operand.hbm [shape: bf16[16,128], index: 2, kind: input, shape index: {}]   ;;  %s2379_s3 = inlined_call_operand.hbm [shape: bf16[16,128], index: 3, kind: input, shape index: {}]   ;;  %s2380_s4 = inlined_call_operand.hbm [shape: f32[1,128], index: 4, kind: input, shape index: {}]   ;;  %s2381_s5 = inlined_call_operand.hbm [shape: f32[1,128], index: 5, kind: input, shape index: {}]   ;;  %s2382_s6 = inlined_call_operand.hbm [shape: bf16[32,128], index: 6, kind: input, shape index: {}]   ;;  %s2383_s7 = inlined_call_operand.vmem [shape: bf16[32,128], index: 7, kind: input, shape index: {}]   ;;  %s2384_s8 = inlined_call_operand.vmem [shape: bf16[64,32], index: 8, kind: output, shape index: {0}]   ;;  %s2385_s9 = inlined_call_operand.vmem [shape: bf16[64,32], index: 9, kind: output, shape index: {1}]  }
   0x1   :  { %16 = vsyncpa [#allocation11], 0 }
   0x2   :  { %17 = vsyncpa [#allocation14], 0  ;;  %s47_s11 = sshll.u32 %s2379_s3, 4  ;;  %s1888_s12 = smov [#allocation10]   ;;  %s48_s11 = int_to_ptr.hbm [resolvable:$true] %s47_s11 }
   0x3   :  { %s49_s13 = sshll.u32 %s1888_s12, 4  ;;  %s72_s16 = sshll.u32 %s2381_s5, 4  ;;  %s50_s13 = int_to_ptr.vmem [resolvable:$true] %s49_s13  ;;  %s73_s16 = int_to_ptr.hbm [resolvable:$true] %s72_s16 }
   0x4   :  { %s1889_s17 = smov 64   ;;  %s1890_s18 = smov 4  }
   0x5   :  { %55 = dma.hbm_to_vmem [thread:$0]  %s48_s11, 128, %s50_s13, [#allocation11], %s1889_s17, %s1889_s17, %s1890_s18  }
   0x6   :  { %s1891_s19 = smov [#allocation13]   ;;  %s34_s3 = sshll.u32 %s2378_s2, 4  ;;  %s35_s3 = int_to_ptr.hbm [resolvable:$true] %s34_s3 }
   0x7   :  { %s74_s20 = sshll.u32 %s1891_s19, 4  ;;  %s61_s25 = sshll.u32 %s2380_s4, 4  ;;  %s75_s20 = int_to_ptr.vmem [resolvable:$true] %s74_s20  ;;  %s62_s25 = int_to_ptr.hbm [resolvable:$true] %s61_s25 }
   0x8   :  { %77 = dma.hbm_to_vmem [thread:$0]  %s73_s16, 16, %s75_s20, [#allocation14]  }
   0x9   :  { %s1892_s5 = smov [#allocation8]   ;;  %s1893_s27 = smov [#allocation12]  }
   0xa   :  { %s36_s26 = sshll.u32 %s1892_s5, 4  ;;  %s63_s28 = sshll.u32 %s1893_s27, 4  ;;  %s37_s26 = int_to_ptr.vmem [resolvable:$true] %s36_s26  ;;  %s64_s28 = int_to_ptr.vmem [resolvable:$true] %s63_s28 }
   0xb   :  { %42 = dma.hbm_to_vmem [thread:$0]  %s35_s3, 128, %s37_s26, [#allocation9], %s1889_s17, %s1889_s17, %s1890_s18  }
   0xc   :  { %s82_s2 = sshll.u32 %s2382_s6, 4  ;;  %s1894_s10 = smov [#allocation15]   ;;  %s83_s2 = int_to_ptr.hbm [resolvable:$true] %s82_s2 }
   0xd   :  { %66 = dma.hbm_to_vmem [thread:$0]  %s62_s25, 16, %s64_s28, [#allocation11]  }
   0xe   :  { %s84_s11 = sshll.u32 %s1894_s10, 4  ;;  %s85_s11 = int_to_ptr.vmem [resolvable:$true] %s84_s11 }
   0xf   :  { %90 = dma.hbm_to_vmem [thread:$0]  %s83_s2, 256, %s85_s11, [#allocation14], %s1889_s17, %s1889_s17, %s1890_s18  }
  0x10   :  { %1882 = dma.done.wait [#allocation9], 128  }
  0x11   :  { %1883 = vsyncadd [#allocation9], 4294967168 }
  0x12   :  { %1884 = dma.done.wait [#allocation11], 144  }
  0x13   :  { %1885 = vsyncadd [#allocation11], 4294967152 }
  0x14   :  { %1886 = dma.done.wait [#allocation14], 272  }
  0x15   :  { %1887 = vsyncadd [#allocation14], 4294967024  ;;  %vm146_vm0 = vcmask 261120   ;;  %v1895_v0 = vmov 0.0   ;;  %v1616_v1 = vld [vmem:[#allocation10] sm:$0xff]  ;;  %v1973_v2 = vld [vmem:[#allocation15 + $0x8] sm:$0xff] }
  0x16   :  { %147 = vst.msk [vmem:[#allocation2] sm:$0xff] %vm146_vm0, %v1895_v0  ;;  %v1612_v3 = vld [vmem:[%s2377_s1] sm:$0xff]  ;;  %300 = vmatpush.bf16.msra.mxu1 %v1616_v1  ;;  %366 = vmatpush.bf16.msra.mxu2 %v1973_v2  ;;  %vm201_vm1 = vcmask 130048   ;;  %v1979_v5 = vld [vmem:[#allocation15] sm:$0xff]  ;;  %v1989_v9 = vld [vmem:[%s2383_s7 + $0x8] sm:$0xff]  ;;  %s1896_s20 = smov 32  }
  0x17   :  { %148 = vst.msk [vmem:[#allocation3] sm:$0xff] %vm146_vm0, %v1895_v0  ;;  %v1611_v4 = vld [vmem:[#allocation8] sm:$0xff]  ;;  %398 = vmatpush.bf16.msra.mxu3 %v1989_v9  ;;  %v1613_v13 = vld [vmem:[%s2377_s1 + $0x8] sm:$0xff]  ;;  %v1614_v16 = vld [vmem:[%s2377_s1 + $0x10] sm:$0xff]  ;;  %s1897_s18 = smov 96  }
  0x18   :  { %149 = vst.msk [vmem:[#allocation4] sm:$0xff] %vm146_vm0, %v1895_v0  ;;  %v1607_v7 = vld [vmem:[%s2376_s0] sm:$0xff]  ;;  %221 = vmatpush.bf16.msra.mxu0 %v1611_v4  ;;  %v1615_v17 = vld [vmem:[%s2377_s1 + $0x18] sm:$0xff]  ;;  %v1631_v18 = vld [vmem:[#allocation13] ss:$0 sm:$0xff] }
  0x19   :  { %150 = vst.msk [vmem:[#allocation5] sm:$0xff] %vm146_vm0, %v1895_v0  ;;  %1541 = vmatmul.msk.bf16.vlgmr.msra.gmra.mxu1 %vm201_vm1, %v1612_v3  ;;  %v1997_v10 = vld [vmem:[%s2383_s7] sm:$0xff]  ;;  %v2033_v21 = vld [vmem:[#allocation12] ss:$0 sm:$0xff] }
  0x1a   :  { %367 = vmatpush.bf16.msra.mxu2 %v1979_v5  ;;  %942 = vmatpush.bf16.msrb.mxu1 %v1989_v9 }
  0x1b   :  { %1517 = vmatmul.msk.bf16.vlgmr.msra.gmra.mxu0 %vm201_vm1, %v1607_v7  ;;  %399 = vmatpush.bf16.msra.mxu3 %v1997_v10 }
  0x1c   :  { %919 = vmatpush.bf16.msrb.mxu0 %v1973_v2 }
  0x1d   :  { %v338_v6 = vld [vmem:[#allocation2] sm:$0xff] }
  0x1e   :  { %v343_v8 = vpack.c.bf16 %v338_v6, %v338_v6  ;;  %517 = vmatpush.bf16.msrb.mxu2 %v1973_v2  ;;  %943 = vmatpush.bf16.msrb.mxu1 %v1997_v10  ;;  %v339_v14 = vld [vmem:[#allocation3] sm:$0xff] }
  0x1f   :  { %v340_v11 = vld [vmem:[#allocation4] sm:$0xff]  ;;  %540 = vmatpush.bf16.msrb.mxu3 %v1989_v9  ;;  %427 = vrot.lane.b32.xlu1 %v339_v14, %s1896_s20 }
  0x20   :  { %920 = vmatpush.bf16.msrb.mxu0 %v1979_v5  ;;  %1553 = vmatmul.msk.bf16.vlgmr.msra.gmra.mxu2 %vm146_vm0, %v343_v8  ;;  %v376_v12 = vpack.c.bf16 %v340_v11, %v340_v11  ;;  %v341_v15 = vld [vmem:[#allocation5] sm:$0xff] }
  0x22   :  { %518 = vmatpush.bf16.msrb.mxu2 %v1979_v5  ;;  %1562 = vmatmul.msk.bf16.vlgmr.msra.gmra.mxu3 %vm146_vm0, %v376_v12 }
  0x23   :  { %1210 = vmatpush.bf16.msra.mxu1 %v1989_v9  ;;  %541 = vmatpush.bf16.msrb.mxu3 %v1997_v10 }
  0x24   :  { %1187 = vmatpush.bf16.msra.mxu0 %v1973_v2 }
  0x26   :  { %651 = vmatpush.bf16.msra.mxu2 %v1973_v2 }
  0x27   :  { %674 = vmatpush.bf16.msra.mxu3 %v1989_v9  ;;  %1211 = vmatpush.bf16.msra.mxu1 %v1997_v10 }
  0x28   :  { %1188 = vmatpush.bf16.msra.mxu0 %v1979_v5  ;;  %468 = vrot.lane.b32.xlu1 %v341_v15, %s1896_s20 }
  0x29   :  { %1542 = vmatmul.msk.bf16.gmra.mxu1 %vm201_vm1, %v1613_v13 }
  0x2a   :  { %652 = vmatpush.bf16.msra.mxu2 %v1979_v5 }
  0x2b   :  { %675 = vmatpush.bf16.msra.mxu3 %v1997_v10 }
  0x39   :  { %1543 = vmatmul.msk.bf16.gmra.mxu1 %vm201_vm1, %v1614_v16 }
  0x49   :  { %1544 = vmatmul.msk.bf16.gmra.mxu1 %vm201_vm1, %v1615_v17 }
  0x91   :  { %v428_v16 = vpop.permute.xlu1 %427 }
  0x96   :  { %v302_v19 = vpop.f32.mrf.mxu1 }
  0x97   :  { %v2031_v20 = vadd.f32 %v1631_v18, %v302_v19 }
  0x98   :  { %v223_v22 = vpop.f32.mrf.mxu0 }
  0x99   :  { %v224_v23 = vadd.f32 %v2033_v21, %v223_v22 }
  0x9e   :  { %v304_v24 = vpop.f32.mrf.mxu1 }
  0x9f   :  { %v2036_v25 = vadd.f32 %v1631_v18, %v304_v24 }
  0xa3   :  { %v369_v26 = vpop.f32.mrf.mxu2 }
  0xa4   :  { %v373_v27 = vadd.f32 %v369_v26, %v224_v23  ;;  %v469_v23 = vpop.permute.xlu1 %468 }
  0xa5   :  { %v401_v30 = vpop.f32.mrf.mxu3 }
  0xa6   :  { %1633 = vtanh.f32 %v373_v27  ;;  %v307_v28 = vpop.f32.mrf.mxu1  ;;  %v1563_v46 = vmul.f32 -1.442695, %v373_v27 }
  0xa7   :  { %v2038_v29 = vadd.f32 %v1631_v18, %v307_v28 }
  0xab   :  { %v371_v31 = vpop.f32.mrf.mxu2 }
  0xac   :  { %v1634_v32 = vpop.eup %1633 }
  0xad   :  { %432 = vrot.lane.b32.xlu0 %v1634_v32, %s1896_s20  ;;  %v403_v35 = vpop.f32.mrf.mxu3 }
  0xae   :  { %v309_v33 = vpop.f32.mrf.mxu1 }
  0xaf   :  { %v2041_v34 = vadd.f32 %v1631_v18, %v309_v33 }
  0xb6   :  { %v312_v36 = vpop.f32.mrf.mxu1 }
  0xb7   :  { %v2043_v37 = vadd.f32 %v1631_v18, %v312_v36 }
  0xbe   :  { %v314_v38 = vpop.f32.mrf.mxu1 }
  0xbf   :  { %v2045_v39 = vadd.f32 %v1631_v18, %v314_v38 }
  0xc6   :  { %v317_v40 = vpop.f32.mrf.mxu1 }
  0xc7   :  { %v2047_v41 = vadd.f32 %v1631_v18, %v317_v40 }
  0xce   :  { %v319_v42 = vpop.f32.mrf.mxu1 }
  0xcf   :  { %v320_v43 = vadd.f32 %v1631_v18, %v319_v42 }
  0xd1   :  { %v405_v44 = vadd.f32 %v401_v30, %v320_v43 }
  0xd3   :  { %1635 = vtanh.f32 %v405_v44  ;;  %v1564_v61 = vmul.f32 -1.442695, %v405_v44 }
  0xd4   :  { %1637 = vpow2.f32 %v1563_v46  ;;  %v225_v46 = vpop.f32.mrf.mxu0 }
  0xd9   :  { %v1636_v45 = vpop.eup %1635 }
  0xda   :  { %473 = vrot.lane.b32.xlu0 %v1636_v45, %s1896_s20  ;;  %v1638_v47 = vpop.eup %1637 }
  0xdb   :  { %v409_v48 = vadd.f32 1.0, %v1638_v47  ;;  %v226_v47 = vadd.f32 %v2033_v21, %v225_v46 }
  0xdd   :  { %1639 = vrcp.f32 %v409_v48  ;;  %vm415_vm2 = vweird.f32 %v409_v48  ;;  %v421_v53 = vand.u32 2147483648, %v409_v48  ;;  %v419_v55 = vand.u32 2147483647, %v409_v48 }
  0xde   :  { %1641 = vpow2.f32 %v1564_v61 }
  0xdf   :  { %v422_v56 = vor.u32 1.1754944e-38, %v421_v53  ;;  %vm420_vm5 = vcmp.eq.f32.partialorder %v419_v55, 8.507059e+37 }
  0xe3   :  { %v1640_v49 = vpop.eup %1639 }
  0xe4   :  { %v411_v50 = vmul.f32 %v1640_v49, %v409_v48  ;;  %vm416_vm3 = vweird.f32 %v1640_v49  ;;  %v1642_v62 = vpop.eup %1641 }
  0xe5   :  { %vm417_vm4 = vmor %vm415_vm2, %vm416_vm3  ;;  %v450_v63 = vadd.f32 1.0, %v1642_v62 }
  0xe6   :  { %v412_v51 = vsub.f32 1.0, %v411_v50 }
  0xe7   :  { %1643 = vrcp.f32 %v450_v63  ;;  %v462_v7 = vand.u32 2147483648, %v450_v63  ;;  %vm456_vm7 = vweird.f32 %v450_v63  ;;  %v460_v8 = vand.u32 2147483647, %v450_v63 }
  0xe8   :  { %v413_v52 = vmul.f32 %v1640_v49, %v412_v51 }
  0xe9   :  { %v463_v12 = vor.u32 1.1754944e-38, %v462_v7  ;;  %vm461_vm9 = vcmp.eq.f32.partialorder %v460_v8, 8.507059e+37 }
  0xea   :  { %v414_v54 = vadd.f32 %v1640_v49, %v413_v52 }
  0xec   :  { %v418_v57 = vsel %vm417_vm4, %v1640_v49, %v414_v54 }
  0xed   :  { %v423_v58 = vsel %vm420_vm5, %v422_v56, %v418_v57  ;;  %v1644_v0 = vpop.eup %1643 }
  0xee   :  { %v452_v1 = vmul.f32 %v1644_v0, %v450_v63  ;;  %vm457_vm6 = vweird.f32 %v1644_v0  ;;  %v430_v17 = vmul.f32 %v428_v16, %v423_v58 }
  0xef   :  { %vm458_vm8 = vmor %vm456_vm7, %vm457_vm6 }
  0xf0   :  { %v453_v3 = vsub.f32 1.0, %v452_v1 }
  0xf2   :  { %v454_v4 = vmul.f32 %v1644_v0, %v453_v3 }
  0xf4   :  { %v455_v6 = vadd.f32 %v1644_v0, %v454_v4 }
  0xf6   :  { %v459_v11 = vsel %vm458_vm8, %v1644_v0, %v455_v6 }
  0xf7   :  { %v464_v13 = vsel %vm461_vm9, %v463_v12, %v459_v11 }
  0xf8   :  { %v471_v24 = vmul.f32 %v469_v23, %v464_v13 }
 0x11f   :  { %v433_v59 = vpop.permute.xlu0 %432 }
 0x120   :  { %v435_v60 = vmul.f32 %v433_v59, %v423_v58 }
 0x122   :  { %437 = vrot.lane.b32.xlu2 %v435_v60, %s1896_s20 }
 0x14c   :  { %v474_v14 = vpop.permute.xlu0 %473 }
 0x14d   :  { %v476_v15 = vmul.f32 %v474_v14, %v464_v13 }
 0x14f   :  { %478 = vrot.lane.b32.xlu2 %v476_v15, %s1896_s20 }
 0x17c   :  { %v438_v18 = vpop.permute.xlu2 %437 }
 0x17d   :  { %v2052_v19 = vadd.f32 %v438_v18, %v430_v17 }
 0x17f   :  { %1645 = vtanh.f32 %v2052_v19 }
 0x185   :  { %v1646_v22 = vpop.eup %1645 }
 0x186   :  { %443 = vrot.lane.b32.xlu0 %v1646_v22, %s1896_s20 }
 0x1a9   :  { %v479_v26 = vpop.permute.xlu2 %478 }
 0x1aa   :  { %v2056_v27 = vadd.f32 %v479_v26, %v471_v24 }
 0x1ac   :  { %1647 = vtanh.f32 %v2056_v27 }
 0x1b2   :  { %v1648_v28 = vpop.eup %1647 }
 0x1b3   :  { %484 = vrot.lane.b32.xlu1 %v1648_v28, %s1896_s20 }
 0x1f8   :  { %v444_v30 = vpop.permute.xlu0 %443 }
 0x1f9   :  { %v446_v31 = vmul.f32 %v444_v30, %v423_v58 }
 0x1fb   :  { %v2060_v32 = vpack.c.bf16 %v446_v31, %v446_v31 }
 0x1fd   :  { %v504_v33 = vunpack.c.l.b16 %v2060_v32 }
 0x1ff   :  { %v505_v35 = vpack.c.b16 %v504_v33, %v504_v33 }
 0x201   :  { %506 = vrot.lane.b32.xlu2 %v505_v35, %s1889_s17 }
 0x225   :  { %v485_v36 = vpop.permute.xlu1 %484 }
 0x226   :  { %v487_v38 = vmul.f32 %v485_v36, %v464_v13 }
 0x228   :  { %v2064_v40 = vpack.c.bf16 %v487_v38, %v487_v38 }
 0x22a   :  { %v527_v42 = vunpack.c.l.b16 %v2064_v40 }
 0x22c   :  { %v528_v43 = vpack.c.b16 %v527_v42, %v527_v42 }
 0x22e   :  { %529 = vrot.lane.b32.xlu0 %v528_v43, %s1889_s17 }
 0x25b   :  { %v507_v44 = vpop.permute.xlu2 %506 }
 0x25c   :  { %1566 = vmatmul.msk.bf16.vlgmr.msrb.gmra.mxu2 %vm146_vm0, %v507_v44 }
 0x25d   :  { %785 = vmatpush.bf16.msrb.mxu2 %v1973_v2 }
 0x261   :  { %786 = vmatpush.bf16.msrb.mxu2 %v1979_v5 }
 0x2a0   :  { %v530_v45 = vpop.permute.xlu0 %529 }
 0x2a1   :  { %1567 = vmatmul.msk.bf16.vlgmr.msrb.gmra.mxu3 %vm146_vm0, %v530_v45 }
 0x2a2   :  { %808 = vmatpush.bf16.msrb.mxu3 %v1989_v9 }
 0x2a6   :  { %809 = vmatpush.bf16.msrb.mxu3 %v1997_v10 }
 0x2df   :  { %v520_v48 = vpop.f32.mrf.mxu2 }
 0x2e0   :  { %v524_v49 = vadd.f32 %v520_v48, %v226_v47 }
 0x2e2   :  { %1649 = vtanh.f32 %v524_v49  ;;  %v1568_v54 = vmul.f32 -1.442695, %v524_v49 }
 0x2e7   :  { %v522_v50 = vpop.f32.mrf.mxu2 }
 0x2e8   :  { %v1650_v51 = vpop.eup %1649 }
 0x2e9   :  { %570 = vrot.lane.b32.xlu1 %v1650_v51, %s1896_s20 }
 0x324   :  { %v543_v52 = vpop.f32.mrf.mxu3 }
 0x325   :  { %v547_v53 = vadd.f32 %v543_v52, %v2047_v41 }
 0x327   :  { %1651 = vtanh.f32 %v547_v53  ;;  %v1569_v8 = vmul.f32 -1.442695, %v547_v53  ;;  %v1608_v53 = vld [vmem:[%s2376_s0 + $0x8] sm:$0xff] }
 0x328   :  { %1653 = vpow2.f32 %v1568_v54  ;;  %1518 = vmatmul.msk.bf16.gmra.mxu0 %vm201_vm1, %v1608_v53 }
 0x32c   :  { %v545_v55 = vpop.f32.mrf.mxu3 }
 0x32d   :  { %v1652_v56 = vpop.eup %1651 }
 0x32e   :  { %607 = vrot.lane.b32.xlu2 %v1652_v56, %s1896_s20  ;;  %v1654_v57 = vpop.eup %1653 }
 0x32f   :  { %v551_v58 = vadd.f32 1.0, %v1654_v57 }
 0x331   :  { %1655 = vrcp.f32 %v551_v58  ;;  %v563_v0 = vand.u32 2147483648, %v551_v58  ;;  %vm557_vm11 = vweird.f32 %v551_v58  ;;  %v561_v1 = vand.u32 2147483647, %v551_v58 }
 0x332   :  { %1657 = vpow2.f32 %v1569_v8 }
 0x333   :  { %v564_v3 = vor.u32 1.1754944e-38, %v563_v0  ;;  %vm562_vm13 = vcmp.eq.f32.partialorder %v561_v1, 8.507059e+37 }
 0x337   :  { %v1656_v59 = vpop.eup %1655 }
 0x338   :  { %v553_v60 = vmul.f32 %v1656_v59, %v551_v58  ;;  %vm558_vm10 = vweird.f32 %v1656_v59  ;;  %v1658_v11 = vpop.eup %1657 }
 0x339   :  { %vm559_vm12 = vmor %vm557_vm11, %vm558_vm10  ;;  %v588_v12 = vadd.f32 1.0, %v1658_v11 }
 0x33a   :  { %v554_v61 = vsub.f32 1.0, %v553_v60 }
 0x33b   :  { %1659 = vrcp.f32 %v588_v12  ;;  %v600_v18 = vand.u32 2147483648, %v588_v12  ;;  %vm594_vm15 = vweird.f32 %v588_v12  ;;  %v598_v22 = vand.u32 2147483647, %v588_v12 }
 0x33c   :  { %v555_v62 = vmul.f32 %v1656_v59, %v554_v61 }
 0x33d   :  { %v601_v24 = vor.u32 1.1754944e-38, %v600_v18  ;;  %vm599_vm3 = vcmp.eq.f32.partialorder %v598_v22, 8.507059e+37 }
 0x33e   :  { %v556_v63 = vadd.f32 %v1656_v59, %v555_v62 }
 0x340   :  { %v560_v41 = vsel %vm559_vm12, %v1656_v59, %v556_v63 }
 0x341   :  { %v565_v6 = vsel %vm562_vm13, %v564_v3, %v560_v41  ;;  %v1660_v13 = vpop.eup %1659 }
 0x342   :  { %v590_v14 = vmul.f32 %v1660_v13, %v588_v12  ;;  %vm595_vm14 = vweird.f32 %v1660_v13  ;;  %v568_v31 = vmul.f32 %v565_v6, %v2052_v19 }
 0x343   :  { %vm596_vm2 = vmor %vm594_vm15, %vm595_vm14 }
 0x344   :  { %v591_v15 = vsub.f32 1.0, %v590_v14 }
 0x346   :  { %v592_v16 = vmul.f32 %v1660_v13, %v591_v15 }
 0x348   :  { %v593_v17 = vadd.f32 %v1660_v13, %v592_v16 }
 0x34a   :  { %v597_v23 = vsel %vm596_vm2, %v1660_v13, %v593_v17 }
 0x34b   :  { %v602_v28 = vsel %vm599_vm3, %v601_v24, %v597_v23 }
 0x34c   :  { %v605_v38 = vmul.f32 %v602_v28, %v2056_v27 }
 0x35b   :  { %v571_v4 = vpop.permute.xlu1 %570 }
 0x35c   :  { %v573_v7 = vmul.f32 %v571_v4, %v565_v6 }
 0x35e   :  { %575 = vrot.lane.b32.xlu0 %v573_v7, %s1896_s20 }
 0x388   :  { %v608_v26 = vpop.permute.xlu2 %607 }
 0x389   :  { %v610_v30 = vmul.f32 %v608_v26, %v602_v28 }
 0x38b   :  { %612 = vrot.lane.b32.xlu1 %v610_v30, %s1896_s20 }
 0x3a5   :  { %v228_v56 = vpop.f32.mrf.mxu0 }
 0x3a6   :  { %v229_v57 = vadd.f32 %v2033_v21, %v228_v56 }
 0x3d0   :  { %v576_v33 = vpop.permute.xlu0 %575 }
 0x3d1   :  { %v2081_v35 = vadd.f32 %v576_v33, %v568_v31 }
 0x3d3   :  { %1661 = vtanh.f32 %v2081_v35 }
 0x3d9   :  { %v1662_v36 = vpop.eup %1661 }
 0x3da   :  { %581 = vrot.lane.b32.xlu2 %v1662_v36, %s1896_s20 }
 0x3fd   :  { %v613_v42 = vpop.permute.xlu1 %612 }
 0x3fe   :  { %v2086_v43 = vadd.f32 %v613_v42, %v605_v38 }
 0x400   :  { %1663 = vtanh.f32 %v2086_v43 }
 0x406   :  { %v1664_v44 = vpop.eup %1663 }
 0x407   :  { %618 = vrot.lane.b32.xlu0 %v1664_v44, %s1896_s20 }
 0x434   :  { %v582_v45 = vpop.permute.xlu2 %581 }
 0x435   :  { %v584_v19 = vmul.f32 %v582_v45, %v565_v6 }
 0x437   :  { %v2090_v46 = vpack.c.bf16 %v584_v19, %v584_v19 }
 0x439   :  { %v638_v47 = vunpack.c.l.b16 %v2090_v46 }
 0x43b   :  { %v639_v48 = vpack.c.b16 %v638_v47, %v638_v47 }
 0x43d   :  { %640 = vrot.lane.b32.xlu1 %v639_v48, %s1889_s17 }
 0x479   :  { %v619_v49 = vpop.permute.xlu0 %618 }
 0x47a   :  { %v621_v50 = vmul.f32 %v619_v49, %v602_v28 }
 0x47c   :  { %v2094_v27 = vpack.c.bf16 %v621_v50, %v621_v50 }
 0x47e   :  { %v661_v51 = vunpack.c.l.b16 %v2094_v27 }
 0x480   :  { %v662_v52 = vpack.c.b16 %v661_v51, %v661_v51 }
 0x482   :  { %663 = vrot.lane.b32.xlu2 %v662_v52, %s1889_s17 }
 0x4af   :  { %v641_v54 = vpop.permute.xlu1 %640 }
 0x4b0   :  { %1572 = vmatmul.msk.bf16.vlgmr.msra.gmra.mxu2 %vm146_vm0, %v641_v54 }
 0x4b1   :  { %1053 = vmatpush.bf16.msra.mxu2 %v1973_v2 }
 0x4b5   :  { %1054 = vmatpush.bf16.msra.mxu2 %v1979_v5 }
 0x4dc   :  { %v664_v55 = vpop.permute.xlu2 %663 }
 0x4dd   :  { %1573 = vmatmul.msk.bf16.vlgmr.msra.gmra.mxu3 %vm146_vm0, %v664_v55 }
 0x4de   :  { %1076 = vmatpush.bf16.msra.mxu3 %v1989_v9 }
 0x4e2   :  { %1077 = vmatpush.bf16.msra.mxu3 %v1997_v10 }
 0x533   :  { %v654_v58 = vpop.f32.mrf.mxu2 }
 0x534   :  { %v658_v59 = vadd.f32 %v654_v58, %v229_v57 }
 0x536   :  { %1665 = vtanh.f32 %v658_v59  ;;  %v1574_v41 = vmul.f32 -1.442695, %v658_v59 }
 0x53b   :  { %v656_v60 = vpop.f32.mrf.mxu2 }
 0x53c   :  { %v1666_v61 = vpop.eup %1665 }
 0x53d   :  { %704 = vrot.lane.b32.xlu0 %v1666_v61, %s1896_s20 }
 0x560   :  { %v677_v62 = vpop.f32.mrf.mxu3 }
 0x561   :  { %v681_v63 = vadd.f32 %v677_v62, %v2045_v39 }
 0x563   :  { %1667 = vtanh.f32 %v681_v63  ;;  %v1575_v22 = vmul.f32 -1.442695, %v681_v63 }
 0x564   :  { %1669 = vpow2.f32 %v1574_v41  ;;  %v230_v41 = vpop.f32.mrf.mxu0 }
 0x568   :  { %v679_v0 = vpop.f32.mrf.mxu3 }
 0x569   :  { %v1668_v1 = vpop.eup %1667 }
 0x56a   :  { %741 = vrot.lane.b32.xlu1 %v1668_v1, %s1896_s20  ;;  %v1670_v3 = vpop.eup %1669 }
 0x56b   :  { %v685_v4 = vadd.f32 1.0, %v1670_v3  ;;  %v231_v3 = vadd.f32 %v2033_v21, %v230_v41 }
 0x56d   :  { %1671 = vrcp.f32 %v685_v4  ;;  %v697_v13 = vand.u32 2147483648, %v685_v4  ;;  %vm691_vm5 = vweird.f32 %v685_v4  ;;  %v695_v14 = vand.u32 2147483647, %v685_v4 }
 0x56e   :  { %1673 = vpow2.f32 %v1575_v22 }
 0x56f   :  { %v698_v15 = vor.u32 1.1754944e-38, %v697_v13  ;;  %vm696_vm7 = vcmp.eq.f32.partialorder %v695_v14, 8.507059e+37 }
 0x573   :  { %v1672_v6 = vpop.eup %1671 }
 0x574   :  { %v687_v7 = vmul.f32 %v1672_v6, %v685_v4  ;;  %vm692_vm4 = vweird.f32 %v1672_v6  ;;  %v1674_v23 = vpop.eup %1673 }
 0x575   :  { %vm693_vm6 = vmor %vm691_vm5, %vm692_vm4  ;;  %v722_v24 = vadd.f32 1.0, %v1674_v23 }
 0x576   :  { %v688_v8 = vsub.f32 1.0, %v687_v7 }
 0x577   :  { %1675 = vrcp.f32 %v722_v24  ;;  %v734_v36 = vand.u32 2147483648, %v722_v24  ;;  %vm728_vm9 = vweird.f32 %v722_v24  ;;  %v732_v38 = vand.u32 2147483647, %v722_v24 }
 0x578   :  { %v689_v11 = vmul.f32 %v1672_v6, %v688_v8 }
 0x579   :  { %v735_v44 = vor.u32 1.1754944e-38, %v734_v36  ;;  %vm733_vm11 = vcmp.eq.f32.partialorder %v732_v38, 8.507059e+37 }
 0x57a   :  { %v690_v12 = vadd.f32 %v1672_v6, %v689_v11 }
 0x57c   :  { %v694_v39 = vsel %vm693_vm6, %v1672_v6, %v690_v12 }
 0x57d   :  { %v699_v17 = vsel %vm696_vm7, %v698_v15, %v694_v39  ;;  %v1676_v26 = vpop.eup %1675 }
 0x57e   :  { %v724_v28 = vmul.f32 %v1676_v26, %v722_v24  ;;  %vm729_vm8 = vweird.f32 %v1676_v26  ;;  %v702_v48 = vmul.f32 %v699_v17, %v2081_v35 }
 0x57f   :  { %vm730_vm10 = vmor %vm728_vm9, %vm729_vm8 }
 0x580   :  { %v725_v30 = vsub.f32 1.0, %v724_v28 }
 0x582   :  { %v726_v31 = vmul.f32 %v1676_v26, %v725_v30 }
 0x584   :  { %v727_v33 = vadd.f32 %v1676_v26, %v726_v31 }
 0x586   :  { %v731_v42 = vsel %vm730_vm10, %v1676_v26, %v727_v33 }
 0x587   :  { %v736_v19 = vsel %vm733_vm11, %v735_v44, %v731_v42 }
 0x588   :  { %v739_v52 = vmul.f32 %v736_v19, %v2086_v43 }
 0x5af   :  { %v705_v16 = vpop.permute.xlu0 %704 }
 0x5b0   :  { %v707_v18 = vmul.f32 %v705_v16, %v699_v17 }
 0x5b2   :  { %709 = vrot.lane.b32.xlu2 %v707_v18, %s1896_s20 }
 0x5dc   :  { %v742_v45 = vpop.permute.xlu1 %741 }
 0x5dd   :  { %v744_v47 = vmul.f32 %v742_v45, %v736_v19 }
 0x5df   :  { %746 = vrot.lane.b32.xlu0 %v744_v47, %s1896_s20 }
 0x60c   :  { %v710_v49 = vpop.permute.xlu2 %709 }
 0x60d   :  { %v2115_v50 = vadd.f32 %v710_v49, %v702_v48 }
 0x60f   :  { %1677 = vtanh.f32 %v2115_v50 }
 0x615   :  { %v1678_v51 = vpop.eup %1677 }
 0x616   :  { %715 = vrot.lane.b32.xlu1 %v1678_v51, %s1896_s20 }
 0x651   :  { %v747_v53 = vpop.permute.xlu0 %746 }
 0x652   :  { %v2120_v54 = vadd.f32 %v747_v53, %v739_v52 }
 0x654   :  { %1679 = vtanh.f32 %v2120_v54 }
 0x65a   :  { %v1680_v55 = vpop.eup %1679 }
 0x65b   :  { %752 = vrot.lane.b32.xlu2 %v1680_v55, %s1896_s20 }
 0x688   :  { %v716_v56 = vpop.permute.xlu1 %715 }
 0x689   :  { %v718_v35 = vmul.f32 %v716_v56, %v699_v17 }
 0x68b   :  { %v2124_v57 = vpack.c.bf16 %v718_v35, %v718_v35 }
 0x68d   :  { %v772_v58 = vunpack.c.l.b16 %v2124_v57 }
 0x68f   :  { %v773_v59 = vpack.c.b16 %v772_v58, %v772_v58 }
 0x691   :  { %774 = vrot.lane.b32.xlu0 %v773_v59, %s1889_s17 }
 0x6b5   :  { %v753_v60 = vpop.permute.xlu2 %752 }
 0x6b6   :  { %v755_v61 = vmul.f32 %v753_v60, %v736_v19 }
 0x6b8   :  { %v2128_v43 = vpack.c.bf16 %v755_v61, %v755_v61 }
 0x6ba   :  { %v795_v62 = vunpack.c.l.b16 %v2128_v43 }
 0x6bc   :  { %v796_v63 = vpack.c.b16 %v795_v62, %v795_v62 }
 0x6be   :  { %797 = vrot.lane.b32.xlu1 %v796_v63, %s1889_s17 }
 0x703   :  { %v775_v0 = vpop.permute.xlu0 %774 }
 0x704   :  { %1578 = vmatmul.msk.bf16.vlgmr.msrb.gmra.mxu2 %vm146_vm0, %v775_v0 }
 0x705   :  { %1321 = vmatpush.bf16.msrb.mxu2 %v1973_v2 }
 0x709   :  { %1322 = vmatpush.bf16.msrb.mxu2 %v1979_v5 }
 0x730   :  { %v798_v1 = vpop.permute.xlu1 %797 }
 0x731   :  { %1579 = vmatmul.msk.bf16.vlgmr.msrb.gmra.mxu3 %vm146_vm0, %v798_v1 }
 0x732   :  { %1343 = vmatpush.bf16.msrb.mxu3 %v1989_v9 }
 0x736   :  { %1344 = vmatpush.bf16.msrb.mxu3 %v1997_v10 }
 0x787   :  { %v788_v4 = vpop.f32.mrf.mxu2 }
 0x788   :  { %v792_v6 = vadd.f32 %v788_v4, %v231_v3  ;;  %v1610_v3 = vld [vmem:[%s2376_s0 + $0x18] sm:$0xff] }
 0x78a   :  { %1681 = vtanh.f32 %v792_v6  ;;  %v1580_v11 = vmul.f32 -1.442695, %v792_v6 }
 0x78f   :  { %v790_v7 = vpop.f32.mrf.mxu2 }
 0x790   :  { %v1682_v8 = vpop.eup %1681 }
 0x791   :  { %838 = vrot.lane.b32.xlu2 %v1682_v8, %s1896_s20 }
 0x7b4   :  { %v811_v2 = vpop.f32.mrf.mxu3 }
 0x7b5   :  { %v815_v5 = vadd.f32 %v811_v2, %v2043_v37 }
 0x7b7   :  { %1683 = vtanh.f32 %v815_v5  ;;  %v1581_v30 = vmul.f32 -1.442695, %v815_v5 }
 0x7b8   :  { %1685 = vpow2.f32 %v1580_v11 }
 0x7bc   :  { %v813_v12 = vpop.f32.mrf.mxu3 }
 0x7bd   :  { %v1684_v13 = vpop.eup %1683 }
 0x7be   :  { %875 = vrot.lane.b32.xlu0 %v1684_v13, %s1896_s20  ;;  %v1686_v9 = vpop.eup %1685 }
 0x7bf   :  { %v819_v10 = vadd.f32 1.0, %v1686_v9 }
 0x7c1   :  { %1687 = vrcp.f32 %v819_v10  ;;  %v831_v18 = vand.u32 2147483648, %v819_v10  ;;  %vm825_vm13 = vweird.f32 %v819_v10  ;;  %v829_v22 = vand.u32 2147483647, %v819_v10 }
 0x7c2   :  { %1689 = vpow2.f32 %v1581_v30 }
 0x7c3   :  { %v832_v23 = vor.u32 1.1754944e-38, %v831_v18  ;;  %vm830_vm15 = vcmp.eq.f32.partialorder %v829_v22, 8.507059e+37 }
 0x7c7   :  { %v1688_v14 = vpop.eup %1687 }
 0x7c8   :  { %v821_v39 = vmul.f32 %v1688_v14, %v819_v10  ;;  %vm826_vm12 = vweird.f32 %v1688_v14  ;;  %v1690_v31 = vpop.eup %1689 }
 0x7c9   :  { %vm827_vm14 = vmor %vm825_vm13, %vm826_vm12  ;;  %v856_v33 = vadd.f32 1.0, %v1690_v31 }
 0x7ca   :  { %v822_v15 = vsub.f32 1.0, %v821_v39 }
 0x7cb   :  { %1691 = vrcp.f32 %v856_v33  ;;  %v868_v19 = vand.u32 2147483648, %v856_v33  ;;  %vm862_vm3 = vweird.f32 %v856_v33  ;;  %v866_v47 = vand.u32 2147483647, %v856_v33 }
 0x7cc   :  { %v823_v16 = vmul.f32 %v1688_v14, %v822_v15 }
 0x7cd   :  { %v869_v49 = vor.u32 1.1754944e-38, %v868_v19  ;;  %vm867_vm5 = vcmp.eq.f32.partialorder %v866_v47, 8.507059e+37 }
 0x7ce   :  { %v824_v17 = vadd.f32 %v1688_v14, %v823_v16 }
 0x7d0   :  { %v828_v37 = vsel %vm827_vm14, %v1688_v14, %v824_v17 }
 0x7d1   :  { %v833_v26 = vsel %vm830_vm15, %v832_v23, %v828_v37  ;;  %v1692_v36 = vpop.eup %1691 }
 0x7d2   :  { %v858_v38 = vmul.f32 %v1692_v36, %v856_v33  ;;  %vm863_vm2 = vweird.f32 %v1692_v36  ;;  %v836_v55 = vmul.f32 %v833_v26, %v2115_v50 }
 0x7d3   :  { %vm864_vm4 = vmor %vm862_vm3, %vm863_vm2 }
 0x7d4   :  { %v859_v42 = vsub.f32 1.0, %v858_v38 }
 0x7d6   :  { %v860_v44 = vmul.f32 %v1692_v36, %v859_v42 }
 0x7d8   :  { %v861_v45 = vadd.f32 %v1692_v36, %v860_v44 }
 0x7da   :  { %v865_v48 = vsel %vm864_vm4, %v1692_v36, %v861_v45 }
 0x7db   :  { %v870_v52 = vsel %vm867_vm5, %v869_v49, %v865_v48 }
 0x7dc   :  { %v873_v59 = vmul.f32 %v870_v52, %v2120_v54  ;;  %v1609_v54 = vld [vmem:[%s2376_s0 + $0x10] sm:$0xff] }
 0x7dd   :  { %1519 = vmatmul.msk.bf16.gmra.mxu0 %vm201_vm1, %v1609_v54 }
 0x7eb   :  { %v839_v24 = vpop.permute.xlu2 %838 }
 0x7ec   :  { %v841_v28 = vmul.f32 %v839_v24, %v833_v26 }
 0x7ed   :  { %1520 = vmatmul.msk.bf16.gmra.mxu0 %vm201_vm1, %v1610_v3 }
 0x7ee   :  { %843 = vrot.lane.b32.xlu1 %v841_v28, %s1896_s20 }
 0x830   :  { %v876_v51 = vpop.permute.xlu0 %875 }
 0x831   :  { %v878_v53 = vmul.f32 %v876_v51, %v870_v52 }
 0x833   :  { %880 = vrot.lane.b32.xlu2 %v878_v53, %s1896_s20 }
 0x85a   :  { %v233_v12 = vpop.f32.mrf.mxu0 }
 0x85b   :  { %v234_v14 = vadd.f32 %v2033_v21, %v233_v12 }
 0x860   :  { %v844_v56 = vpop.permute.xlu1 %843 }
 0x861   :  { %v2145_v35 = vadd.f32 %v844_v56, %v836_v55 }
 0x862   :  { %v2172_v13 = vpop.f32.mrf.mxu0 }
 0x863   :  { %1693 = vtanh.f32 %v2145_v35 }
 0x869   :  { %v1694_v58 = vpop.eup %1693 }
 0x86a   :  { %849 = vrot.lane.b32.xlu0 %v1694_v58, %s1896_s20  ;;  %v2174_v9 = vpop.f32.mrf.mxu0 }
 0x872   :  { %v2176_v10 = vpop.f32.mrf.mxu0 }
 0x88d   :  { %v881_v60 = vpop.permute.xlu2 %880 }
 0x88e   :  { %v2150_v61 = vadd.f32 %v881_v60, %v873_v59 }
 0x890   :  { %1695 = vtanh.f32 %v2150_v61 }
 0x896   :  { %v1696_v62 = vpop.eup %1695 }
 0x897   :  { %886 = vrot.lane.b32.xlu1 %v1696_v62, %s1896_s20 }
 0x8dc   :  { %v850_v63 = vpop.permute.xlu0 %849 }
 0x8dd   :  { %v852_v50 = vmul.f32 %v850_v63, %v833_v26 }
 0x8df   :  { %v2154_v0 = vpack.c.bf16 %v852_v50, %v852_v50 }
 0x8e1   :  { %v906_v1 = vunpack.c.l.b16 %v2154_v0 }
 0x8e3   :  { %v907_v41 = vpack.c.b16 %v906_v1, %v906_v1 }
 0x8e5   :  { %908 = vrot.lane.b32.xlu2 %v907_v41, %s1889_s17 }
 0x909   :  { %v887_v4 = vpop.permute.xlu1 %886 }
 0x90a   :  { %v889_v6 = vmul.f32 %v887_v4, %v870_v52 }
 0x90c   :  { %v2166_v7 = vpack.c.bf16 %v889_v6, %v889_v6 }
 0x90e   :  { %v929_v8 = vunpack.c.l.b16 %v2166_v7 }
 0x910   :  { %v930_v2 = vpack.c.b16 %v929_v8, %v929_v8 }
 0x912   :  { %931 = vrot.lane.b32.xlu0 %v930_v2, %s1889_s17 }
 0x93f   :  { %v909_v5 = vpop.permute.xlu2 %908 }
 0x940   :  { %1584 = vmatmul.msk.bf16.vlgmr.msrb.gmra.mxu0 %vm146_vm0, %v909_v5 }
 0x984   :  { %v932_v11 = vpop.permute.xlu0 %931 }
 0x985   :  { %1585 = vmatmul.msk.bf16.vlgmr.msrb.gmra.mxu1 %vm146_vm0, %v932_v11 }
 0x9bd   :  { %v922_v39 = vpop.f32.mrf.mxu0 }
 0x9be   :  { %v926_v15 = vadd.f32 %v922_v39, %v234_v14 }
 0x9c0   :  { %1697 = vtanh.f32 %v926_v15  ;;  %v1586_v37 = vmul.f32 -1.442695, %v926_v15 }
 0x9c5   :  { %v924_v16 = vpop.f32.mrf.mxu0 }
 0x9c6   :  { %v1698_v17 = vpop.eup %1697 }
 0x9c7   :  { %972 = vrot.lane.b32.xlu1 %v1698_v17, %s1896_s20 }
 0xa02   :  { %v945_v18 = vpop.f32.mrf.mxu1 }
 0xa03   :  { %v949_v22 = vadd.f32 %v945_v18, %v2041_v34 }
 0xa05   :  { %1699 = vtanh.f32 %v949_v22  ;;  %v1587_v49 = vmul.f32 -1.442695, %v949_v22 }
 0xa06   :  { %1701 = vpow2.f32 %v1586_v37 }
 0xa0a   :  { %v947_v23 = vpop.f32.mrf.mxu1 }
 0xa0b   :  { %v1700_v24 = vpop.eup %1699 }
 0xa0c   :  { %1009 = vrot.lane.b32.xlu2 %v1700_v24, %s1896_s20  ;;  %v1702_v26 = vpop.eup %1701 }
 0xa0d   :  { %v953_v28 = vadd.f32 1.0, %v1702_v26  ;;  %v236_v26 = vadd.f32 %v2033_v21, %v2172_v13 }
 0xa0f   :  { %1703 = vrcp.f32 %v953_v28  ;;  %v965_v42 = vand.u32 2147483648, %v953_v28  ;;  %vm959_vm6 = vweird.f32 %v953_v28  ;;  %v963_v44 = vand.u32 2147483647, %v953_v28 }
 0xa10   :  { %1705 = vpow2.f32 %v1587_v49 }
 0xa11   :  { %v966_v45 = vor.u32 1.1754944e-38, %v965_v42  ;;  %vm964_vm8 = vcmp.eq.f32.partialorder %v963_v44, 8.507059e+37 }
 0xa15   :  { %v1704_v30 = vpop.eup %1703 }
 0xa16   :  { %v955_v31 = vmul.f32 %v1704_v30, %v953_v28  ;;  %vm960_vm1 = vweird.f32 %v1704_v30  ;;  %v1706_v51 = vpop.eup %1705 }
 0xa17   :  { %vm961_vm7 = vmor %vm959_vm6, %vm960_vm1  ;;  %v990_v52 = vadd.f32 1.0, %v1706_v51 }
 0xa18   :  { %v956_v33 = vsub.f32 1.0, %v955_v31 }
 0xa19   :  { %1707 = vrcp.f32 %v990_v52  ;;  %v1002_v60 = vand.u32 2147483648, %v990_v52  ;;  %vm996_vm10 = vweird.f32 %v990_v52  ;;  %v1000_v62 = vand.u32 2147483647, %v990_v52 }
 0xa1a   :  { %v957_v36 = vmul.f32 %v1704_v30, %v956_v33 }
 0xa1b   :  { %v1003_v50 = vor.u32 1.1754944e-38, %v1002_v60  ;;  %vm1001_vm12 = vcmp.eq.f32.partialorder %v1000_v62, 8.507059e+37 }
 0xa1c   :  { %v958_v38 = vadd.f32 %v1704_v30, %v957_v36 }
 0xa1e   :  { %v962_v34 = vsel %vm961_vm7, %v1704_v30, %v958_v38 }
 0xa1f   :  { %v967_v47 = vsel %vm964_vm8, %v966_v45, %v962_v34  ;;  %v1708_v53 = vpop.eup %1707 }
 0xa20   :  { %v992_v55 = vmul.f32 %v1708_v53, %v990_v52  ;;  %vm997_vm9 = vweird.f32 %v1708_v53  ;;  %v970_v3 = vmul.f32 %v967_v47, %v2145_v35 }
 0xa21   :  { %vm998_vm11 = vmor %vm996_vm10, %vm997_vm9 }
 0xa22   :  { %v993_v56 = vsub.f32 1.0, %v992_v55 }
 0xa24   :  { %v994_v58 = vmul.f32 %v1708_v53, %v993_v56 }
 0xa26   :  { %v995_v59 = vadd.f32 %v1708_v53, %v994_v58 }
 0xa28   :  { %v999_v63 = vsel %vm998_vm11, %v1708_v53, %v995_v59 }
 0xa29   :  { %v1004_v41 = vsel %vm1001_vm12, %v1003_v50, %v999_v63 }
 0xa2a   :  { %v1007_v2 = vmul.f32 %v1004_v41, %v2150_v61 }
 0xa39   :  { %v973_v19 = vpop.permute.xlu1 %972 }
 0xa3a   :  { %v975_v48 = vmul.f32 %v973_v19, %v967_v47 }
 0xa3c   :  { %977 = vrot.lane.b32.xlu0 %v975_v48, %s1896_s20 }
 0xa66   :  { %v1010_v1 = vpop.permute.xlu2 %1009 }
 0xa67   :  { %v1012_v54 = vmul.f32 %v1010_v1, %v1004_v41 }
 0xa69   :  { %1014 = vrot.lane.b32.xlu1 %v1012_v54, %s1896_s20 }
 0xaae   :  { %v978_v4 = vpop.permute.xlu0 %977 }
 0xaaf   :  { %v2185_v6 = vadd.f32 %v978_v4, %v970_v3 }
 0xab1   :  { %1709 = vtanh.f32 %v2185_v6 }
 0xab7   :  { %v1710_v8 = vpop.eup %1709 }
 0xab8   :  { %983 = vrot.lane.b32.xlu2 %v1710_v8, %s1896_s20 }
 0xadb   :  { %v1015_v5 = vpop.permute.xlu1 %1014 }
 0xadc   :  { %v2190_v11 = vadd.f32 %v1015_v5, %v1007_v2 }
 0xade   :  { %1711 = vtanh.f32 %v2190_v11 }
 0xae4   :  { %v1712_v12 = vpop.eup %1711 }
 0xae5   :  { %1020 = vrot.lane.b32.xlu0 %v1712_v12, %s1896_s20 }
 0xb12   :  { %v984_v14 = vpop.permute.xlu2 %983 }
 0xb13   :  { %v986_v35 = vmul.f32 %v984_v14, %v967_v47 }
 0xb15   :  { %v2194_v39 = vpack.c.bf16 %v986_v35, %v986_v35 }
 0xb17   :  { %v1040_v15 = vunpack.c.l.b16 %v2194_v39 }
 0xb19   :  { %v1041_v16 = vpack.c.b16 %v1040_v15, %v1040_v15 }
 0xb1b   :  { %1042 = vrot.lane.b32.xlu1 %v1041_v16, %s1889_s17 }
 0xb57   :  { %v1021_v17 = vpop.permute.xlu0 %1020 }
 0xb58   :  { %v1023_v18 = vmul.f32 %v1021_v17, %v1004_v41 }
 0xb5a   :  { %v2198_v61 = vpack.c.bf16 %v1023_v18, %v1023_v18 }
 0xb5c   :  { %v1063_v22 = vunpack.c.l.b16 %v2198_v61 }
 0xb5e   :  { %v1064_v37 = vpack.c.b16 %v1063_v22, %v1063_v22 }
 0xb60   :  { %1065 = vrot.lane.b32.xlu2 %v1064_v37, %s1889_s17 }
 0xb8d   :  { %v1043_v23 = vpop.permute.xlu1 %1042 }
 0xb8e   :  { %1590 = vmatmul.msk.bf16.vlgmr.msra.gmra.mxu2 %vm146_vm0, %v1043_v23 }
 0xbba   :  { %v1066_v24 = vpop.permute.xlu2 %1065 }
 0xbbb   :  { %1591 = vmatmul.msk.bf16.vlgmr.msra.gmra.mxu3 %vm146_vm0, %v1066_v24 }
 0xc11   :  { %v1056_v28 = vpop.f32.mrf.mxu2 }
 0xc12   :  { %v1060_v30 = vadd.f32 %v1056_v28, %v236_v26 }
 0xc14   :  { %1713 = vtanh.f32 %v1060_v30  ;;  %v1592_v34 = vmul.f32 -1.442695, %v1060_v30 }
 0xc19   :  { %v1058_v31 = vpop.f32.mrf.mxu2 }
 0xc1a   :  { %v1714_v33 = vpop.eup %1713 }
 0xc1b   :  { %1106 = vrot.lane.b32.xlu0 %v1714_v33, %s1896_s20 }
 0xc3e   :  { %v1079_v36 = vpop.f32.mrf.mxu3 }
 0xc3f   :  { %v1083_v38 = vadd.f32 %v1079_v36, %v2038_v29 }
 0xc41   :  { %1715 = vtanh.f32 %v1083_v38  ;;  %v1593_v59 = vmul.f32 -1.442695, %v1083_v38 }
 0xc42   :  { %1717 = vpow2.f32 %v1592_v34  ;;  %v2231_v34 = vld [vmem:[#allocation12] ss:$0 sm:$0xff] }
 0xc46   :  { %v1081_v42 = vpop.f32.mrf.mxu3 }
 0xc47   :  { %v1716_v44 = vpop.eup %1715 }
 0xc48   :  { %1143 = vrot.lane.b32.xlu1 %v1716_v44, %s1896_s20  ;;  %v1718_v45 = vpop.eup %1717 }
 0xc49   :  { %v1087_v19 = vadd.f32 1.0, %v1718_v45  ;;  %v239_v45 = vadd.f32 %v2231_v34, %v2174_v9 }
 0xc4b   :  { %1719 = vrcp.f32 %v1087_v19  ;;  %v1099_v51 = vand.u32 2147483648, %v1087_v19  ;;  %vm1093_vm14 = vweird.f32 %v1087_v19  ;;  %v1097_v52 = vand.u32 2147483647, %v1087_v19 }
 0xc4c   :  { %1721 = vpow2.f32 %v1593_v59 }
 0xc4d   :  { %v1100_v53 = vor.u32 1.1754944e-38, %v1099_v51  ;;  %vm1098_vm2 = vcmp.eq.f32.partialorder %v1097_v52, 8.507059e+37 }
 0xc51   :  { %v1720_v21 = vpop.eup %1719 }
 0xc52   :  { %v1089_v13 = vmul.f32 %v1720_v21, %v1087_v19  ;;  %vm1094_vm13 = vweird.f32 %v1720_v21  ;;  %v1722_v60 = vpop.eup %1721 }
 0xc53   :  { %vm1095_vm15 = vmor %vm1093_vm14, %vm1094_vm13  ;;  %v1124_v62 = vadd.f32 1.0, %v1722_v60 }
 0xc54   :  { %v1090_v47 = vsub.f32 1.0, %v1089_v13 }
 0xc55   :  { %1723 = vrcp.f32 %v1124_v62  ;;  %v1136_v3 = vand.u32 2147483648, %v1124_v62  ;;  %vm1130_vm4 = vweird.f32 %v1124_v62  ;;  %v1134_v4 = vand.u32 2147483647, %v1124_v62 }
 0xc56   :  { %v1091_v48 = vmul.f32 %v1720_v21, %v1090_v47 }
 0xc57   :  { %v1137_v2 = vor.u32 1.1754944e-38, %v1136_v3  ;;  %vm1135_vm1 = vcmp.eq.f32.partialorder %v1134_v4, 8.507059e+37 }
 0xc58   :  { %v1092_v49 = vadd.f32 %v1720_v21, %v1091_v48 }
 0xc5a   :  { %v1096_v29 = vsel %vm1095_vm15, %v1720_v21, %v1092_v49 }
 0xc5b   :  { %v1101_v56 = vsel %vm1098_vm2, %v1100_v53, %v1096_v29  ;;  %v1724_v63 = vpop.eup %1723 }
 0xc5c   :  { %v1126_v50 = vmul.f32 %v1724_v63, %v1124_v62  ;;  %vm1131_vm3 = vweird.f32 %v1724_v63  ;;  %v1104_v35 = vmul.f32 %v1101_v56, %v2185_v6 }
 0xc5d   :  { %vm1132_vm5 = vmor %vm1130_vm4, %vm1131_vm3 }
 0xc5e   :  { %v1127_v1 = vsub.f32 1.0, %v1126_v50 }
 0xc60   :  { %v1128_v41 = vmul.f32 %v1724_v63, %v1127_v1 }
 0xc62   :  { %v1129_v54 = vadd.f32 %v1724_v63, %v1128_v41 }
 0xc64   :  { %v1133_v8 = vsel %vm1132_vm5, %v1724_v63, %v1129_v54 }
 0xc65   :  { %v1138_v12 = vsel %vm1135_vm1, %v1137_v2, %v1133_v8 }
 0xc66   :  { %v1141_v18 = vmul.f32 %v1138_v12, %v2190_v11 }
 0xc8d   :  { %v1107_v55 = vpop.permute.xlu0 %1106 }
 0xc8e   :  { %v1109_v58 = vmul.f32 %v1107_v55, %v1101_v56 }
 0xc90   :  { %1111 = vrot.lane.b32.xlu2 %v1109_v58, %s1896_s20 }
 0xcba   :  { %v1144_v5 = vpop.permute.xlu1 %1143 }
 0xcbb   :  { %v1146_v14 = vmul.f32 %v1144_v5, %v1138_v12 }
 0xcbd   :  { %1148 = vrot.lane.b32.xlu0 %v1146_v14, %s1896_s20 }
 0xcea   :  { %v1112_v15 = vpop.permute.xlu2 %1111 }
 0xceb   :  { %v2212_v16 = vadd.f32 %v1112_v15, %v1104_v35 }
 0xced   :  { %1725 = vtanh.f32 %v2212_v16 }
 0xcf3   :  { %v1726_v17 = vpop.eup %1725 }
 0xcf4   :  { %1117 = vrot.lane.b32.xlu1 %v1726_v17, %s1896_s20 }
 0xd2f   :  { %v1149_v22 = vpop.permute.xlu0 %1148 }
 0xd30   :  { %v2217_v37 = vadd.f32 %v1149_v22, %v1141_v18 }
 0xd32   :  { %1727 = vtanh.f32 %v2217_v37 }
 0xd38   :  { %v1728_v23 = vpop.eup %1727 }
 0xd39   :  { %1154 = vrot.lane.b32.xlu2 %v1728_v23, %s1896_s20 }
 0xd66   :  { %v1118_v24 = vpop.permute.xlu1 %1117 }
 0xd67   :  { %v1120_v6 = vmul.f32 %v1118_v24, %v1101_v56 }
 0xd69   :  { %v2221_v26 = vpack.c.bf16 %v1120_v6, %v1120_v6 }
 0xd6b   :  { %v1174_v28 = vunpack.c.l.b16 %v2221_v26 }
 0xd6d   :  { %v1175_v30 = vpack.c.b16 %v1174_v28, %v1174_v28 }
 0xd6f   :  { %1176 = vrot.lane.b32.xlu0 %v1175_v30, %s1889_s17 }
 0xd93   :  { %v1155_v31 = vpop.permute.xlu2 %1154 }
 0xd94   :  { %v1157_v33 = vmul.f32 %v1155_v31, %v1138_v12 }
 0xd96   :  { %v2225_v11 = vpack.c.bf16 %v1157_v33, %v1157_v33 }
 0xd98   :  { %v1197_v36 = vunpack.c.l.b16 %v2225_v11 }
 0xd9a   :  { %v1198_v38 = vpack.c.b16 %v1197_v36, %v1197_v36 }
 0xd9c   :  { %1199 = vrot.lane.b32.xlu1 %v1198_v38, %s1889_s17 }
 0xde1   :  { %v1177_v42 = vpop.permute.xlu0 %1176 }
 0xde2   :  { %1596 = vmatmul.msk.bf16.vlgmr.msra.gmra.mxu0 %vm146_vm0, %v1177_v42 }
 0xe0e   :  { %v1200_v44 = vpop.permute.xlu1 %1199 }
 0xe0f   :  { %1597 = vmatmul.msk.bf16.vlgmr.msra.gmra.mxu1 %vm146_vm0, %v1200_v44 }
 0xe5f   :  { %v1190_v19 = vpop.f32.mrf.mxu0 }
 0xe60   :  { %v1194_v21 = vadd.f32 %v1190_v19, %v239_v45 }
 0xe62   :  { %1729 = vtanh.f32 %v1194_v21  ;;  %v1598_v51 = vmul.f32 -1.442695, %v1194_v21 }
 0xe67   :  { %v1192_v13 = vpop.f32.mrf.mxu0 }
 0xe68   :  { %v1730_v47 = vpop.eup %1729 }
 0xe69   :  { %1240 = vrot.lane.b32.xlu2 %v1730_v47, %s1896_s20 }
 0xe8c   :  { %v1213_v48 = vpop.f32.mrf.mxu1 }
 0xe8d   :  { %v1217_v49 = vadd.f32 %v1213_v48, %v2036_v25 }
 0xe8f   :  { %1731 = vtanh.f32 %v1217_v49  ;;  %v1599_v3 = vmul.f32 -1.442695, %v1217_v49 }
 0xe90   :  { %1733 = vpow2.f32 %v1598_v51 }
 0xe94   :  { %v1215_v52 = vpop.f32.mrf.mxu1 }
 0xe95   :  { %v1732_v29 = vpop.eup %1731 }
 0xe96   :  { %1277 = vrot.lane.b32.xlu0 %v1732_v29, %s1896_s20  ;;  %v1734_v53 = vpop.eup %1733 }
 0xe97   :  { %v1221_v55 = vadd.f32 1.0, %v1734_v53  ;;  %v241_v53 = vadd.f32 %v2231_v34, %v2176_v10 }
 0xe99   :  { %1735 = vrcp.f32 %v1221_v55  ;;  %v1233_v62 = vand.u32 2147483648, %v1221_v55  ;;  %vm1227_vm7 = vweird.f32 %v1221_v55  ;;  %v1231_v63 = vand.u32 2147483647, %v1221_v55 }
 0xe9a   :  { %1737 = vpow2.f32 %v1599_v3 }
 0xe9b   :  { %v1234_v50 = vor.u32 1.1754944e-38, %v1233_v62  ;;  %vm1232_vm9 = vcmp.eq.f32.partialorder %v1231_v63, 8.507059e+37 }
 0xe9f   :  { %v1736_v9 = vpop.eup %1735 }
 0xea0   :  { %v1223_v56 = vmul.f32 %v1736_v9, %v1221_v55  ;;  %vm1228_vm6 = vweird.f32 %v1736_v9  ;;  %v1738_v4 = vpop.eup %1737 }
 0xea1   :  { %vm1229_vm8 = vmor %vm1227_vm7, %vm1228_vm6  ;;  %v1258_v8 = vadd.f32 1.0, %v1738_v4  ;;  %vm493_vm7 = vcmask 257024  }
 0xea2   :  { %v1224_v58 = vsub.f32 1.0, %v1223_v56 }
 0xea3   :  { %1739 = vrcp.f32 %v1258_v8  ;;  %v1270_v15 = vand.u32 2147483648, %v1258_v8  ;;  %vm1264_vm11 = vweird.f32 %v1258_v8  ;;  %v1268_v17 = vand.u32 2147483647, %v1258_v8 }
 0xea4   :  { %v1225_v59 = vmul.f32 %v1736_v9, %v1224_v58 }
 0xea5   :  { %v1271_v22 = vor.u32 1.1754944e-38, %v1270_v15  ;;  %vm1269_vm13 = vcmp.eq.f32.partialorder %v1268_v17, 8.507059e+37 }
 0xea6   :  { %v1226_v60 = vadd.f32 %v1736_v9, %v1225_v59 }
 0xea8   :  { %v1230_v25 = vsel %vm1229_vm8, %v1736_v9, %v1226_v60 }
 0xea9   :  { %v1235_v41 = vsel %vm1232_vm9, %v1234_v50, %v1230_v25  ;;  %v1740_v2 = vpop.eup %1739 }
 0xeaa   :  { %v1260_v5 = vmul.f32 %v1740_v2, %v1258_v8  ;;  %vm1265_vm10 = vweird.f32 %v1740_v2  ;;  %v1238_v28 = vmul.f32 %v1235_v41, %v2212_v16 }
 0xeab   :  { %vm1266_vm12 = vmor %vm1264_vm11, %vm1265_vm10 }
 0xeac   :  { %v1261_v12 = vsub.f32 1.0, %v1260_v5 }
 0xeae   :  { %v1262_v14 = vmul.f32 %v1740_v2, %v1261_v12 }
 0xeb0   :  { %v1263_v35 = vadd.f32 %v1740_v2, %v1262_v14 }
 0xeb2   :  { %v1267_v18 = vsel %vm1266_vm12, %v1740_v2, %v1263_v35 }
 0xeb3   :  { %v1272_v24 = vsel %vm1269_vm13, %v1271_v22, %v1267_v18 }
 0xeb4   :  { %v1275_v36 = vmul.f32 %v1272_v24, %v2217_v37 }
 0xec3   :  { %v1241_v1 = vpop.permute.xlu2 %1240 }
 0xec4   :  { %v1243_v54 = vmul.f32 %v1241_v1, %v1235_v41 }
 0xec6   :  { %1245 = vrot.lane.b32.xlu1 %v1243_v54, %s1896_s20 }
 0xf08   :  { %v1278_v23 = vpop.permute.xlu0 %1277 }
 0xf09   :  { %v1280_v6 = vmul.f32 %v1278_v23, %v1272_v24 }
 0xf0b   :  { %1282 = vrot.lane.b32.xlu2 %v1280_v6, %s1896_s20 }
 0xf38   :  { %v1246_v30 = vpop.permute.xlu1 %1245 }
 0xf39   :  { %v2241_v31 = vadd.f32 %v1246_v30, %v1238_v28 }
 0xf3b   :  { %1741 = vtanh.f32 %v2241_v31 }
 0xf41   :  { %v1742_v33 = vpop.eup %1741 }
 0xf42   :  { %1251 = vrot.lane.b32.xlu0 %v1742_v33, %s1896_s20 }
 0xf65   :  { %v1283_v38 = vpop.permute.xlu2 %1282 }
 0xf66   :  { %v2246_v42 = vadd.f32 %v1283_v38, %v1275_v36 }
 0xf68   :  { %1743 = vtanh.f32 %v2246_v42 }
 0xf6e   :  { %v1744_v44 = vpop.eup %1743 }
 0xf6f   :  { %1288 = vrot.lane.b32.xlu1 %v1744_v44, %s1896_s20 }
 0xfb4   :  { %v1252_v45 = vpop.permute.xlu0 %1251 }
 0xfb5   :  { %v1254_v16 = vmul.f32 %v1252_v45, %v1235_v41 }
 0xfb7   :  { %v2250_v19 = vpack.c.bf16 %v1254_v16, %v1254_v16 }
 0xfb9   :  { %v1308_v21 = vunpack.c.l.b16 %v2250_v19 }
 0xfbb   :  { %v1309_v13 = vpack.c.b16 %v1308_v21, %v1308_v21 }
 0xfbd   :  { %1310 = vrot.lane.b32.xlu2 %v1309_v13, %s1889_s17 }
 0xfe1   :  { %v1289_v47 = vpop.permute.xlu1 %1288 }
 0xfe2   :  { %v1291_v48 = vmul.f32 %v1289_v47, %v1272_v24 }
 0xfe4   :  { %v2254_v37 = vpack.c.bf16 %v1291_v48, %v1291_v48 }
 0xfe6   :  { %v1330_v49 = vunpack.c.l.b16 %v2254_v37 }
 0xfe8   :  { %v1331_v51 = vpack.c.b16 %v1330_v49, %v1330_v49 }
 0xfea   :  { %1332 = vrot.lane.b32.xlu0 %v1331_v51, %s1889_s17 }
0x1017   :  { %v1311_v52 = vpop.permute.xlu2 %1310 }
0x1018   :  { %1602 = vmatmul.msk.bf16.vlgmr.msrb.gmra.mxu2 %vm146_vm0, %v1311_v52 }
0x105c   :  { %v1333_v29 = vpop.permute.xlu0 %1332 }
0x105d   :  { %1603 = vmatmul.msk.bf16.vlgmr.msrb.gmra.mxu3 %vm146_vm0, %v1333_v29 }
0x109b   :  { %v1324_v55 = vpop.f32.mrf.mxu2 }
0x109c   :  { %v1328_v9 = vadd.f32 %v1324_v55, %v241_v53 }
0x109e   :  { %1745 = vtanh.f32 %v1328_v9  ;;  %v1604_v62 = vmul.f32 -1.442695, %v1328_v9 }
0x10a3   :  { %v1326_v56 = vpop.f32.mrf.mxu2 }
0x10a4   :  { %v1746_v58 = vpop.eup %1745 }
0x10a5   :  { %1373 = vrot.lane.b32.xlu1 %v1746_v58, %s1896_s20 }
0x10e0   :  { %v1346_v59 = vpop.f32.mrf.mxu3 }
0x10e1   :  { %v1350_v60 = vadd.f32 %v1346_v59, %v2031_v20 }
0x10e3   :  { %1747 = vtanh.f32 %v1350_v60  ;;  %v1605_v14 = vmul.f32 -1.442695, %v1350_v60 }
0x10e4   :  { %1749 = vpow2.f32 %v1604_v62 }
0x10e8   :  { %v1348_v63 = vpop.f32.mrf.mxu3 }
0x10e9   :  { %v1748_v25 = vpop.eup %1747 }
0x10ea   :  { %1410 = vrot.lane.b32.xlu2 %v1748_v25, %s1896_s20  ;;  %v1750_v50 = vpop.eup %1749 }
0x10eb   :  { %v1354_v10 = vadd.f32 1.0, %v1750_v50 }
0x10ed   :  { %1751 = vrcp.f32 %v1354_v10  ;;  %v1366_v20 = vand.u32 2147483648, %v1354_v10  ;;  %vm1360_vm15 = vweird.f32 %v1354_v10  ;;  %v1364_v4 = vand.u32 2147483647, %v1354_v10 }
0x10ee   :  { %1753 = vpow2.f32 %v1605_v14 }
0x10ef   :  { %v1367_v2 = vor.u32 1.1754944e-38, %v1366_v20  ;;  %vm1365_vm3 = vcmp.eq.f32.partialorder %v1364_v4, 8.507059e+37 }
0x10f2   :  { %497 = vrot.lane.b32.xlu2 %v2064_v40, %s1889_s17 }
0x10f3   :  { %v1752_v34 = vpop.eup %1751 }
0x10f4   :  { %v1356_v1 = vmul.f32 %v1752_v34, %v1354_v10  ;;  %vm1361_vm14 = vweird.f32 %v1752_v34  ;;  %v1754_v35 = vpop.eup %1753 }
0x10f5   :  { %vm1362_vm2 = vmor %vm1360_vm15, %vm1361_vm14  ;;  %v1391_v15 = vadd.f32 1.0, %v1754_v35 }
0x10f6   :  { %v1357_v41 = vsub.f32 1.0, %v1356_v1 }
0x10f7   :  { %1755 = vrcp.f32 %v1391_v15  ;;  %v1403_v6 = vand.u32 2147483648, %v1391_v15  ;;  %vm1397_vm5 = vweird.f32 %v1391_v15  ;;  %v1401_v28 = vand.u32 2147483647, %v1391_v15 }
0x10f8   :  { %v1358_v54 = vmul.f32 %v1752_v34, %v1357_v41 }
0x10f9   :  { %v1404_v33 = vor.u32 1.1754944e-38, %v1403_v6  ;;  %vm1402_vm6 = vcmp.eq.f32.partialorder %v1401_v28, 8.507059e+37 }
0x10fa   :  { %v1359_v3 = vadd.f32 %v1752_v34, %v1358_v54 }
0x10fc   :  { %v1363_v8 = vsel %vm1362_vm2, %v1752_v34, %v1359_v3 }
0x10fd   :  { %v2267_v12 = vsel %vm1365_vm3, %v1367_v2, %v1363_v8  ;;  %v1756_v17 = vpop.eup %1755 }
0x10fe   :  { %v1393_v18 = vmul.f32 %v1756_v17, %v1391_v15  ;;  %vm1398_vm4 = vweird.f32 %v1756_v17  ;;  %v1371_v16 = vmul.f32 %v2267_v12, %v2241_v31 }
0x10ff   :  { %vm1399_vm1 = vmor %vm1397_vm5, %vm1398_vm4 }
0x1100   :  { %v1394_v22 = vsub.f32 1.0, %v1393_v18 }
0x1102   :  { %v1395_v23 = vmul.f32 %v1756_v17, %v1394_v22 }
0x1104   :  { %v1396_v24 = vadd.f32 %v1756_v17, %v1395_v23 }
0x1106   :  { %v1400_v30 = vsel %vm1399_vm1, %v1756_v17, %v1396_v24 }
0x1107   :  { %v1405_v38 = vsel %vm1402_vm6, %v1404_v33, %v1400_v30 }
0x1117   :  { %v1374_v5 = vpop.permute.xlu1 %1373 }
0x1118   :  { %v1376_v40 = vmul.f32 %v1374_v5, %v2267_v12 }
0x111a   :  { %1378 = vrot.lane.b32.xlu0 %v1376_v40, %s1896_s20 }
0x1144   :  { %v1411_v36 = vpop.permute.xlu2 %1410 }
0x1145   :  { %v1413_v44 = vmul.f32 %v1411_v36, %v1405_v38 }
0x1147   :  { %1415 = vrot.lane.b32.xlu1 %v1413_v44, %s1896_s20 }
0x114c   :  { %v498_v45 = vpop.permute.xlu2 %497 }
0x114d   :  { %1565 = vst.msk [vmem:[%s2385_s9 + $0x1c] sm:$0xf] %vm493_vm7, %v498_v45 }
0x114f   :  { %490 = vrot.lane.b32.xlu1 %v2060_v32, %s1889_s17  ;;  %v1408_v32 = vmul.f32 %v1405_v38, %v2246_v42 }
0x1157   :  { %631 = vrot.lane.b32.xlu1 %v2094_v27, %s1889_s17 }
0x115f   :  { %892 = vrot.lane.b32.xlu1 %v2154_v0, %s1889_s17 }
0x1167   :  { %1033 = vrot.lane.b32.xlu1 %v2198_v61, %s1889_s17 }
0x116f   :  { %1294 = vrot.lane.b32.xlu1 %v2250_v19, %s1889_s17 }
0x118c   :  { %v1379_v21 = vpop.permute.xlu0 %1378 }
0x118d   :  { %v1381_v13 = vadd.f32 %v1379_v21, %v1371_v16 }
0x118f   :  { %1757 = vtanh.f32 %v1381_v13 }
0x1195   :  { %v1758_v47 = vpop.eup %1757 }
0x1196   :  { %1384 = vrot.lane.b32.xlu2 %v1758_v47, %s1896_s20 }
0x119e   :  { %758 = vrot.lane.b32.xlu2 %v2124_v57, %s1889_s17 }
0x11a6   :  { %899 = vrot.lane.b32.xlu2 %v2166_v7, %s1889_s17 }
0x11ae   :  { %1160 = vrot.lane.b32.xlu2 %v2221_v26, %s1889_s17 }
0x11b6   :  { %1301 = vrot.lane.b32.xlu2 %v2254_v37, %s1889_s17 }
0x11b9   :  { %v1416_v27 = vpop.permute.xlu1 %1415 }
0x11ba   :  { %v1418_v0 = vadd.f32 %v1416_v27, %v1408_v32 }
0x11bc   :  { %1759 = vtanh.f32 %v1418_v0 }
0x11c1   :  { %v491_v61 = vpop.permute.xlu1 %490 }
0x11c2   :  { %v1760_v31 = vpop.eup %1759  ;;  %494 = vst.msk [vmem:[%s2384_s8] sm:$0xf] %vm493_vm7, %v491_v61 }
0x11c3   :  { %1421 = vrot.lane.b32.xlu0 %v1760_v31, %s1896_s20 }
0x11c9   :  { %v632_v57 = vpop.permute.xlu1 %631 }
0x11ca   :  { %1571 = vst.msk [vmem:[%s2385_s9 + $0x18] sm:$0xf] %vm493_vm7, %v632_v57 }
0x11cb   :  { %624 = vrot.lane.b32.xlu0 %v2090_v46, %s1889_s17 }
0x11d1   :  { %v893_v7 = vpop.permute.xlu1 %892 }
0x11d2   :  { %1582 = vst.msk [vmem:[%s2384_s8 + $0xc] sm:$0xf] %vm493_vm7, %v893_v7 }
0x11d3   :  { %765 = vrot.lane.b32.xlu0 %v2128_v43, %s1889_s17 }
0x11d9   :  { %v1034_v26 = vpop.permute.xlu1 %1033 }
0x11da   :  { %1589 = vst.msk [vmem:[%s2385_s9 + $0xc] sm:$0xf] %vm493_vm7, %v1034_v26 }
0x11db   :  { %1026 = vrot.lane.b32.xlu0 %v2194_v39, %s1889_s17 }
0x11e1   :  { %v1295_v42 = vpop.permute.xlu1 %1294 }
0x11e2   :  { %1600 = vst.msk [vmem:[%s2384_s8 + $0x18] sm:$0xf] %vm493_vm7, %v1295_v42 }
0x11e3   :  { %1167 = vrot.lane.b32.xlu0 %v2225_v11, %s1889_s17 }
0x11f0   :  { %v1385_v46 = vpop.permute.xlu2 %1384 }
0x11f1   :  { %v1387_v43 = vmul.f32 %v1385_v46, %v2267_v12 }
0x11f3   :  { %1439 = vrot.lane.b32.xlu2 %v1387_v43, %s1889_s17  ;;  %v1425_v19 = vpack.c.bf16 %v1387_v43, %v1387_v43 }
0x11f5   :  { %1427 = vrot.lane.b32.xlu0 %v1425_v19, %s1889_s17 }
0x11f8   :  { %v759_v48 = vpop.permute.xlu2 %758 }
0x11f9   :  { %1576 = vst.msk [vmem:[%s2384_s8 + $0x8] sm:$0xf] %vm493_vm7, %v759_v48 }
0x11fb   :  { %1454 = vrot.lane.b32.xlu2 %v1418_v0, %s1897_s18 }
0x11fd   :  { %1444 = vrot.lane.b32.xlu0 %v1381_v13, %s1897_s18 }
0x1200   :  { %v900_v39 = vpop.permute.xlu2 %899 }
0x1201   :  { %1583 = vst.msk [vmem:[%s2385_s9 + $0x10] sm:$0xf] %vm493_vm7, %v900_v39 }
0x1208   :  { %v1161_v11 = vpop.permute.xlu2 %1160 }
0x1209   :  { %1594 = vst.msk [vmem:[%s2384_s8 + $0x14] sm:$0xf] %vm493_vm7, %v1161_v11 }
0x1210   :  { %v1302_v37 = vpop.permute.xlu2 %1301 }
0x1211   :  { %1601 = vst.msk [vmem:[%s2385_s9 + $0x4] sm:$0xf] %vm493_vm7, %v1302_v37 }
0x1235   :  { %v1422_v49 = vpop.permute.xlu0 %1421 }
0x1236   :  { %v1424_v51 = vmul.f32 %v1422_v49, %v1405_v38 }
0x1238   :  { %v1432_v52 = vpack.c.bf16 %v1424_v51, %v1424_v51 }
0x123a   :  { %1434 = vrot.lane.b32.xlu1 %v1432_v52, %s1889_s17 }
0x123d   :  { %v625_v29 = vpop.permute.xlu0 %624 }
0x123e   :  { %1570 = vst.msk [vmem:[%s2384_s8 + $0x4] sm:$0xf] %vm493_vm7, %v625_v29 }
0x1242   :  { %1449 = vrot.lane.b32.xlu1 %v1424_v51, %s1889_s17 }
0x1245   :  { %v766_v53 = vpop.permute.xlu0 %765 }
0x1246   :  { %1577 = vst.msk [vmem:[%s2385_s9 + $0x14] sm:$0xf] %vm493_vm7, %v766_v53 }
0x124d   :  { %v1440_v55 = vpop.permute.xlu2 %1439  ;;  %v1027_v9 = vpop.permute.xlu0 %1026 }
0x124e   :  { %1442 = vst.msk [vmem:[#allocation2] sm:$0xff] %vm146_vm0, %v1440_v55 }
0x124f   :  { %1588 = vst.msk [vmem:[%s2384_s8 + $0x10] sm:$0xf] %vm493_vm7, %v1027_v9 }
0x1255   :  { %v1455_v56 = vpop.permute.xlu2 %1454  ;;  %v1168_v58 = vpop.permute.xlu0 %1167 }
0x1256   :  { %1457 = vst.msk [vmem:[#allocation5] sm:$0xff] %vm146_vm0, %v1455_v56 }
0x1257   :  { %1595 = vst.msk [vmem:[%s2385_s9 + $0x8] sm:$0xf] %vm493_vm7, %v1168_v58 }
0x1267   :  { %v1428_v59 = vpop.permute.xlu0 %1427 }
0x1268   :  { %1606 = vst.msk [vmem:[%s2384_s8 + $0x1c] sm:$0xf] %vm493_vm7, %v1428_v59 }
0x126f   :  { %v1445_v60 = vpop.permute.xlu0 %1444 }
0x1270   :  { %1447 = vst.msk [vmem:[#allocation3] sm:$0xff] %vm146_vm0, %v1445_v60 }
0x12ac   :  { %v1435_v62 = vpop.permute.xlu1 %1434 }
0x12ad   :  { %1437 = vst.msk [vmem:[%s2385_s9] sm:$0xf] %vm493_vm7, %v1435_v62 }
0x12b4   :  { %v1450_v63 = vpop.permute.xlu1 %1449 }
0x12b5   :  { %1452 = vst.msk [vmem:[#allocation4] sm:$0xff] %vm146_vm0, %v1450_v63 }
0x12b6   :  { %1480 = vsyncpa [#allocation9], 1 }
0x12b7   :  { %1481 = vsyncpa [#allocation11], 1 }
0x12b8   :  { %1482 = vsyncpa [#allocation14], 1 }

// kernel: protein_lstm_forward.4
= control target key start
LH: loop header
LB: loop body
LE: loop exit
PB: predicated region body
PF: predicated region fallthrough
CT: control target
= control target key end

     0   :  { %19 = vsyncpa [#allocation9], 0  ;;  %s2637_s0 = inlined_call_operand.vmem [shape: bf16[64,32], index: 0, kind: input, shape index: {}, may-alias: {0,2}]   ;;  %s2638_s1 = inlined_call_operand.vmem [shape: bf16[64,32], index: 1, kind: input, shape index: {}, may-alias: {1,3}]   ;;  %s2639_s2 = inlined_call_operand.vmem [shape: bf16[64,32], index: 2, kind: input, shape index: {}, may-alias: {0,2}]   ;;  %s2640_s3 = inlined_call_operand.vmem [shape: bf16[64,32], index: 3, kind: input, shape index: {}, may-alias: {1,3}]   ;;  %s2641_s4 = inlined_call_operand.vmem [shape: bf16[32,128], index: 4, kind: input, shape index: {}]   ;;  %s2642_s5 = inlined_call_operand.vmem [shape: bf16[32,128], index: 5, kind: input, shape index: {}]   ;;  %s2643_s6 = inlined_call_operand.vmem [shape: bf16[32,128], index: 6, kind: input, shape index: {}]   ;;  %s2644_s7 = inlined_call_operand.vmem [shape: bf16[32,128], index: 7, kind: input, shape index: {}]   ;;  %s2645_s8 = inlined_call_operand.hbm [shape: f32[1,128], index: 8, kind: input, shape index: {}]   ;;  %s2646_s9 = inlined_call_operand.hbm [shape: f32[1,128], index: 9, kind: input, shape index: {}]   ;;  %s2647_s10 = inlined_call_operand.vmem [shape: bf16[32,128], index: 10, kind: input, shape index: {}]   ;;  %s2648_s11 = inlined_call_operand.vmem [shape: bf16[32,128], index: 11, kind: input, shape index: {}]   ;;  %s2649_s12 = inlined_call_operand.vmem [shape: bf16[64,32], index: 12, kind: output, shape index: {0}]   ;;  %s2650_s13 = inlined_call_operand.vmem [shape: bf16[64,32], index: 13, kind: output, shape index: {1}]  }
   0x1   :  { %s58_s27 = sshll.u32 %s2645_s8, 4  ;;  %s59_s27 = int_to_ptr.hbm [resolvable:$true] %s58_s27 }
   0x2   :  { %20 = vsyncpa [#allocation11], 0  ;;  %s2081_s28 = smov [#allocation8]   ;;  %s69_s15 = sshll.u32 %s2646_s9, 4  ;;  %s70_s15 = int_to_ptr.hbm [resolvable:$true] %s69_s15 }
   0x3   :  { %s60_s29 = sshll.u32 %s2081_s28, 4  ;;  %s2082_s16 = smov [#allocation10]   ;;  %s61_s29 = int_to_ptr.vmem [resolvable:$true] %s60_s29 }
   0x4   :  { %63 = dma.hbm_to_vmem [thread:$0]  %s59_s27, 16, %s61_s29, [#allocation9]  }
   0x5   :  { %s71_s17 = sshll.u32 %s2082_s16, 4  ;;  %s72_s17 = int_to_ptr.vmem [resolvable:$true] %s71_s17 }
   0x6   :  { %74 = dma.hbm_to_vmem [thread:$0]  %s70_s15, 16, %s72_s17, [#allocation11]  }
   0x7   :  { %2077 = dma.done.wait [#allocation9], 16  }
   0x8   :  { %2078 = vsyncadd [#allocation9], 4294967280 }
   0x9   :  { %2079 = dma.done.wait [#allocation11], 16  }
   0xa   :  { %2080 = vsyncadd [#allocation11], 4294967280  ;;  %v1882_v0 = vld [vmem:[%s2642_s5 + $0x8] sm:$0xff]  ;;  %v1881_v4 = vld [vmem:[%s2642_s5] sm:$0xff]  ;;  %vm134_vm0 = vcmask 261120   ;;  %v2083_v20 = vmov 0.0  }
   0xb   :  { %v1870_v1 = vld [vmem:[%s2641_s4 + $0x8] sm:$0xff]  ;;  %226 = vmatpush.bf16.msra.mxu0 %v1882_v0  ;;  %v1869_v5 = vld [vmem:[%s2641_s4] sm:$0xff]  ;;  %135 = vst.msk [vmem:[#allocation2] sm:$0xff] %vm134_vm0, %v2083_v20  ;;  %v1879_v21 = vld [vmem:[%s2638_s1 + $0x10] sm:$0xff]  ;;  %s2086_s5 = smov 96  }
   0xc   :  { %v1888_v2 = vld [vmem:[%s2644_s7 + $0x8] sm:$0xff]  ;;  %299 = vmatpush.bf16.msra.mxu1 %v1870_v1  ;;  %v1887_v6 = vld [vmem:[%s2644_s7] sm:$0xff]  ;;  %136 = vst.msk [vmem:[#allocation3] sm:$0xff] %vm134_vm0, %v2083_v20  ;;  %v1867_v22 = vld [vmem:[%s2637_s0 + $0x10] sm:$0xff]  ;;  %s2084_s7 = smov 32  }
   0xd   :  { %v1876_v3 = vld [vmem:[%s2643_s6 + $0x8] sm:$0xff]  ;;  %384 = vmatpush.bf16.msra.mxu2 %v1888_v2  ;;  %v1875_v7 = vld [vmem:[%s2643_s6] sm:$0xff]  ;;  %137 = vst.msk [vmem:[#allocation4] sm:$0xff] %vm134_vm0, %v2083_v20  ;;  %v1885_v23 = vld [vmem:[%s2640_s3 + $0x10] sm:$0xff] }
   0xe   :  { %457 = vmatpush.bf16.msra.mxu3 %v1876_v3  ;;  %v2190_v8 = vld [vmem:[%s2647_s10 + $0x8] sm:$0xff]  ;;  %v1877_v10 = vld [vmem:[%s2638_s1] sm:$0xff]  ;;  %138 = vst.msk [vmem:[#allocation5] sm:$0xff] %vm134_vm0, %v2083_v20  ;;  %v1873_v24 = vld [vmem:[%s2639_s2 + $0x10] sm:$0xff] }
   0xf   :  { %v2195_v9 = vld [vmem:[%s2648_s11 + $0x8] sm:$0xff]  ;;  %v1865_v11 = vld [vmem:[%s2637_s0] sm:$0xff]  ;;  %227 = vmatpush.bf16.msra.mxu0 %v1881_v4  ;;  %v1880_v27 = vld [vmem:[%s2638_s1 + $0x18] sm:$0xff] }
  0x10   :  { %v1883_v12 = vld [vmem:[%s2640_s3] sm:$0xff]  ;;  %300 = vmatpush.bf16.msra.mxu1 %v1869_v5  ;;  %v1878_v16 = vld [vmem:[%s2638_s1 + $0x8] sm:$0xff]  ;;  %v1868_v28 = vld [vmem:[%s2637_s0 + $0x18] sm:$0xff] }
  0x11   :  { %v1871_v13 = vld [vmem:[%s2639_s2] sm:$0xff]  ;;  %385 = vmatpush.bf16.msra.mxu2 %v1887_v6  ;;  %v1866_v17 = vld [vmem:[%s2637_s0 + $0x8] sm:$0xff]  ;;  %v1886_v29 = vld [vmem:[%s2640_s3 + $0x18] sm:$0xff]  ;;  %s2085_s0 = smov 64  }
  0x12   :  { %458 = vmatpush.bf16.msra.mxu3 %v1875_v7  ;;  %1715 = vmatmul.msk.bf16.vlgmr.msra.gmra.mxu0 %vm134_vm0, %v1877_v10  ;;  %v2218_v14 = vld [vmem:[%s2647_s10] sm:$0xff]  ;;  %v1884_v18 = vld [vmem:[%s2640_s3 + $0x8] sm:$0xff]  ;;  %v1874_v30 = vld [vmem:[%s2639_s2 + $0x18] sm:$0xff] }
  0x13   :  { %555 = vmatpush.bf16.msrb.mxu0 %v2190_v8  ;;  %1743 = vmatmul.msk.bf16.vlgmr.msra.gmra.mxu1 %vm134_vm0, %v1865_v11  ;;  %v2223_v15 = vld [vmem:[%s2648_s11] sm:$0xff]  ;;  %v1872_v19 = vld [vmem:[%s2639_s2 + $0x8] sm:$0xff] }
  0x14   :  { %587 = vmatpush.bf16.msrb.mxu1 %v2195_v9  ;;  %1771 = vmatmul.msk.bf16.vlgmr.msra.gmra.mxu2 %vm134_vm0, %v1883_v12  ;;  %v529_v25 = vld [vmem:[#allocation3] sm:$0xff]  ;;  %v528_v31 = vld [vmem:[#allocation2] sm:$0xff]  ;;  %v530_v32 = vld [vmem:[#allocation4] sm:$0xff] }
  0x15   :  { %1799 = vmatmul.msk.bf16.vlgmr.msra.gmra.mxu3 %vm134_vm0, %v1871_v13  ;;  %706 = vmatpush.bf16.msrb.mxu2 %v2190_v8  ;;  %v531_v26 = vld [vmem:[#allocation5] sm:$0xff]  ;;  %v533_v33 = vpack.c.bf16 %v528_v31, %v528_v31  ;;  %v565_v34 = vpack.c.bf16 %v530_v32, %v530_v32  ;;  %v2299_v37 = vld [vmem:[#allocation10] ss:$0 sm:$0xff]  ;;  %v1899_v44 = vld [vmem:[#allocation8] ss:$0 sm:$0xff] }
  0x16   :  { %729 = vmatpush.bf16.msrb.mxu3 %v2195_v9  ;;  %616 = vrot.lane.b32.xlu1 %v529_v25, %s2084_s7 }
  0x17   :  { %556 = vmatpush.bf16.msrb.mxu0 %v2218_v14 }
  0x18   :  { %588 = vmatpush.bf16.msrb.mxu1 %v2223_v15 }
  0x19   :  { %707 = vmatpush.bf16.msrb.mxu2 %v2218_v14 }
  0x1a   :  { %730 = vmatpush.bf16.msrb.mxu3 %v2223_v15 }
  0x1b   :  { %840 = vmatpush.bf16.msra.mxu0 %v2190_v8 }
  0x1c   :  { %863 = vmatpush.bf16.msra.mxu1 %v2195_v9 }
  0x1d   :  { %974 = vmatpush.bf16.msra.mxu2 %v2190_v8 }
  0x1e   :  { %997 = vmatpush.bf16.msra.mxu3 %v2195_v9  ;;  %657 = vrot.lane.b32.xlu1 %v531_v26, %s2084_s7 }
  0x1f   :  { %841 = vmatpush.bf16.msra.mxu0 %v2218_v14 }
  0x20   :  { %864 = vmatpush.bf16.msra.mxu1 %v2223_v15 }
  0x21   :  { %975 = vmatpush.bf16.msra.mxu2 %v2218_v14 }
  0x22   :  { %998 = vmatpush.bf16.msra.mxu3 %v2223_v15  ;;  %1716 = vmatmul.msk.bf16.gmra.mxu0 %vm134_vm0, %v1878_v16 }
  0x23   :  { %1744 = vmatmul.msk.bf16.gmra.mxu1 %vm134_vm0, %v1866_v17 }
  0x24   :  { %1772 = vmatmul.msk.bf16.gmra.mxu2 %vm134_vm0, %v1884_v18 }
  0x25   :  { %1800 = vmatmul.msk.bf16.gmra.mxu3 %vm134_vm0, %v1872_v19 }
  0x32   :  { %1717 = vmatmul.msk.bf16.gmra.mxu0 %vm134_vm0, %v1879_v21 }
  0x33   :  { %1745 = vmatmul.msk.bf16.gmra.mxu1 %vm134_vm0, %v1867_v22 }
  0x34   :  { %1773 = vmatmul.msk.bf16.gmra.mxu2 %vm134_vm0, %v1885_v23 }
  0x35   :  { %1801 = vmatmul.msk.bf16.gmra.mxu3 %vm134_vm0, %v1873_v24 }
  0x42   :  { %1718 = vmatmul.msk.bf16.gmra.mxu0 %vm134_vm0, %v1880_v27 }
  0x43   :  { %1746 = vmatmul.msk.bf16.gmra.mxu1 %vm134_vm0, %v1868_v28 }
  0x44   :  { %1774 = vmatmul.msk.bf16.gmra.mxu2 %vm134_vm0, %v1886_v29 }
  0x45   :  { %1802 = vmatmul.msk.bf16.gmra.mxu3 %vm134_vm0, %v1874_v30 }
  0x52   :  { %1811 = vmatmul.msk.bf16.vlgmr.msrb.gmra.mxu0 %vm134_vm0, %v533_v33 }
  0x53   :  { %1820 = vmatmul.msk.bf16.vlgmr.msrb.gmra.mxu1 %vm134_vm0, %v565_v34  ;;  %1108 = vmatpush.bf16.msrb.mxu0 %v2190_v8 }
  0x54   :  { %1131 = vmatpush.bf16.msrb.mxu1 %v2195_v9 }
  0x57   :  { %1109 = vmatpush.bf16.msrb.mxu0 %v2218_v14 }
  0x58   :  { %1132 = vmatpush.bf16.msrb.mxu1 %v2223_v15 }
  0x8f   :  { %v229_v35 = vpop.f32.mrf.mxu0 }
  0x90   :  { %v302_v36 = vpop.f32.mrf.mxu1 }
  0x91   :  { %v303_v34 = vadd.f32 %v302_v36, %v229_v35 }
  0x97   :  { %v387_v38 = vpop.f32.mrf.mxu2  ;;  %v231_v41 = vpop.f32.mrf.mxu0 }
  0x98   :  { %v460_v39 = vpop.f32.mrf.mxu3  ;;  %v304_v42 = vpop.f32.mrf.mxu1 }
  0x99   :  { %v461_v40 = vadd.f32 %v460_v39, %v387_v38  ;;  %v305_v43 = vadd.f32 %v304_v42, %v231_v41  ;;  %v484_v41 = vadd.f32 %v1899_v44, %v303_v34 }
  0x9b   :  { %v2302_v45 = vadd.f32 %v2299_v37, %v461_v40  ;;  %v2304_v46 = vadd.f32 %v1899_v44, %v305_v43 }
  0x9f   :  { %v389_v47 = vpop.f32.mrf.mxu2  ;;  %v234_v50 = vpop.f32.mrf.mxu0 }
  0xa0   :  { %v462_v48 = vpop.f32.mrf.mxu3  ;;  %v307_v51 = vpop.f32.mrf.mxu1 }
  0xa1   :  { %v463_v49 = vadd.f32 %v462_v48, %v389_v47  ;;  %v308_v52 = vadd.f32 %v307_v51, %v234_v50 }
  0xa3   :  { %v2307_v53 = vadd.f32 %v2299_v37, %v463_v49  ;;  %v2309_v54 = vadd.f32 %v1899_v44, %v308_v52 }
  0xa7   :  { %v392_v55 = vpop.f32.mrf.mxu2  ;;  %v236_v58 = vpop.f32.mrf.mxu0 }
  0xa8   :  { %v465_v56 = vpop.f32.mrf.mxu3  ;;  %v309_v59 = vpop.f32.mrf.mxu1 }
  0xa9   :  { %v466_v57 = vadd.f32 %v465_v56, %v392_v55  ;;  %v310_v60 = vadd.f32 %v309_v59, %v236_v58 }
  0xab   :  { %v2312_v61 = vadd.f32 %v2299_v37, %v466_v57  ;;  %v2314_v62 = vadd.f32 %v1899_v44, %v310_v60 }
  0xaf   :  { %v394_v63 = vpop.f32.mrf.mxu2  ;;  %v239_v2 = vpop.f32.mrf.mxu0 }
  0xb0   :  { %v467_v0 = vpop.f32.mrf.mxu3  ;;  %v312_v3 = vpop.f32.mrf.mxu1 }
  0xb1   :  { %v468_v1 = vadd.f32 %v467_v0, %v394_v63  ;;  %v313_v4 = vadd.f32 %v312_v3, %v239_v2 }
  0xb3   :  { %v2317_v5 = vadd.f32 %v2299_v37, %v468_v1  ;;  %v2319_v6 = vadd.f32 %v1899_v44, %v313_v4 }
  0xb7   :  { %v397_v7 = vpop.f32.mrf.mxu2  ;;  %v241_v12 = vpop.f32.mrf.mxu0 }
  0xb8   :  { %v470_v10 = vpop.f32.mrf.mxu3  ;;  %v314_v13 = vpop.f32.mrf.mxu1 }
  0xb9   :  { %v471_v11 = vadd.f32 %v470_v10, %v397_v7  ;;  %v315_v16 = vadd.f32 %v314_v13, %v241_v12 }
  0xbb   :  { %v2322_v17 = vadd.f32 %v2299_v37, %v471_v11  ;;  %v2324_v18 = vadd.f32 %v1899_v44, %v315_v16 }
  0xbf   :  { %v399_v19 = vpop.f32.mrf.mxu2  ;;  %v244_v22 = vpop.f32.mrf.mxu0 }
  0xc0   :  { %v472_v20 = vpop.f32.mrf.mxu3  ;;  %v317_v23 = vpop.f32.mrf.mxu1 }
  0xc1   :  { %v473_v21 = vadd.f32 %v472_v20, %v399_v19  ;;  %v318_v24 = vadd.f32 %v317_v23, %v244_v22 }
  0xc3   :  { %v2327_v25 = vadd.f32 %v2299_v37, %v473_v21  ;;  %v2329_v26 = vadd.f32 %v1899_v44, %v318_v24 }
  0xc7   :  { %v402_v27 = vpop.f32.mrf.mxu2  ;;  %v246_v30 = vpop.f32.mrf.mxu0 }
  0xc8   :  { %v475_v28 = vpop.f32.mrf.mxu3  ;;  %v319_v31 = vpop.f32.mrf.mxu1 }
  0xc9   :  { %v476_v29 = vadd.f32 %v475_v28, %v402_v27  ;;  %v320_v32 = vadd.f32 %v319_v31, %v246_v30  ;;  %v617_v31 = vpop.permute.xlu1 %616 }
  0xcb   :  { %v2332_v33 = vadd.f32 %v2299_v37, %v476_v29  ;;  %v2334_v38 = vadd.f32 %v1899_v44, %v320_v32 }
  0xcf   :  { %v404_v39 = vpop.f32.mrf.mxu2  ;;  %v558_v43 = vpop.f32.mrf.mxu0 }
  0xd0   :  { %v477_v40 = vpop.f32.mrf.mxu3  ;;  %v590_v47 = vpop.f32.mrf.mxu1  ;;  %v562_v48 = vadd.f32 %v558_v43, %v484_v41 }
  0xd1   :  { %v478_v42 = vadd.f32 %v477_v40, %v404_v39  ;;  %v658_v40 = vpop.permute.xlu1 %657 }
  0xd2   :  { %1901 = vtanh.f32 %v562_v48  ;;  %v1821_v36 = vmul.f32 -1.442695, %v562_v48 }
  0xd3   :  { %v511_v49 = vadd.f32 %v2299_v37, %v478_v42 }
  0xd5   :  { %v594_v50 = vadd.f32 %v590_v47, %v511_v49 }
  0xd7   :  { %v560_v51 = vpop.f32.mrf.mxu0  ;;  %1903 = vtanh.f32 %v594_v50  ;;  %v1822_v44 = vmul.f32 -1.442695, %v594_v50 }
  0xd8   :  { %v592_v52 = vpop.f32.mrf.mxu1  ;;  %v1902_v55 = vpop.eup %1901  ;;  %1905 = vpow2.f32 %v1821_v36 }
  0xd9   :  { %621 = vrot.lane.b32.xlu0 %v1902_v55, %s2084_s7  ;;  %1907 = vpow2.f32 %v1822_v44 }
  0xdd   :  { %v1904_v35 = vpop.eup %1903 }
  0xde   :  { %v1906_v56 = vpop.eup %1905 }
  0xdf   :  { %v598_v57 = vadd.f32 1.0, %v1906_v56  ;;  %v1908_v58 = vpop.eup %1907 }
  0xe0   :  { %v639_v59 = vadd.f32 1.0, %v1908_v58 }
  0xe1   :  { %662 = vrot.lane.b32.xlu0 %v1904_v35, %s2084_s7  ;;  %1909 = vrcp.f32 %v598_v57  ;;  %v610_v7 = vand.u32 2147483648, %v598_v57  ;;  %vm604_vm2 = vweird.f32 %v598_v57  ;;  %v608_v10 = vand.u32 2147483647, %v598_v57 }
  0xe2   :  { %1911 = vrcp.f32 %v639_v59  ;;  %v651_v22 = vand.u32 2147483648, %v639_v59  ;;  %vm645_vm6 = vweird.f32 %v639_v59  ;;  %v649_v23 = vand.u32 2147483647, %v639_v59 }
  0xe3   :  { %v611_v13 = vor.u32 1.1754944e-38, %v610_v7  ;;  %vm609_vm4 = vcmp.eq.f32.partialorder %v608_v10, 8.507059e+37 }
  0xe4   :  { %v652_v27 = vor.u32 1.1754944e-38, %v651_v22  ;;  %vm650_vm8 = vcmp.eq.f32.partialorder %v649_v23, 8.507059e+37 }
  0xe7   :  { %v1910_v37 = vpop.eup %1909 }
  0xe8   :  { %v600_v60 = vmul.f32 %v1910_v37, %v598_v57  ;;  %v1912_v0 = vpop.eup %1911  ;;  %vm605_vm1 = vweird.f32 %v1910_v37 }
  0xe9   :  { %v641_v2 = vmul.f32 %v1912_v0, %v639_v59  ;;  %vm606_vm3 = vmor %vm604_vm2, %vm605_vm1  ;;  %vm646_vm5 = vweird.f32 %v1912_v0 }
  0xea   :  { %v601_v63 = vsub.f32 1.0, %v600_v60  ;;  %vm647_vm7 = vmor %vm645_vm6, %vm646_vm5 }
  0xeb   :  { %v642_v4 = vsub.f32 1.0, %v641_v2 }
  0xec   :  { %v602_v1 = vmul.f32 %v1910_v37, %v601_v63 }
  0xed   :  { %v643_v12 = vmul.f32 %v1912_v0, %v642_v4 }
  0xee   :  { %v603_v3 = vadd.f32 %v1910_v37, %v602_v1 }
  0xef   :  { %v644_v20 = vadd.f32 %v1912_v0, %v643_v12 }
  0xf0   :  { %v607_v11 = vsel %vm606_vm3, %v1910_v37, %v603_v3 }
  0xf1   :  { %v612_v16 = vsel %vm609_vm4, %v611_v13, %v607_v11  ;;  %v648_v24 = vsel %vm647_vm7, %v1912_v0, %v644_v20 }
  0xf2   :  { %v653_v28 = vsel %vm650_vm8, %v652_v27, %v648_v24  ;;  %v619_v32 = vmul.f32 %v617_v31, %v612_v16 }
  0xf3   :  { %v660_v41 = vmul.f32 %v658_v40, %v653_v28 }
 0x14b   :  { %v622_v19 = vpop.permute.xlu0 %621 }
 0x14c   :  { %v624_v21 = vmul.f32 %v622_v19, %v612_v16 }
 0x14e   :  { %626 = vrot.lane.b32.xlu2 %v624_v21, %s2084_s7 }
 0x153   :  { %v663_v29 = vpop.permute.xlu0 %662 }
 0x154   :  { %v665_v30 = vmul.f32 %v663_v29, %v653_v28 }
 0x156   :  { %667 = vrot.lane.b32.xlu2 %v665_v30, %s2084_s7 }
 0x1a8   :  { %v627_v34 = vpop.permute.xlu2 %626 }
 0x1a9   :  { %v2341_v39 = vadd.f32 %v627_v34, %v619_v32 }
 0x1ab   :  { %1913 = vtanh.f32 %v2341_v39 }
 0x1b0   :  { %v668_v42 = vpop.permute.xlu2 %667 }
 0x1b1   :  { %v1914_v43 = vpop.eup %1913  ;;  %v2344_v47 = vadd.f32 %v668_v42, %v660_v41 }
 0x1b2   :  { %632 = vrot.lane.b32.xlu0 %v1914_v43, %s2084_s7 }
 0x1b3   :  { %1915 = vtanh.f32 %v2344_v47 }
 0x1b9   :  { %v1916_v48 = vpop.eup %1915 }
 0x1ba   :  { %673 = vrot.lane.b32.xlu1 %v1916_v48, %s2084_s7 }
 0x224   :  { %v633_v49 = vpop.permute.xlu0 %632 }
 0x225   :  { %v635_v50 = vmul.f32 %v633_v49, %v612_v16 }
 0x227   :  { %v2349_v51 = vpack.c.bf16 %v635_v50, %v635_v50 }
 0x229   :  { %v693_v52 = vunpack.c.l.b16 %v2349_v51 }
 0x22b   :  { %v694_v55 = vpack.c.b16 %v693_v52, %v693_v52 }
 0x22c   :  { %v674_v35 = vpop.permute.xlu1 %673 }
 0x22d   :  { %v676_v36 = vmul.f32 %v674_v35, %v653_v28  ;;  %695 = vrot.lane.b32.xlu2 %v694_v55, %s2085_s0 }
 0x22f   :  { %v2353_v44 = vpack.c.bf16 %v676_v36, %v676_v36 }
 0x231   :  { %v716_v56 = vunpack.c.l.b16 %v2353_v44 }
 0x233   :  { %v717_v57 = vpack.c.b16 %v716_v56, %v716_v56 }
 0x235   :  { %718 = vrot.lane.b32.xlu0 %v717_v57, %s2085_s0 }
 0x287   :  { %v696_v58 = vpop.permute.xlu2 %695 }
 0x288   :  { %1824 = vmatmul.msk.bf16.vlgmr.msrb.gmra.mxu2 %vm134_vm0, %v696_v58 }
 0x289   :  { %1242 = vmatpush.bf16.msrb.mxu2 %v2190_v8 }
 0x28d   :  { %1243 = vmatpush.bf16.msrb.mxu2 %v2218_v14 }
 0x2a7   :  { %v719_v59 = vpop.permute.xlu0 %718 }
 0x2a8   :  { %1825 = vmatmul.msk.bf16.vlgmr.msrb.gmra.mxu3 %vm134_vm0, %v719_v59 }
 0x2a9   :  { %1265 = vmatpush.bf16.msrb.mxu3 %v2195_v9 }
 0x2ad   :  { %1266 = vmatpush.bf16.msrb.mxu3 %v2223_v15 }
 0x30b   :  { %v709_v37 = vpop.f32.mrf.mxu2 }
 0x30c   :  { %v713_v60 = vadd.f32 %v709_v37, %v2304_v46 }
 0x30e   :  { %1917 = vtanh.f32 %v713_v60  ;;  %v1826_v7 = vmul.f32 -1.442695, %v713_v60 }
 0x313   :  { %v711_v63 = vpop.f32.mrf.mxu2 }
 0x314   :  { %v1918_v0 = vpop.eup %1917 }
 0x315   :  { %759 = vrot.lane.b32.xlu1 %v1918_v0, %s2084_s7 }
 0x32b   :  { %v732_v1 = vpop.f32.mrf.mxu3 }
 0x32c   :  { %v736_v2 = vadd.f32 %v732_v1, %v2332_v33 }
 0x32e   :  { %1919 = vtanh.f32 %v736_v2  ;;  %v1827_v10 = vmul.f32 -1.442695, %v736_v2 }
 0x32f   :  { %1921 = vpow2.f32 %v1826_v7 }
 0x330   :  { %1923 = vpow2.f32 %v1827_v10 }
 0x333   :  { %v734_v3 = vpop.f32.mrf.mxu3 }
 0x334   :  { %v1920_v4 = vpop.eup %1919 }
 0x335   :  { %796 = vrot.lane.b32.xlu2 %v1920_v4, %s2084_s7  ;;  %v1922_v11 = vpop.eup %1921 }
 0x336   :  { %v740_v12 = vadd.f32 1.0, %v1922_v11  ;;  %v1924_v46 = vpop.eup %1923 }
 0x337   :  { %v777_v13 = vadd.f32 1.0, %v1924_v46 }
 0x338   :  { %1925 = vrcp.f32 %v740_v12  ;;  %v752_v27 = vand.u32 2147483648, %v740_v12  ;;  %vm746_vm10 = vweird.f32 %v740_v12  ;;  %v750_v28 = vand.u32 2147483647, %v740_v12 }
 0x339   :  { %1927 = vrcp.f32 %v777_v13  ;;  %v789_v42 = vand.u32 2147483648, %v777_v13  ;;  %vm783_vm14 = vweird.f32 %v777_v13  ;;  %v787_v43 = vand.u32 2147483647, %v777_v13 }
 0x33a   :  { %v753_v31 = vor.u32 1.1754944e-38, %v752_v27  ;;  %vm751_vm12 = vcmp.eq.f32.partialorder %v750_v28, 8.507059e+37 }
 0x33b   :  { %v790_v49 = vor.u32 1.1754944e-38, %v789_v42  ;;  %vm788_vm1 = vcmp.eq.f32.partialorder %v787_v43, 8.507059e+37 }
 0x33e   :  { %v1926_v16 = vpop.eup %1925 }
 0x33f   :  { %v742_v19 = vmul.f32 %v1926_v16, %v740_v12  ;;  %v1928_v21 = vpop.eup %1927  ;;  %vm747_vm9 = vweird.f32 %v1926_v16 }
 0x340   :  { %v779_v22 = vmul.f32 %v1928_v21, %v777_v13  ;;  %vm748_vm11 = vmor %vm746_vm10, %vm747_vm9  ;;  %vm784_vm13 = vweird.f32 %v1928_v21 }
 0x341   :  { %v743_v20 = vsub.f32 1.0, %v742_v19  ;;  %vm785_vm15 = vmor %vm783_vm14, %vm784_vm13 }
 0x342   :  { %v780_v24 = vsub.f32 1.0, %v779_v22 }
 0x343   :  { %v744_v33 = vmul.f32 %v1926_v16, %v743_v20 }
 0x344   :  { %v781_v30 = vmul.f32 %v1928_v21, %v780_v24 }
 0x345   :  { %v745_v23 = vadd.f32 %v1926_v16, %v744_v33 }
 0x346   :  { %v782_v41 = vadd.f32 %v1928_v21, %v781_v30 }
 0x347   :  { %v749_v29 = vsel %vm748_vm11, %v1926_v16, %v745_v23 }
 0x348   :  { %v754_v34 = vsel %vm751_vm12, %v753_v31, %v749_v29  ;;  %v786_v48 = vsel %vm785_vm15, %v1928_v21, %v782_v41 }
 0x349   :  { %v791_v52 = vsel %vm788_vm1, %v790_v49, %v786_v48  ;;  %v757_v35 = vmul.f32 %v754_v34, %v2341_v39 }
 0x34a   :  { %v794_v57 = vmul.f32 %v791_v52, %v2344_v47 }
 0x387   :  { %v760_v32 = vpop.permute.xlu1 %759 }
 0x388   :  { %v762_v40 = vmul.f32 %v760_v32, %v754_v34 }
 0x38a   :  { %764 = vrot.lane.b32.xlu0 %v762_v40, %s2084_s7 }
 0x38f   :  { %v797_v50 = vpop.permute.xlu2 %796 }
 0x390   :  { %v799_v55 = vmul.f32 %v797_v50, %v791_v52 }
 0x392   :  { %801 = vrot.lane.b32.xlu1 %v799_v55, %s2084_s7 }
 0x3fc   :  { %v765_v36 = vpop.permute.xlu0 %764 }
 0x3fd   :  { %v2370_v56 = vadd.f32 %v765_v36, %v757_v35 }
 0x3ff   :  { %1929 = vtanh.f32 %v2370_v56 }
 0x404   :  { %v802_v58 = vpop.permute.xlu1 %801 }
 0x405   :  { %v1930_v59 = vpop.eup %1929  ;;  %v2374_v37 = vadd.f32 %v802_v58, %v794_v57 }
 0x406   :  { %770 = vrot.lane.b32.xlu2 %v1930_v59, %s2084_s7 }
 0x407   :  { %1931 = vtanh.f32 %v2374_v37 }
 0x40d   :  { %v1932_v60 = vpop.eup %1931 }
 0x40e   :  { %807 = vrot.lane.b32.xlu0 %v1932_v60, %s2084_s7 }
 0x460   :  { %v771_v63 = vpop.permute.xlu2 %770 }
 0x461   :  { %v773_v39 = vmul.f32 %v771_v63, %v754_v34 }
 0x463   :  { %v2379_v0 = vpack.c.bf16 %v773_v39, %v773_v39 }
 0x465   :  { %v827_v1 = vunpack.c.l.b16 %v2379_v0 }
 0x467   :  { %v828_v2 = vpack.c.b16 %v827_v1, %v827_v1 }
 0x469   :  { %829 = vrot.lane.b32.xlu1 %v828_v2, %s2085_s0 }
 0x480   :  { %v808_v47 = vpop.permute.xlu0 %807 }
 0x481   :  { %v810_v3 = vmul.f32 %v808_v47, %v791_v52 }
 0x483   :  { %v2383_v4 = vpack.c.bf16 %v810_v3, %v810_v3 }
 0x485   :  { %v850_v7 = vunpack.c.l.b16 %v2383_v4 }
 0x487   :  { %v851_v10 = vpack.c.b16 %v850_v7, %v850_v7 }
 0x489   :  { %852 = vrot.lane.b32.xlu2 %v851_v10, %s2085_s0 }
 0x4db   :  { %v830_v11 = vpop.permute.xlu1 %829 }
 0x4dc   :  { %1830 = vmatmul.msk.bf16.vlgmr.msra.gmra.mxu0 %vm134_vm0, %v830_v11 }
 0x4dd   :  { %1376 = vmatpush.bf16.msra.mxu0 %v2190_v8 }
 0x4e1   :  { %1377 = vmatpush.bf16.msra.mxu0 %v2218_v14 }
 0x4e3   :  { %v853_v12 = vpop.permute.xlu2 %852 }
 0x4e4   :  { %1831 = vmatmul.msk.bf16.vlgmr.msra.gmra.mxu1 %vm134_vm0, %v853_v12 }
 0x4e5   :  { %1399 = vmatpush.bf16.msra.mxu1 %v2195_v9 }
 0x4e9   :  { %1400 = vmatpush.bf16.msra.mxu1 %v2223_v15 }
 0x559   :  { %v843_v46 = vpop.f32.mrf.mxu0 }
 0x55a   :  { %v847_v13 = vadd.f32 %v843_v46, %v2309_v54 }
 0x55c   :  { %1933 = vtanh.f32 %v847_v13  ;;  %v1832_v23 = vmul.f32 -1.442695, %v847_v13 }
 0x561   :  { %v845_v16 = vpop.f32.mrf.mxu0  ;;  %v866_v19 = vpop.f32.mrf.mxu1 }
 0x562   :  { %v1934_v20 = vpop.eup %1933  ;;  %v870_v21 = vadd.f32 %v866_v19, %v2327_v25 }
 0x563   :  { %893 = vrot.lane.b32.xlu0 %v1934_v20, %s2084_s7 }
 0x564   :  { %1935 = vtanh.f32 %v870_v21  ;;  %v1833_v24 = vmul.f32 -1.442695, %v870_v21 }
 0x565   :  { %1937 = vpow2.f32 %v1832_v23 }
 0x566   :  { %1939 = vpow2.f32 %v1833_v24 }
 0x569   :  { %v868_v33 = vpop.f32.mrf.mxu1 }
 0x56a   :  { %v1936_v22 = vpop.eup %1935 }
 0x56b   :  { %930 = vrot.lane.b32.xlu1 %v1936_v22, %s2084_s7  ;;  %v1938_v27 = vpop.eup %1937 }
 0x56c   :  { %v874_v28 = vadd.f32 1.0, %v1938_v27  ;;  %v1940_v54 = vpop.eup %1939 }
 0x56d   :  { %v911_v29 = vadd.f32 1.0, %v1940_v54 }
 0x56e   :  { %1941 = vrcp.f32 %v874_v28  ;;  %v886_v43 = vand.u32 2147483648, %v874_v28  ;;  %vm880_vm3 = vweird.f32 %v874_v28  ;;  %v884_v48 = vand.u32 2147483647, %v874_v28 }
 0x56f   :  { %1943 = vrcp.f32 %v911_v29  ;;  %v923_v58 = vand.u32 2147483648, %v911_v29  ;;  %vm917_vm7 = vweird.f32 %v911_v29  ;;  %v921_v59 = vand.u32 2147483647, %v911_v29 }
 0x570   :  { %v887_v52 = vor.u32 1.1754944e-38, %v886_v43  ;;  %vm885_vm5 = vcmp.eq.f32.partialorder %v884_v48, 8.507059e+37 }
 0x571   :  { %v924_v63 = vor.u32 1.1754944e-38, %v923_v58  ;;  %vm922_vm9 = vcmp.eq.f32.partialorder %v921_v59, 8.507059e+37 }
 0x574   :  { %v1942_v30 = vpop.eup %1941 }
 0x575   :  { %v876_v31 = vmul.f32 %v1942_v30, %v874_v28  ;;  %v1944_v32 = vpop.eup %1943  ;;  %vm881_vm2 = vweird.f32 %v1942_v30 }
 0x576   :  { %v913_v40 = vmul.f32 %v1944_v32, %v911_v29  ;;  %vm882_vm4 = vmor %vm880_vm3, %vm881_vm2  ;;  %vm918_vm6 = vweird.f32 %v1944_v32 }
 0x577   :  { %v877_v25 = vsub.f32 1.0, %v876_v31  ;;  %vm919_vm8 = vmor %vm917_vm7, %vm918_vm6 }
 0x578   :  { %v914_v42 = vsub.f32 1.0, %v913_v40 }
 0x579   :  { %v878_v34 = vmul.f32 %v1942_v30, %v877_v25 }
 0x57a   :  { %v915_v50 = vmul.f32 %v1944_v32, %v914_v42 }
 0x57b   :  { %v879_v41 = vadd.f32 %v1942_v30, %v878_v34 }
 0x57c   :  { %v916_v57 = vadd.f32 %v1944_v32, %v915_v50 }
 0x57d   :  { %v883_v49 = vsel %vm882_vm4, %v1942_v30, %v879_v41 }
 0x57e   :  { %v888_v35 = vsel %vm885_vm5, %v887_v52, %v883_v49  ;;  %v920_v60 = vsel %vm919_vm8, %v1944_v32, %v916_v57 }
 0x57f   :  { %v925_v1 = vsel %vm922_vm9, %v924_v63, %v920_v60  ;;  %v891_v47 = vmul.f32 %v888_v35, %v2370_v56 }
 0x580   :  { %v928_v11 = vmul.f32 %v925_v1, %v2374_v37 }
 0x5d5   :  { %v894_v55 = vpop.permute.xlu0 %893 }
 0x5d6   :  { %v896_v36 = vmul.f32 %v894_v55, %v888_v35 }
 0x5d8   :  { %898 = vrot.lane.b32.xlu2 %v896_v36, %s2084_s7 }
 0x5dd   :  { %v931_v39 = vpop.permute.xlu1 %930 }
 0x5de   :  { %v933_v2 = vmul.f32 %v931_v39, %v925_v1 }
 0x5e0   :  { %935 = vrot.lane.b32.xlu0 %v933_v2, %s2084_s7 }
 0x632   :  { %v899_v3 = vpop.permute.xlu2 %898 }
 0x633   :  { %v2400_v7 = vadd.f32 %v899_v3, %v891_v47 }
 0x635   :  { %1945 = vtanh.f32 %v2400_v7 }
 0x63b   :  { %v1946_v10 = vpop.eup %1945 }
 0x63c   :  { %904 = vrot.lane.b32.xlu1 %v1946_v10, %s2084_s7 }
 0x652   :  { %v936_v12 = vpop.permute.xlu0 %935 }
 0x653   :  { %v2405_v46 = vadd.f32 %v936_v12, %v928_v11 }
 0x655   :  { %1947 = vtanh.f32 %v2405_v46 }
 0x65b   :  { %v1948_v13 = vpop.eup %1947 }
 0x65c   :  { %941 = vrot.lane.b32.xlu2 %v1948_v13, %s2084_s7 }
 0x6ae   :  { %v905_v16 = vpop.permute.xlu1 %904 }
 0x6af   :  { %v907_v56 = vmul.f32 %v905_v16, %v888_v35 }
 0x6b1   :  { %v2409_v19 = vpack.c.bf16 %v907_v56, %v907_v56 }
 0x6b3   :  { %v961_v20 = vunpack.c.l.b16 %v2409_v19 }
 0x6b5   :  { %v962_v21 = vpack.c.b16 %v961_v20, %v961_v20 }
 0x6b6   :  { %v942_v33 = vpop.permute.xlu2 %941 }
 0x6b7   :  { %v944_v22 = vmul.f32 %v942_v33, %v925_v1  ;;  %963 = vrot.lane.b32.xlu0 %v962_v21, %s2085_s0 }
 0x6b9   :  { %v2413_v37 = vpack.c.bf16 %v944_v22, %v944_v22 }
 0x6bb   :  { %v984_v23 = vunpack.c.l.b16 %v2413_v37 }
 0x6bd   :  { %v985_v24 = vpack.c.b16 %v984_v23, %v984_v23 }
 0x6bf   :  { %986 = vrot.lane.b32.xlu1 %v985_v24, %s2085_s0 }
 0x729   :  { %v964_v27 = vpop.permute.xlu0 %963 }
 0x72a   :  { %1836 = vmatmul.msk.bf16.vlgmr.msra.gmra.mxu2 %vm134_vm0, %v964_v27 }
 0x72b   :  { %1510 = vmatpush.bf16.msra.mxu2 %v2190_v8 }
 0x72f   :  { %1511 = vmatpush.bf16.msra.mxu2 %v2218_v14 }
 0x731   :  { %v987_v28 = vpop.permute.xlu1 %986 }
 0x732   :  { %1837 = vmatmul.msk.bf16.vlgmr.msra.gmra.mxu3 %vm134_vm0, %v987_v28 }
 0x733   :  { %1532 = vmatpush.bf16.msra.mxu3 %v2195_v9 }
 0x737   :  { %1533 = vmatpush.bf16.msra.mxu3 %v2223_v15 }
 0x7ad   :  { %v977_v54 = vpop.f32.mrf.mxu2 }
 0x7ae   :  { %v981_v29 = vadd.f32 %v977_v54, %v2314_v62 }
 0x7b0   :  { %1949 = vtanh.f32 %v981_v29  ;;  %v1838_v34 = vmul.f32 -1.442695, %v981_v29 }
 0x7b5   :  { %v979_v30 = vpop.f32.mrf.mxu2  ;;  %v1000_v31 = vpop.f32.mrf.mxu3 }
 0x7b6   :  { %v1950_v25 = vpop.eup %1949  ;;  %v1004_v32 = vadd.f32 %v1000_v31, %v2322_v17 }
 0x7b7   :  { %1027 = vrot.lane.b32.xlu2 %v1950_v25, %s2084_s7 }
 0x7b8   :  { %1951 = vtanh.f32 %v1004_v32  ;;  %v1839_v42 = vmul.f32 -1.442695, %v1004_v32 }
 0x7b9   :  { %1953 = vpow2.f32 %v1838_v34 }
 0x7bd   :  { %v1002_v8 = vpop.f32.mrf.mxu3 }
 0x7be   :  { %v1952_v14 = vpop.eup %1951 }
 0x7bf   :  { %1064 = vrot.lane.b32.xlu0 %v1952_v14, %s2084_s7  ;;  %v1954_v9 = vpop.eup %1953 }
 0x7c0   :  { %v1008_v15 = vadd.f32 1.0, %v1954_v9 }
 0x7c2   :  { %1955 = vrcp.f32 %v1008_v15  ;;  %v1020_v17 = vand.u32 2147483648, %v1008_v15  ;;  %vm1014_vm11 = vweird.f32 %v1008_v15  ;;  %v1018_v49 = vand.u32 2147483647, %v1008_v15 }
 0x7c3   :  { %1957 = vpow2.f32 %v1839_v42 }
 0x7c4   :  { %v1021_v55 = vor.u32 1.1754944e-38, %v1020_v17  ;;  %vm1019_vm13 = vcmp.eq.f32.partialorder %v1018_v49, 8.507059e+37 }
 0x7c8   :  { %v1956_v40 = vpop.eup %1955 }
 0x7c9   :  { %v1010_v62 = vmul.f32 %v1956_v40, %v1008_v15  ;;  %vm1015_vm10 = vweird.f32 %v1956_v40  ;;  %v1958_v50 = vpop.eup %1957 }
 0x7ca   :  { %vm1016_vm12 = vmor %vm1014_vm11, %vm1015_vm10  ;;  %v1045_v35 = vadd.f32 1.0, %v1958_v50 }
 0x7cb   :  { %v1011_v41 = vsub.f32 1.0, %v1010_v62 }
 0x7cc   :  { %1959 = vrcp.f32 %v1045_v35  ;;  %v1057_v2 = vand.u32 2147483648, %v1045_v35  ;;  %vm1051_vm15 = vweird.f32 %v1045_v35  ;;  %v1055_v47 = vand.u32 2147483647, %v1045_v35 }
 0x7cd   :  { %v1012_v43 = vmul.f32 %v1956_v40, %v1011_v41 }
 0x7ce   :  { %v1058_v10 = vor.u32 1.1754944e-38, %v1057_v2  ;;  %vm1056_vm2 = vcmp.eq.f32.partialorder %v1055_v47, 8.507059e+37 }
 0x7cf   :  { %v1013_v48 = vadd.f32 %v1956_v40, %v1012_v43 }
 0x7d1   :  { %v1017_v52 = vsel %vm1016_vm12, %v1956_v40, %v1013_v48 }
 0x7d2   :  { %v1022_v57 = vsel %vm1019_vm13, %v1021_v55, %v1017_v52  ;;  %v1960_v59 = vpop.eup %1959 }
 0x7d3   :  { %v1047_v60 = vmul.f32 %v1960_v59, %v1045_v35  ;;  %vm1052_vm14 = vweird.f32 %v1960_v59  ;;  %v1025_v16 = vmul.f32 %v1022_v57, %v2400_v7 }
 0x7d4   :  { %vm1053_vm1 = vmor %vm1051_vm15, %vm1052_vm14 }
 0x7d5   :  { %v1048_v63 = vsub.f32 1.0, %v1047_v60 }
 0x7d7   :  { %v1049_v39 = vmul.f32 %v1960_v59, %v1048_v63 }
 0x7d9   :  { %v1050_v1 = vadd.f32 %v1960_v59, %v1049_v39 }
 0x7db   :  { %v1054_v3 = vsel %vm1053_vm1, %v1960_v59, %v1050_v1 }
 0x7dc   :  { %v1059_v12 = vsel %vm1056_vm2, %v1058_v10, %v1054_v3 }
 0x7dd   :  { %v1062_v21 = vmul.f32 %v1059_v12, %v2405_v46 }
 0x811   :  { %v1028_v36 = vpop.permute.xlu2 %1027 }
 0x812   :  { %v1030_v58 = vmul.f32 %v1028_v36, %v1022_v57 }
 0x814   :  { %1032 = vrot.lane.b32.xlu1 %v1030_v58, %s2084_s7 }
 0x831   :  { %v1065_v11 = vpop.permute.xlu0 %1064 }
 0x832   :  { %v1067_v13 = vmul.f32 %v1065_v11, %v1059_v12 }
 0x834   :  { %1069 = vrot.lane.b32.xlu2 %v1067_v13, %s2084_s7 }
 0x886   :  { %v1033_v56 = vpop.permute.xlu1 %1032 }
 0x887   :  { %v2430_v20 = vadd.f32 %v1033_v56, %v1025_v16 }
 0x889   :  { %1961 = vtanh.f32 %v2430_v20 }
 0x88e   :  { %v1070_v33 = vpop.permute.xlu2 %1069 }
 0x88f   :  { %v1962_v22 = vpop.eup %1961  ;;  %v2434_v23 = vadd.f32 %v1070_v33, %v1062_v21 }
 0x890   :  { %1038 = vrot.lane.b32.xlu0 %v1962_v22, %s2084_s7 }
 0x891   :  { %1963 = vtanh.f32 %v2434_v23 }
 0x897   :  { %v1964_v24 = vpop.eup %1963 }
 0x898   :  { %1075 = vrot.lane.b32.xlu1 %v1964_v24, %s2084_s7 }
 0x902   :  { %v1039_v27 = vpop.permute.xlu0 %1038 }
 0x903   :  { %v1041_v7 = vmul.f32 %v1039_v27, %v1022_v57 }
 0x905   :  { %v2439_v28 = vpack.c.bf16 %v1041_v7, %v1041_v7 }
 0x907   :  { %v1095_v54 = vunpack.c.l.b16 %v2439_v28 }
 0x909   :  { %v1096_v29 = vpack.c.b16 %v1095_v54, %v1095_v54 }
 0x90a   :  { %v1076_v30 = vpop.permute.xlu1 %1075 }
 0x90b   :  { %v1078_v46 = vmul.f32 %v1076_v30, %v1059_v12  ;;  %1097 = vrot.lane.b32.xlu2 %v1096_v29, %s2085_s0 }
 0x90d   :  { %v2443_v31 = vpack.c.bf16 %v1078_v46, %v1078_v46 }
 0x90f   :  { %v1118_v25 = vunpack.c.l.b16 %v2443_v31 }
 0x911   :  { %v1119_v32 = vpack.c.b16 %v1118_v25, %v1118_v25 }
 0x913   :  { %1120 = vrot.lane.b32.xlu0 %v1119_v32, %s2085_s0 }
 0x965   :  { %v1098_v8 = vpop.permute.xlu2 %1097 }
 0x966   :  { %1842 = vmatmul.msk.bf16.vlgmr.msrb.gmra.mxu0 %vm134_vm0, %v1098_v8 }
 0x985   :  { %v1121_v14 = vpop.permute.xlu0 %1120 }
 0x986   :  { %1843 = vmatmul.msk.bf16.vlgmr.msrb.gmra.mxu1 %vm134_vm0, %v1121_v14 }
 0x9e3   :  { %v1111_v34 = vpop.f32.mrf.mxu0 }
 0x9e4   :  { %v1115_v9 = vadd.f32 %v1111_v34, %v2319_v6 }
 0x9e6   :  { %1965 = vtanh.f32 %v1115_v9  ;;  %v1844_v48 = vmul.f32 -1.442695, %v1115_v9 }
 0x9eb   :  { %v1113_v15 = vpop.f32.mrf.mxu0 }
 0x9ec   :  { %v1966_v40 = vpop.eup %1965 }
 0x9ed   :  { %1161 = vrot.lane.b32.xlu1 %v1966_v40, %s2084_s7 }
 0xa03   :  { %v1134_v62 = vpop.f32.mrf.mxu1 }
 0xa04   :  { %v1138_v41 = vadd.f32 %v1134_v62, %v2317_v5 }
 0xa06   :  { %1967 = vtanh.f32 %v1138_v41  ;;  %v1845_v17 = vmul.f32 -1.442695, %v1138_v41 }
 0xa07   :  { %1969 = vpow2.f32 %v1844_v48 }
 0xa08   :  { %1971 = vpow2.f32 %v1845_v17 }
 0xa0b   :  { %v1136_v42 = vpop.f32.mrf.mxu1 }
 0xa0c   :  { %v1968_v43 = vpop.eup %1967 }
 0xa0d   :  { %1198 = vrot.lane.b32.xlu2 %v1968_v43, %s2084_s7  ;;  %v1970_v49 = vpop.eup %1969 }
 0xa0e   :  { %v1142_v50 = vadd.f32 1.0, %v1970_v49  ;;  %v1972_v6 = vpop.eup %1971 }
 0xa0f   :  { %v1179_v52 = vadd.f32 1.0, %v1972_v6 }
 0xa10   :  { %1973 = vrcp.f32 %v1142_v50  ;;  %v1154_v63 = vand.u32 2147483648, %v1142_v50  ;;  %vm1148_vm4 = vweird.f32 %v1142_v50  ;;  %v1152_v39 = vand.u32 2147483647, %v1142_v50 }
 0xa11   :  { %1975 = vrcp.f32 %v1179_v52  ;;  %v1191_v13 = vand.u32 2147483648, %v1179_v52  ;;  %vm1185_vm8 = vweird.f32 %v1179_v52  ;;  %v1189_v16 = vand.u32 2147483647, %v1179_v52 }
 0xa12   :  { %v1155_v47 = vor.u32 1.1754944e-38, %v1154_v63  ;;  %vm1153_vm6 = vcmp.eq.f32.partialorder %v1152_v39, 8.507059e+37 }
 0xa13   :  { %v1192_v21 = vor.u32 1.1754944e-38, %v1191_v13  ;;  %vm1190_vm10 = vcmp.eq.f32.partialorder %v1189_v16, 8.507059e+37 }
 0xa16   :  { %v1974_v55 = vpop.eup %1973 }
 0xa17   :  { %v1144_v35 = vmul.f32 %v1974_v55, %v1142_v50  ;;  %v1976_v57 = vpop.eup %1975  ;;  %vm1149_vm3 = vweird.f32 %v1974_v55 }
 0xa18   :  { %v1181_v58 = vmul.f32 %v1976_v57, %v1179_v52  ;;  %vm1150_vm5 = vmor %vm1148_vm4, %vm1149_vm3  ;;  %vm1186_vm7 = vweird.f32 %v1976_v57 }
 0xa19   :  { %v1145_v36 = vsub.f32 1.0, %v1144_v35  ;;  %vm1187_vm9 = vmor %vm1185_vm8, %vm1186_vm7 }
 0xa1a   :  { %v1182_v60 = vsub.f32 1.0, %v1181_v58 }
 0xa1b   :  { %v1146_v5 = vmul.f32 %v1974_v55, %v1145_v36 }
 0xa1c   :  { %v1183_v2 = vmul.f32 %v1976_v57, %v1182_v60 }
 0xa1d   :  { %v1147_v59 = vadd.f32 %v1974_v55, %v1146_v5 }
 0xa1e   :  { %v1184_v12 = vadd.f32 %v1976_v57, %v1183_v2 }
 0xa1f   :  { %v1151_v1 = vsel %vm1150_vm5, %v1974_v55, %v1147_v59 }
 0xa20   :  { %v1156_v10 = vsel %vm1153_vm6, %v1155_v47, %v1151_v1  ;;  %v1188_v56 = vsel %vm1187_vm9, %v1976_v57, %v1184_v12 }
 0xa21   :  { %v1193_v22 = vsel %vm1190_vm10, %v1192_v21, %v1188_v56  ;;  %v1159_v27 = vmul.f32 %v1156_v10, %v2430_v20 }
 0xa22   :  { %v1196_v29 = vmul.f32 %v1193_v22, %v2434_v23 }
 0xa5f   :  { %v1162_v3 = vpop.permute.xlu1 %1161 }
 0xa60   :  { %v1164_v11 = vmul.f32 %v1162_v3, %v1156_v10 }
 0xa62   :  { %1166 = vrot.lane.b32.xlu0 %v1164_v11, %s2084_s7 }
 0xa67   :  { %v1199_v33 = vpop.permute.xlu2 %1198 }
 0xa68   :  { %v1201_v24 = vmul.f32 %v1199_v33, %v1193_v22 }
 0xa6a   :  { %1203 = vrot.lane.b32.xlu1 %v1201_v24, %s2084_s7 }
 0xad4   :  { %v1167_v7 = vpop.permute.xlu0 %1166 }
 0xad5   :  { %v2456_v54 = vadd.f32 %v1167_v7, %v1159_v27 }
 0xad7   :  { %1977 = vtanh.f32 %v2456_v54 }
 0xadc   :  { %v1204_v30 = vpop.permute.xlu1 %1203 }
 0xadd   :  { %v1978_v46 = vpop.eup %1977  ;;  %v2460_v25 = vadd.f32 %v1204_v30, %v1196_v29 }
 0xade   :  { %1172 = vrot.lane.b32.xlu2 %v1978_v46, %s2084_s7 }
 0xadf   :  { %1979 = vtanh.f32 %v2460_v25 }
 0xae5   :  { %v1980_v32 = vpop.eup %1979 }
 0xae6   :  { %1209 = vrot.lane.b32.xlu0 %v1980_v32, %s2084_s7 }
 0xb38   :  { %v1173_v8 = vpop.permute.xlu2 %1172 }
 0xb39   :  { %v1175_v20 = vmul.f32 %v1173_v8, %v1156_v10 }
 0xb3b   :  { %v2465_v14 = vpack.c.bf16 %v1175_v20, %v1175_v20 }
 0xb3d   :  { %v1229_v34 = vunpack.c.l.b16 %v2465_v14 }
 0xb3f   :  { %v1230_v9 = vpack.c.b16 %v1229_v34, %v1229_v34 }
 0xb41   :  { %1231 = vrot.lane.b32.xlu1 %v1230_v9, %s2085_s0 }
 0xb58   :  { %v1210_v23 = vpop.permute.xlu0 %1209 }
 0xb59   :  { %v1212_v15 = vmul.f32 %v1210_v23, %v1193_v22 }
 0xb5b   :  { %v2469_v40 = vpack.c.bf16 %v1212_v15, %v1212_v15 }
 0xb5d   :  { %v1252_v62 = vunpack.c.l.b16 %v2469_v40 }
 0xb5f   :  { %v1253_v41 = vpack.c.b16 %v1252_v62, %v1252_v62 }
 0xb61   :  { %1254 = vrot.lane.b32.xlu2 %v1253_v41, %s2085_s0 }
 0xbb3   :  { %v1232_v42 = vpop.permute.xlu1 %1231 }
 0xbb4   :  { %1848 = vmatmul.msk.bf16.vlgmr.msrb.gmra.mxu2 %vm134_vm0, %v1232_v42 }
 0xbbb   :  { %v1255_v43 = vpop.permute.xlu2 %1254 }
 0xbbc   :  { %1849 = vmatmul.msk.bf16.vlgmr.msrb.gmra.mxu3 %vm134_vm0, %v1255_v43 }
 0xc37   :  { %v1245_v48 = vpop.f32.mrf.mxu2 }
 0xc38   :  { %v1249_v17 = vadd.f32 %v1245_v48, %v2324_v18 }
 0xc3a   :  { %1981 = vtanh.f32 %v1249_v17  ;;  %v1850_v36 = vmul.f32 -1.442695, %v1249_v17 }
 0xc3f   :  { %v1247_v49 = vpop.f32.mrf.mxu2  ;;  %v1268_v50 = vpop.f32.mrf.mxu3 }
 0xc40   :  { %v1982_v6 = vpop.eup %1981  ;;  %v1272_v52 = vadd.f32 %v1268_v50, %v2312_v61 }
 0xc41   :  { %1295 = vrot.lane.b32.xlu0 %v1982_v6, %s2084_s7 }
 0xc42   :  { %1983 = vtanh.f32 %v1272_v52  ;;  %v1851_v57 = vmul.f32 -1.442695, %v1272_v52 }
 0xc43   :  { %1985 = vpow2.f32 %v1850_v36 }
 0xc44   :  { %1987 = vpow2.f32 %v1851_v57 }
 0xc47   :  { %v1270_v55 = vpop.f32.mrf.mxu3 }
 0xc48   :  { %v1984_v35 = vpop.eup %1983 }
 0xc49   :  { %1332 = vrot.lane.b32.xlu1 %v1984_v35, %s2084_s7  ;;  %v1986_v5 = vpop.eup %1985 }
 0xc4a   :  { %v1276_v58 = vadd.f32 1.0, %v1986_v5  ;;  %v1988_v18 = vpop.eup %1987 }
 0xc4b   :  { %v1313_v59 = vadd.f32 1.0, %v1988_v18 }
 0xc4c   :  { %1989 = vrcp.f32 %v1276_v58  ;;  %v1288_v10 = vand.u32 2147483648, %v1276_v58  ;;  %vm1282_vm12 = vweird.f32 %v1276_v58  ;;  %v1286_v11 = vand.u32 2147483647, %v1276_v58 }
 0xc4d   :  { %1991 = vrcp.f32 %v1313_v59  ;;  %v1325_v24 = vand.u32 2147483648, %v1313_v59  ;;  %vm1319_vm1 = vweird.f32 %v1313_v59  ;;  %v1323_v27 = vand.u32 2147483647, %v1313_v59 }
 0xc4e   :  { %v1289_v16 = vor.u32 1.1754944e-38, %v1288_v10  ;;  %vm1287_vm14 = vcmp.eq.f32.partialorder %v1286_v11, 8.507059e+37 }
 0xc4f   :  { %v1326_v29 = vor.u32 1.1754944e-38, %v1325_v24  ;;  %vm1324_vm3 = vcmp.eq.f32.partialorder %v1323_v27, 8.507059e+37 }
 0xc52   :  { %v1990_v60 = vpop.eup %1989 }
 0xc53   :  { %v1278_v63 = vmul.f32 %v1990_v60, %v1276_v58  ;;  %v1992_v39 = vpop.eup %1991  ;;  %vm1283_vm11 = vweird.f32 %v1990_v60 }
 0xc54   :  { %v1315_v2 = vmul.f32 %v1992_v39, %v1313_v59  ;;  %vm1284_vm13 = vmor %vm1282_vm12, %vm1283_vm11  ;;  %vm1320_vm15 = vweird.f32 %v1992_v39 }
 0xc55   :  { %v1279_v61 = vsub.f32 1.0, %v1278_v63  ;;  %vm1321_vm2 = vmor %vm1319_vm1, %vm1320_vm15 }
 0xc56   :  { %v1316_v3 = vsub.f32 1.0, %v1315_v2 }
 0xc57   :  { %v1280_v1 = vmul.f32 %v1990_v60, %v1279_v61 }
 0xc58   :  { %v1317_v13 = vmul.f32 %v1992_v39, %v1316_v3 }
 0xc59   :  { %v1281_v47 = vadd.f32 %v1990_v60, %v1280_v1 }
 0xc5a   :  { %v1318_v22 = vadd.f32 %v1992_v39, %v1317_v13 }
 0xc5b   :  { %v1285_v12 = vsel %vm1284_vm13, %v1990_v60, %v1281_v47 }
 0xc5c   :  { %v1290_v21 = vsel %vm1287_vm14, %v1289_v16, %v1285_v12  ;;  %v1322_v7 = vsel %vm1321_vm2, %v1992_v39, %v1318_v22 }
 0xc5d   :  { %v1327_v46 = vsel %vm1324_vm3, %v1326_v29, %v1322_v7  ;;  %v1293_v8 = vmul.f32 %v1290_v21, %v2456_v54 }
 0xc5e   :  { %v1330_v23 = vmul.f32 %v1327_v46, %v2460_v25 }
 0xcb3   :  { %v1296_v56 = vpop.permute.xlu0 %1295 }
 0xcb4   :  { %v1298_v33 = vmul.f32 %v1296_v56, %v1290_v21 }
 0xcb6   :  { %1300 = vrot.lane.b32.xlu2 %v1298_v33, %s2084_s7 }
 0xcbb   :  { %v1333_v30 = vpop.permute.xlu1 %1332 }
 0xcbc   :  { %v1335_v32 = vmul.f32 %v1333_v30, %v1327_v46 }
 0xcbe   :  { %1337 = vrot.lane.b32.xlu0 %v1335_v32, %s2084_s7 }
 0xd10   :  { %v1301_v20 = vpop.permute.xlu2 %1300 }
 0xd11   :  { %v2482_v34 = vadd.f32 %v1301_v20, %v1293_v8 }
 0xd13   :  { %1993 = vtanh.f32 %v2482_v34 }
 0xd19   :  { %v1994_v9 = vpop.eup %1993 }
 0xd1a   :  { %1306 = vrot.lane.b32.xlu1 %v1994_v9, %s2084_s7 }
 0xd30   :  { %v1338_v15 = vpop.permute.xlu0 %1337 }
 0xd31   :  { %v2487_v62 = vadd.f32 %v1338_v15, %v1330_v23 }
 0xd33   :  { %1995 = vtanh.f32 %v2487_v62 }
 0xd39   :  { %v1996_v41 = vpop.eup %1995 }
 0xd3a   :  { %1343 = vrot.lane.b32.xlu2 %v1996_v41, %s2084_s7 }
 0xd8c   :  { %v1307_v42 = vpop.permute.xlu1 %1306 }
 0xd8d   :  { %v1309_v54 = vmul.f32 %v1307_v42, %v1290_v21 }
 0xd8f   :  { %v2491_v43 = vpack.c.bf16 %v1309_v54, %v1309_v54 }
 0xd91   :  { %v1363_v48 = vunpack.c.l.b16 %v2491_v43 }
 0xd93   :  { %v1364_v17 = vpack.c.b16 %v1363_v48, %v1363_v48 }
 0xd94   :  { %v1344_v49 = vpop.permute.xlu2 %1343 }
 0xd95   :  { %v1346_v50 = vmul.f32 %v1344_v49, %v1327_v46  ;;  %1365 = vrot.lane.b32.xlu0 %v1364_v17, %s2085_s0 }
 0xd97   :  { %v2495_v25 = vpack.c.bf16 %v1346_v50, %v1346_v50 }
 0xd99   :  { %v1386_v6 = vunpack.c.l.b16 %v2495_v25 }
 0xd9b   :  { %v1387_v52 = vpack.c.b16 %v1386_v6, %v1386_v6 }
 0xd9d   :  { %1388 = vrot.lane.b32.xlu1 %v1387_v52, %s2085_s0 }
 0xe07   :  { %v1366_v55 = vpop.permute.xlu0 %1365 }
 0xe08   :  { %1854 = vmatmul.msk.bf16.vlgmr.msra.gmra.mxu0 %vm134_vm0, %v1366_v55 }
 0xe0f   :  { %v1389_v35 = vpop.permute.xlu1 %1388 }
 0xe10   :  { %1855 = vmatmul.msk.bf16.vlgmr.msra.gmra.mxu1 %vm134_vm0, %v1389_v35 }
 0xe85   :  { %v1379_v36 = vpop.f32.mrf.mxu0 }
 0xe86   :  { %v1383_v57 = vadd.f32 %v1379_v36, %v2329_v26 }
 0xe88   :  { %1997 = vtanh.f32 %v1383_v57  ;;  %v1856_v61 = vmul.f32 -1.442695, %v1383_v57 }
 0xe8d   :  { %v1381_v5 = vpop.f32.mrf.mxu0  ;;  %v1402_v58 = vpop.f32.mrf.mxu1 }
 0xe8e   :  { %v1998_v18 = vpop.eup %1997  ;;  %v1406_v59 = vadd.f32 %v1402_v58, %v2307_v53 }
 0xe8f   :  { %1429 = vrot.lane.b32.xlu2 %v1998_v18, %s2084_s7 }
 0xe90   :  { %1999 = vtanh.f32 %v1406_v59  ;;  %v1857_v3 = vmul.f32 -1.442695, %v1406_v59 }
 0xe91   :  { %2001 = vpow2.f32 %v1856_v61 }
 0xe95   :  { %v1404_v60 = vpop.f32.mrf.mxu1 }
 0xe96   :  { %v2000_v63 = vpop.eup %1999 }
 0xe97   :  { %1466 = vrot.lane.b32.xlu0 %v2000_v63, %s2084_s7  ;;  %v2002_v39 = vpop.eup %2001 }
 0xe98   :  { %v1410_v1 = vadd.f32 1.0, %v2002_v39 }
 0xe9a   :  { %2003 = vrcp.f32 %v1410_v1  ;;  %v1422_v53 = vand.u32 2147483648, %v1410_v1  ;;  %vm1416_vm5 = vweird.f32 %v1410_v1  ;;  %v1420_v12 = vand.u32 2147483647, %v1410_v1 }
 0xe9b   :  { %2005 = vpow2.f32 %v1857_v3 }
 0xe9c   :  { %v1423_v56 = vor.u32 1.1754944e-38, %v1422_v53  ;;  %vm1421_vm7 = vcmp.eq.f32.partialorder %v1420_v12, 8.507059e+37 }
 0xea0   :  { %v2004_v2 = vpop.eup %2003 }
 0xea1   :  { %v1412_v26 = vmul.f32 %v2004_v2, %v1410_v1  ;;  %vm1417_vm4 = vweird.f32 %v2004_v2  ;;  %v2006_v13 = vpop.eup %2005 }
 0xea2   :  { %vm1418_vm6 = vmor %vm1416_vm5, %vm1417_vm4  ;;  %v1447_v21 = vadd.f32 1.0, %v2006_v13  ;;  %vm682_vm5 = vcmask 257024  }
 0xea3   :  { %v1413_v47 = vsub.f32 1.0, %v1412_v26 }
 0xea4   :  { %2007 = vrcp.f32 %v1447_v21  ;;  %v1459_v32 = vand.u32 2147483648, %v1447_v21  ;;  %vm1453_vm9 = vweird.f32 %v1447_v21  ;;  %v1457_v8 = vand.u32 2147483647, %v1447_v21 }
 0xea5   :  { %v1414_v10 = vmul.f32 %v2004_v2, %v1413_v47 }
 0xea6   :  { %v1460_v9 = vor.u32 1.1754944e-38, %v1459_v32  ;;  %vm1458_vm11 = vcmp.eq.f32.partialorder %v1457_v8, 8.507059e+37 }
 0xea7   :  { %v1415_v11 = vadd.f32 %v2004_v2, %v1414_v10 }
 0xea9   :  { %v1419_v16 = vsel %vm1418_vm6, %v2004_v2, %v1415_v11 }
 0xeaa   :  { %v1424_v22 = vsel %vm1421_vm7, %v1423_v56, %v1419_v16  ;;  %v2008_v27 = vpop.eup %2007 }
 0xeab   :  { %v1449_v7 = vmul.f32 %v2008_v27, %v1447_v21  ;;  %vm1454_vm8 = vweird.f32 %v2008_v27  ;;  %v1427_v42 = vmul.f32 %v1424_v22, %v2482_v34 }
 0xeac   :  { %vm1455_vm10 = vmor %vm1453_vm9, %vm1454_vm8 }
 0xead   :  { %v1450_v29 = vsub.f32 1.0, %v1449_v7 }
 0xeaf   :  { %v1451_v30 = vmul.f32 %v2008_v27, %v1450_v29 }
 0xeb1   :  { %v1452_v46 = vadd.f32 %v2008_v27, %v1451_v30 }
 0xeb3   :  { %v1456_v20 = vsel %vm1455_vm10, %v2008_v27, %v1452_v46 }
 0xeb4   :  { %v1461_v15 = vsel %vm1458_vm11, %v1460_v9, %v1456_v20 }
 0xeb5   :  { %v1464_v17 = vmul.f32 %v1461_v15, %v2487_v62 }
 0xee9   :  { %v1430_v33 = vpop.permute.xlu2 %1429 }
 0xeea   :  { %v1432_v24 = vmul.f32 %v1430_v33, %v1424_v22 }
 0xeec   :  { %1434 = vrot.lane.b32.xlu1 %v1432_v24, %s2084_s7 }
 0xf09   :  { %v1467_v23 = vpop.permute.xlu0 %1466 }
 0xf0a   :  { %v1469_v41 = vmul.f32 %v1467_v23, %v1461_v15 }
 0xf0c   :  { %1471 = vrot.lane.b32.xlu2 %v1469_v41, %s2084_s7 }
 0xf5e   :  { %v1435_v54 = vpop.permute.xlu1 %1434 }
 0xf5f   :  { %v2508_v48 = vadd.f32 %v1435_v54, %v1427_v42 }
 0xf61   :  { %2009 = vtanh.f32 %v2508_v48 }
 0xf66   :  { %v1472_v49 = vpop.permute.xlu2 %1471 }
 0xf67   :  { %v2010_v50 = vpop.eup %2009  ;;  %v2512_v6 = vadd.f32 %v1472_v49, %v1464_v17 }
 0xf68   :  { %1440 = vrot.lane.b32.xlu0 %v2010_v50, %s2084_s7 }
 0xf69   :  { %2011 = vtanh.f32 %v2512_v6 }
 0xf6f   :  { %v2012_v52 = vpop.eup %2011 }
 0xf70   :  { %1477 = vrot.lane.b32.xlu1 %v2012_v52, %s2084_s7 }
 0xfda   :  { %v1441_v55 = vpop.permute.xlu0 %1440 }
 0xfdb   :  { %v1443_v34 = vmul.f32 %v1441_v55, %v1424_v22 }
 0xfdd   :  { %v2517_v35 = vpack.c.bf16 %v1443_v34, %v1443_v34 }
 0xfdf   :  { %v1497_v36 = vunpack.c.l.b16 %v2517_v35 }
 0xfe1   :  { %v1498_v57 = vpack.c.b16 %v1497_v36, %v1497_v36 }
 0xfe2   :  { %v1478_v5 = vpop.permute.xlu1 %1477 }
 0xfe3   :  { %v1480_v62 = vmul.f32 %v1478_v5, %v1461_v15  ;;  %1499 = vrot.lane.b32.xlu2 %v1498_v57, %s2085_s0 }
 0xfe5   :  { %v2521_v58 = vpack.c.bf16 %v1480_v62, %v1480_v62 }
 0xfe7   :  { %v1519_v18 = vunpack.c.l.b16 %v2521_v58 }
 0xfe9   :  { %v1520_v59 = vpack.c.b16 %v1519_v18, %v1519_v18 }
 0xfeb   :  { %1521 = vrot.lane.b32.xlu0 %v1520_v59, %s2085_s0 }
0x103d   :  { %v1500_v60 = vpop.permute.xlu2 %1499 }
0x103e   :  { %1860 = vmatmul.msk.bf16.vlgmr.msra.gmra.mxu2 %vm134_vm0, %v1500_v60 }
0x105d   :  { %v1522_v63 = vpop.permute.xlu0 %1521 }
0x105e   :  { %1861 = vmatmul.msk.bf16.vlgmr.msra.gmra.mxu3 %vm134_vm0, %v1522_v63 }
0x10c1   :  { %v1513_v61 = vpop.f32.mrf.mxu2 }
0x10c2   :  { %v1517_v39 = vadd.f32 %v1513_v61, %v2334_v38 }
0x10c4   :  { %2013 = vtanh.f32 %v1517_v39  ;;  %v1862_v11 = vmul.f32 -1.442695, %v1517_v39 }
0x10c9   :  { %v1515_v1 = vpop.f32.mrf.mxu2 }
0x10ca   :  { %v2014_v2 = vpop.eup %2013 }
0x10cb   :  { %1562 = vrot.lane.b32.xlu1 %v2014_v2, %s2084_s7 }
0x10e1   :  { %v1535_v26 = vpop.f32.mrf.mxu3 }
0x10e2   :  { %v1539_v47 = vadd.f32 %v1535_v26, %v2302_v45 }
0x10e4   :  { %2015 = vtanh.f32 %v1539_v47  ;;  %v1863_v53 = vmul.f32 -1.442695, %v1539_v47 }
0x10e5   :  { %2017 = vpow2.f32 %v1862_v11 }
0x10e6   :  { %2019 = vpow2.f32 %v1863_v53 }
0x10e9   :  { %v1537_v3 = vpop.f32.mrf.mxu3 }
0x10ea   :  { %v2016_v10 = vpop.eup %2015 }
0x10eb   :  { %1599 = vrot.lane.b32.xlu2 %v2016_v10, %s2084_s7  ;;  %v2018_v38 = vpop.eup %2017 }
0x10ec   :  { %v1543_v12 = vadd.f32 1.0, %v2018_v38  ;;  %v2020_v13 = vpop.eup %2019 }
0x10ed   :  { %v1580_v16 = vadd.f32 1.0, %v2020_v13 }
0x10ee   :  { %2021 = vrcp.f32 %v1543_v12  ;;  %vm1549_vm13 = vweird.f32 %v1543_v12  ;;  %v1553_v29 = vand.u32 2147483647, %v1543_v12 }
0x10ef   :  { %2023 = vrcp.f32 %v1580_v16  ;;  %v1592_v15 = vand.u32 2147483648, %v1580_v16  ;;  %vm1586_vm2 = vweird.f32 %v1580_v16  ;;  %v1590_v41 = vand.u32 2147483647, %v1580_v16 }
0x10f0   :  { %vm1554_vm15 = vcmp.eq.f32.partialorder %v1553_v29, 8.507059e+37 }
0x10f1   :  { %v1593_v54 = vor.u32 1.1754944e-38, %v1592_v15  ;;  %vm1591_vm4 = vcmp.eq.f32.partialorder %v1590_v41, 8.507059e+37 }
0x10f3   :  { %686 = vrot.lane.b32.xlu2 %v2353_v44, %s2085_s0  ;;  %v1555_v44 = vand.u32 2147483648, %v1543_v12 }
0x10f4   :  { %v2022_v56 = vpop.eup %2021 }
0x10f5   :  { %v1545_v45 = vmul.f32 %v2022_v56, %v1543_v12  ;;  %v2024_v33 = vpop.eup %2023  ;;  %vm1550_vm12 = vweird.f32 %v2022_v56  ;;  %v1556_v32 = vor.u32 1.1754944e-38, %v1555_v44 }
0x10f6   :  { %v1582_v24 = vmul.f32 %v2024_v33, %v1580_v16  ;;  %vm1551_vm14 = vmor %vm1549_vm13, %vm1550_vm12  ;;  %vm1587_vm1 = vweird.f32 %v2024_v33 }
0x10f7   :  { %v1546_v21 = vsub.f32 1.0, %v1545_v45  ;;  %vm1588_vm3 = vmor %vm1586_vm2, %vm1587_vm1 }
0x10f8   :  { %v1583_v7 = vsub.f32 1.0, %v1582_v24 }
0x10f9   :  { %v1547_v22 = vmul.f32 %v2022_v56, %v1546_v21 }
0x10fa   :  { %v1584_v46 = vmul.f32 %v2024_v33, %v1583_v7 }
0x10fb   :  { %v1548_v27 = vadd.f32 %v2022_v56, %v1547_v22 }
0x10fc   :  { %v1585_v23 = vadd.f32 %v2024_v33, %v1584_v46 }
0x10fd   :  { %v1552_v30 = vsel %vm1551_vm14, %v2022_v56, %v1548_v27 }
0x10fe   :  { %v1557_v20 = vsel %vm1554_vm15, %v1556_v32, %v1552_v30  ;;  %v1589_v42 = vsel %vm1588_vm3, %v2024_v33, %v1585_v23 }
0x10ff   :  { %v1594_v49 = vsel %vm1591_vm4, %v1593_v54, %v1589_v42  ;;  %v1560_v55 = vmul.f32 %v1557_v20, %v2508_v48 }
0x1100   :  { %v1597_v57 = vmul.f32 %v1594_v49, %v2512_v6 }
0x113d   :  { %v1563_v8 = vpop.permute.xlu1 %1562 }
0x113e   :  { %v1565_v9 = vmul.f32 %v1563_v8, %v1557_v20 }
0x1140   :  { %1567 = vrot.lane.b32.xlu0 %v1565_v9, %s2084_s7 }
0x1145   :  { %v1600_v17 = vpop.permute.xlu2 %1599 }
0x1146   :  { %v1602_v50 = vmul.f32 %v1600_v17, %v1594_v49 }
0x1148   :  { %1604 = vrot.lane.b32.xlu1 %v1602_v50, %s2084_s7 }
0x114d   :  { %v687_v52 = vpop.permute.xlu2 %686 }
0x114e   :  { %1823 = vst.msk [vmem:[%s2650_s13 + $0x1c] sm:$0xf] %vm682_vm5, %v687_v52 }
0x1150   :  { %679 = vrot.lane.b32.xlu1 %v2349_v51, %s2085_s0 }
0x1158   :  { %820 = vrot.lane.b32.xlu1 %v2383_v4, %s2085_s0 }
0x1160   :  { %1081 = vrot.lane.b32.xlu1 %v2439_v28, %s2085_s0 }
0x1168   :  { %1222 = vrot.lane.b32.xlu1 %v2469_v40, %s2085_s0 }
0x1170   :  { %1483 = vrot.lane.b32.xlu1 %v2517_v35, %s2085_s0 }
0x11b2   :  { %v1568_v34 = vpop.permute.xlu0 %1567 }
0x11b3   :  { %v1570_v36 = vadd.f32 %v1568_v34, %v1560_v55 }
0x11b5   :  { %2025 = vtanh.f32 %v1570_v36 }
0x11ba   :  { %v1605_v51 = vpop.permute.xlu1 %1604 }
0x11bb   :  { %v2026_v5 = vpop.eup %2025  ;;  %v1607_v62 = vadd.f32 %v1605_v51, %v1597_v57 }
0x11bc   :  { %1573 = vrot.lane.b32.xlu2 %v2026_v5, %s2084_s7 }
0x11bd   :  { %2027 = vtanh.f32 %v1607_v62 }
0x11c2   :  { %v680_v4 = vpop.permute.xlu1 %679 }
0x11c3   :  { %v2028_v28 = vpop.eup %2027  ;;  %683 = vst.msk [vmem:[%s2649_s12] sm:$0xf] %vm682_vm5, %v680_v4 }
0x11c4   :  { %1610 = vrot.lane.b32.xlu0 %v2028_v28, %s2084_s7  ;;  %947 = vrot.lane.b32.xlu2 %v2409_v19, %s2085_s0 }
0x11ca   :  { %v821_v40 = vpop.permute.xlu1 %820 }
0x11cb   :  { %1829 = vst.msk [vmem:[%s2650_s13 + $0x18] sm:$0xf] %vm682_vm5, %v821_v40 }
0x11cc   :  { %813 = vrot.lane.b32.xlu0 %v2379_v0, %s2085_s0  ;;  %1088 = vrot.lane.b32.xlu2 %v2443_v31, %s2085_s0 }
0x11d2   :  { %v1082_v48 = vpop.permute.xlu1 %1081 }
0x11d3   :  { %1840 = vst.msk [vmem:[%s2649_s12 + $0xc] sm:$0xf] %vm682_vm5, %v1082_v48 }
0x11d4   :  { %954 = vrot.lane.b32.xlu0 %v2413_v37, %s2085_s0  ;;  %1349 = vrot.lane.b32.xlu2 %v2491_v43, %s2085_s0 }
0x11da   :  { %v1223_v19 = vpop.permute.xlu1 %1222 }
0x11db   :  { %1847 = vst.msk [vmem:[%s2650_s13 + $0xc] sm:$0xf] %vm682_vm5, %v1223_v19 }
0x11dc   :  { %1215 = vrot.lane.b32.xlu0 %v2465_v14, %s2085_s0  ;;  %1490 = vrot.lane.b32.xlu2 %v2521_v58, %s2085_s0 }
0x11e2   :  { %v1484_v0 = vpop.permute.xlu1 %1483 }
0x11e3   :  { %1858 = vst.msk [vmem:[%s2649_s12 + $0x18] sm:$0xf] %vm682_vm5, %v1484_v0 }
0x11e4   :  { %1356 = vrot.lane.b32.xlu0 %v2495_v25, %s2085_s0 }
0x1216   :  { %v1574_v37 = vpop.permute.xlu2 %1573 }
0x1217   :  { %v1576_v31 = vmul.f32 %v1574_v37, %v1557_v20 }
0x1219   :  { %v1614_v43 = vpack.c.bf16 %v1576_v31, %v1576_v31  ;;  %1628 = vrot.lane.b32.xlu2 %v1576_v31, %s2085_s0 }
0x121b   :  { %1616 = vrot.lane.b32.xlu0 %v1614_v43, %s2085_s0 }
0x121e   :  { %v948_v14 = vpop.permute.xlu2 %947 }
0x121f   :  { %1834 = vst.msk [vmem:[%s2649_s12 + $0x8] sm:$0xf] %vm682_vm5, %v948_v14 }
0x1221   :  { %1643 = vrot.lane.b32.xlu2 %v1607_v62, %s2086_s5 }
0x1223   :  { %1633 = vrot.lane.b32.xlu0 %v1570_v36, %s2086_s5 }
0x1226   :  { %v1089_v6 = vpop.permute.xlu2 %1088 }
0x1227   :  { %1841 = vst.msk [vmem:[%s2650_s13 + $0x10] sm:$0xf] %vm682_vm5, %v1089_v6 }
0x122e   :  { %v1350_v25 = vpop.permute.xlu2 %1349 }
0x122f   :  { %1852 = vst.msk [vmem:[%s2649_s12 + $0x14] sm:$0xf] %vm682_vm5, %v1350_v25 }
0x1236   :  { %v1491_v35 = vpop.permute.xlu2 %1490  ;;  %v1611_v58 = vpop.permute.xlu0 %1610 }
0x1237   :  { %1859 = vst.msk [vmem:[%s2650_s13 + $0x4] sm:$0xf] %vm682_vm5, %v1491_v35  ;;  %v1613_v18 = vmul.f32 %v1611_v58, %v1594_v49 }
0x1239   :  { %v1621_v59 = vpack.c.bf16 %v1613_v18, %v1613_v18 }
0x123b   :  { %1623 = vrot.lane.b32.xlu1 %v1621_v59, %s2085_s0 }
0x123e   :  { %v814_v60 = vpop.permute.xlu0 %813 }
0x123f   :  { %1828 = vst.msk [vmem:[%s2649_s12 + $0x4] sm:$0xf] %vm682_vm5, %v814_v60 }
0x1243   :  { %1638 = vrot.lane.b32.xlu1 %v1613_v18, %s2085_s0 }
0x1246   :  { %v955_v63 = vpop.permute.xlu0 %954 }
0x1247   :  { %1835 = vst.msk [vmem:[%s2650_s13 + $0x14] sm:$0xf] %vm682_vm5, %v955_v63 }
0x124e   :  { %v1216_v61 = vpop.permute.xlu0 %1215 }
0x124f   :  { %1846 = vst.msk [vmem:[%s2649_s12 + $0x10] sm:$0xf] %vm682_vm5, %v1216_v61 }
0x1256   :  { %v1357_v39 = vpop.permute.xlu0 %1356 }
0x1257   :  { %1853 = vst.msk [vmem:[%s2650_s13 + $0x8] sm:$0xf] %vm682_vm5, %v1357_v39 }
0x1273   :  { %v1629_v1 = vpop.permute.xlu2 %1628 }
0x1274   :  { %1631 = vst.msk [vmem:[#allocation2] sm:$0xff] %vm134_vm0, %v1629_v1 }
0x127b   :  { %v1644_v2 = vpop.permute.xlu2 %1643 }
0x127c   :  { %1646 = vst.msk [vmem:[#allocation5] sm:$0xff] %vm134_vm0, %v1644_v2 }
0x128d   :  { %v1617_v26 = vpop.permute.xlu0 %1616 }
0x128e   :  { %1864 = vst.msk [vmem:[%s2649_s12 + $0x1c] sm:$0xf] %vm682_vm5, %v1617_v26 }
0x1295   :  { %v1634_v47 = vpop.permute.xlu0 %1633 }
0x1296   :  { %1636 = vst.msk [vmem:[#allocation3] sm:$0xff] %vm134_vm0, %v1634_v47 }
0x12ad   :  { %v1624_v3 = vpop.permute.xlu1 %1623 }
0x12ae   :  { %1626 = vst.msk [vmem:[%s2650_s13] sm:$0xf] %vm682_vm5, %v1624_v3 }
0x12b5   :  { %v1639_v10 = vpop.permute.xlu1 %1638 }
0x12b6   :  { %1641 = vst.msk [vmem:[#allocation4] sm:$0xff] %vm134_vm0, %v1639_v10 }
0x12b7   :  { %1669 = vsyncpa [#allocation9], 1 }
0x12b8   :  { %1670 = vsyncpa [#allocation11], 1 }

</bundles_post_ra>
